<compile_context>
chip_gen: v5e
topology: v5e:2x2
jax: 0.10.0
libtpu: 0.0.40
codegen_flags: <defaults>
</compile_context>

<pallas_src>
from functools import partial

import jax
import jax.numpy as jnp
from jax.experimental import pallas as pl
from jax.experimental.pallas import tpu as pltpu

# Small configuration consistent with the module structure:
#   Conv2d(64, 8, 3, padding=1); LSTMCell(lstm_in, H); Linear(H, A*A) x 2
C_IN = 64              # conv in channels (fixed by the module)
C_OUT = 8              # conv out channels (fixed by the module)
A = 8                  # att_size == spatial size (required by the broadcast in forward)
A2 = A * A             # 64
H = 32                 # lstm hidden size
S = 4                  # sequence length
B = 2                  # batch
CONV_FLAT = C_OUT * A2          # 512  (flattened conv features, channel-major)
LSTM_IN = CONV_FLAT + A2        # 576
K_CONV = 9 * C_IN               # 576  (im2col contraction)
GATES = 4 * H                   # 128
K_GATE = CONV_FLAT + H          # 544  (fused [x_att | h] gate contraction)


# --------------------------- fused kernel ------------------------------------
def _fused_rnn_kernel(patches_t_ref, wc_t_ref, bc_ref, mask_ref, wgm_ref, bg_ref,
                      wgch_ref, watt_t_ref, batt_t_ref, whead_ref, bhead_ref,
                      out_ref, xfeat_sc, hr_sc, *, seq_len, batch):
    n_items = seq_len * batch

    # ---- phase 1: conv for all (t, b) items in one MXU matmul -----------------
    # (C_OUT, 9*C_IN) @ (9*C_IN, n_items*A2) -> (C_OUT, n_items*A2)
    conv_all = jnp.dot(wc_t_ref[...], patches_t_ref[...],
                       preferred_element_type=jnp.float32) + bc_ref[...]

    # ---- phase 1a: one-shot relayout to channel-major rows --------------------
    # xfeat[(t,b), c*A2 + p] = conv_all[c, (t,b)*A2 + p]
    # Built as a value (static lane slices + lane concat + sublane select), then a
    # single unmasked (n_items, 512) store -- replaces the previous 64 masked
    # vst.msk partial stores (store-slot bound, worst on v5e's single vst slot).
    sub_iota = jax.lax.broadcasted_iota(jnp.int32, (n_items, CONV_FLAT), 0)
    xfeat = jnp.zeros((n_items, CONV_FLAT), jnp.float32)
    for item in range(n_items):
        row = jnp.concatenate(
            [conv_all[c:c + 1, item * A2:(item + 1) * A2] for c in range(C_OUT)],
            axis=1)                                          # (1, 512) lane-dense row
        xfeat = jnp.where(sub_iota == item, row, xfeat)
    xfeat_sc[...] = xfeat

    # ---- phase 1b: state-independent gate contribution (mask @ W + biases) ----
    mg = jnp.dot(mask_ref[...], wgm_ref[...],
                 preferred_element_type=jnp.float32) + bg_ref[...]   # (n_items, 4H), 1 vreg

    # ---- phase 2: recurrence, fully unrolled over the sequence ----------------
    # Weights are read from their VMEM refs inside each dot (no giant hoisted
    # values fighting the accumulators for vregs / forcing spills).
    h = jnp.zeros((batch, H), jnp.float32)
    c_st = jnp.zeros((batch, H), jnp.float32)
    att_scale = None                       # sigmoid(att_pre), pre-tiled across C_OUT

    for t in range(seq_len):
        if t == 0:
            # h == 0 and att == 0  ->  gate pre-activation is just the mask/bias term.
            gates = mg[0:batch, :]
        else:
            x_att = xfeat_sc[t * batch:(t + 1) * batch, :] * att_scale          # (B, 512)
            lhs = jnp.concatenate([x_att, h], axis=1)                           # (B, 544)
            gates = (jnp.dot(lhs, wgch_ref[...], preferred_element_type=jnp.float32)
                     + mg[t * batch:(t + 1) * batch, :])                        # (B, 4H)

        # full-vreg EUP passes, then 32-lane picks (PyTorch gate order i, f, g, o)
        sig = jax.nn.sigmoid(gates)
        th = jnp.tanh(gates)
        i_g = sig[:, 0:H]
        f_g = sig[:, H:2 * H]
        g_g = th[:, 2 * H:3 * H]
        o_g = sig[:, 3 * H:4 * H]

        c_st = f_g * c_st + i_g * g_g
        h = o_g * jnp.tanh(c_st)
        hr = jnp.maximum(h, 0.0)
        hr_sc[t * batch:(t + 1) * batch, :] = hr     # tiny stash; not on the serial chain

        if t + 1 < seq_len:
            # attention for the NEXT step, pre-tiled across conv channels:
            # column c*A2 + p of watt_t equals w_att[p, :] for every c.
            att_lin = (jnp.dot(hr, watt_t_ref[...], preferred_element_type=jnp.float32)
                       + batt_t_ref[...])                                       # (B, 512)
            att_scale = jax.nn.sigmoid(att_lin)

    # ---- phase 3: both heads for all steps in ONE matmul + ONE lane-dense store
    # whead = [w_att.T | w_out.T] : (H, 2*A2); output row r = t*batch + b.
    heads = (jnp.dot(hr_sc[...], whead_ref[...], preferred_element_type=jnp.float32)
             + bhead_ref[...])                                                  # (S*B, 128)
    out_ref[...] = heads                               # single unmasked 128-lane store


# ------------------------------- wrapper -------------------------------------
def rnn_forward(params, tensors, masks, training=True):
    """tensors: (B, S, C_IN, A, A) float32; masks: (B, S, A*A) float32."""
    Bv, Sv = tensors.shape[0], tensors.shape[1]
    n_items = Sv * Bv

    # ---------- im2col (wrapper-side layout only; tiny, one-time) ----------
    xt = jnp.transpose(tensors, (1, 0, 3, 4, 2))                    # (S, B, A, A, C_IN)
    xp = jnp.pad(xt, ((0, 0), (0, 0), (1, 1), (1, 1), (0, 0)))
    taps = [xp[:, :, kh:kh + A, kw:kw + A, :]
            for kh in range(3) for kw in range(3)]
    patches = jnp.stack(taps, axis=4)                               # (S, B, A, A, 9, C_IN)
    patches_t = patches.reshape(n_items * A2, K_CONV).T             # (576, S*B*A2)

    # ---------- weight packing (host-side, one-time) ----------
    wc_t = params["conv_w"].transpose(0, 2, 3, 1).reshape(C_OUT, K_CONV)   # (8, 576)
    bc = params["conv_b"].reshape(C_OUT, 1)

    w_ih = params["w_ih"]                                           # (4H, 576)
    wgch = jnp.concatenate([w_ih[:, :CONV_FLAT].T,                  # (512, 4H)
                            params["w_hh"].T], axis=0)              # -> (544, 4H) fused
    wgm = w_ih[:, CONV_FLAT:].T                                     # (64, 4H)
    bg = (params["b_ih"] + params["b_hh"]).reshape(1, GATES)

    # attention head pre-tiled across conv channels -> no per-step tiling in-kernel
    watt_t = jnp.tile(params["w_att"].T, (1, C_OUT))                # (H, 512)
    batt_t = jnp.tile(params["b_att"], (C_OUT,)).reshape(1, CONV_FLAT)

    # deferred combined heads: cols [0:A2] attention (pre-sigmoid), [A2:2*A2] out head
    whead = jnp.concatenate([params["w_att"].T, params["w_out"].T], axis=1)  # (H, 128)
    bhead = jnp.concatenate([params["b_att"], params["b_out"]]).reshape(1, 2 * A2)

    mask_sb = jnp.transpose(masks, (1, 0, 2)).reshape(n_items, A2)  # rows = (t, b)

    def spec(shape):
        zeros = (0,) * len(shape)
        return pl.BlockSpec(shape, lambda i: zeros)

    packed = pl.pallas_call(
        partial(_fused_rnn_kernel, seq_len=Sv, batch=Bv),
        out_shape=jax.ShapeDtypeStruct((n_items, 2 * A2), jnp.float32),
        grid=(1,),
        in_specs=[
            spec((K_CONV, n_items * A2)),     # patches_t (f32; bf16 halves DMA if tolerance allows)
            spec((C_OUT, K_CONV)),            # wc_t
            spec((C_OUT, 1)),                 # bc
            spec((n_items, A2)),              # mask_sb
            spec((A2, GATES)),                # wgm
            spec((1, GATES)),                 # bg
            spec((K_GATE, GATES)),            # wgch = [wgc ; wgh]
            spec((H, CONV_FLAT)),             # watt_t (tiled attention head)
            spec((1, CONV_FLAT)),             # batt_t
            spec((H, 2 * A2)),                # whead = [w_att | w_out]
            spec((1, 2 * A2)),                # bhead
        ],
        out_specs=spec((n_items, 2 * A2)),
        scratch_shapes=[pltpu.VMEM((n_items, CONV_FLAT), jnp.float32),   # xfeat slab
                        pltpu.VMEM((n_items, H), jnp.float32)],          # hr stash
        compiler_params=pltpu.CompilerParams(
            dimension_semantics=("arbitrary",)),
    )(patches_t, wc_t, bc, mask_sb, wgm, bg, wgch, watt_t, batt_t, whead, bhead)

    packed_bt = packed.reshape(Sv, Bv, 2 * A2).transpose(1, 0, 2)   # (B, S, 128)
    conv_att = packed_bt[:, :, :A2]      # pre-sigmoid, matches PyTorch conv_att[:, i]
    out = packed_bt[:, :, A2:]
    if not training:   # PyTorch: applied only when not self.training
        out = jax.nn.sigmoid(out)
        conv_att = jax.nn.sigmoid(conv_att)
    return out, conv_att


# ----------------------- parameters & pure-JAX reference ---------------------
def init_params(key):
    ks = jax.random.split(key, 10)

    def u(k, shape, fan_in):
        bound = 1.0 / (fan_in ** 0.5)
        return jax.random.uniform(k, shape, jnp.float32, -bound, bound)

    return dict(
        conv_w=u(ks[0], (C_OUT, C_IN, 3, 3), C_IN * 9),
        conv_b=u(ks[1], (C_OUT,), C_IN * 9),
        w_ih=u(ks[2], (4 * H, LSTM_IN), H),
        w_hh=u(ks[3], (4 * H, H), H),
        b_ih=u(ks[4], (4 * H,), H),
        b_hh=u(ks[5], (4 * H,), H),
        w_att=u(ks[6], (A2, H), H),
        b_att=u(ks[7], (A2,), H),
        w_out=u(ks[8], (A2, H), H),
        b_out=u(ks[9], (A2,), H),
    )


def rnn_forward_ref(params, tensors, masks, training=True):
    Bv, Sv = tensors.shape[0], tensors.shape[1]

    def conv(x):  # NCHW
        y = jax.lax.conv_general_dilated(
            x, params["conv_w"], (1, 1), "SAME",
            dimension_numbers=("NCHW", "OIHW", "NCHW"))
        return y + params["conv_b"][None, :, None, None]

    h = jnp.zeros((Bv, H)); c = jnp.zeros((Bv, H)); att = jnp.zeros((Bv, A, A))
    outs, atts = [], []
    for i in range(Sv):
        conv_t = conv(tensors[:, i])
        x = conv_t * att[:, None, :, :]
        inp = jnp.concatenate([x.reshape(Bv, -1), masks[:, i]], axis=1)
        gates = (inp @ params["w_ih"].T + h @ params["w_hh"].T
                 + params["b_ih"] + params["b_hh"])
        ig, fg, gg, og = jnp.split(gates, 4, axis=1)
        c = jax.nn.sigmoid(fg) * c + jax.nn.sigmoid(ig) * jnp.tanh(gg)
        h = jax.nn.sigmoid(og) * jnp.tanh(c)
        hr = jnp.maximum(h, 0.0)
        att_pre = hr @ params["w_att"].T + params["b_att"]
        atts.append(att_pre)
        att = jax.nn.sigmoid(att_pre).reshape(Bv, A, A)
        outs.append(hr @ params["w_out"].T + params["b_out"])
    out = jnp.stack(outs, 1); conv_att = jnp.stack(atts, 1)
    if not training:
        out = jax.nn.sigmoid(out); conv_att = jax.nn.sigmoid(conv_att)
    return out, conv_att


if __name__ == "__main__":
    key = jax.random.PRNGKey(0)
    kp, kt, km = jax.random.split(key, 3)
    params = init_params(kp)
    tensors = jax.random.normal(kt, (B, S, C_IN, A, A), jnp.float32)
    masks = jax.random.normal(km, (B, S, A2), jnp.float32)

    fwd = jax.jit(partial(rnn_forward, training=True))
    out, conv_att = fwd(params, tensors, masks)
    jax.block_until_ready((out, conv_att))

    out_ref_v, att_ref_v = rnn_forward_ref(params, tensors, masks, training=True)
    assert out.shape == (B, S, A2) and conv_att.shape == (B, S, A2)
    assert jnp.allclose(out, out_ref_v, atol=2e-3, rtol=2e-3)
    assert jnp.allclose(conv_att, att_ref_v, atol=2e-3, rtol=2e-3)
    print("KERNEL_OK")
</pallas_src>

<mosaic_0001>
module attributes {stable_mosaic.version = 11 : i64} {
  func.func @_fused_rnn_kernel(%arg0: i32, %arg1: memref<576x512xf32, #tpu.memory_space<vmem>>, %arg2: memref<8x576xf32, #tpu.memory_space<vmem>>, %arg3: memref<8x1xf32, #tpu.memory_space<vmem>>, %arg4: memref<8x64xf32, #tpu.memory_space<vmem>>, %arg5: memref<64x128xf32, #tpu.memory_space<vmem>>, %arg6: memref<1x128xf32, #tpu.memory_space<vmem>>, %arg7: memref<544x128xf32, #tpu.memory_space<vmem>>, %arg8: memref<32x512xf32, #tpu.memory_space<vmem>>, %arg9: memref<1x512xf32, #tpu.memory_space<vmem>>, %arg10: memref<32x128xf32, #tpu.memory_space<vmem>>, %arg11: memref<1x128xf32, #tpu.memory_space<vmem>>, %arg12: memref<8x128xf32, #tpu.memory_space<vmem>>, %arg13: memref<8x512xf32, #tpu.memory_space<vmem>>, %arg14: memref<8x32xf32, #tpu.memory_space<vmem>>) attributes {dimension_semantics = [#tpu.dimension_semantics<arbitrary>], iteration_bounds = array<i64: 1>, scalar_prefetch = 0 : i64, scratch_operands = 2 : i64, tpu.core_type = #tpu.core_type<tc>, window_params = [{pipeline_mode = #tpu.pipeline_mode<synchronous>, transform_indices = @transform_0, window_bounds = array<i64: 576, 512>}, {pipeline_mode = #tpu.pipeline_mode<synchronous>, transform_indices = @transform_1, window_bounds = array<i64: 8, 576>}, {pipeline_mode = #tpu.pipeline_mode<synchronous>, transform_indices = @transform_2, window_bounds = array<i64: 8, 1>}, {pipeline_mode = #tpu.pipeline_mode<synchronous>, transform_indices = @transform_3, window_bounds = array<i64: 8, 64>}, {pipeline_mode = #tpu.pipeline_mode<synchronous>, transform_indices = @transform_4, window_bounds = array<i64: 64, 128>}, {pipeline_mode = #tpu.pipeline_mode<synchronous>, transform_indices = @transform_5, window_bounds = array<i64: 1, 128>}, {pipeline_mode = #tpu.pipeline_mode<synchronous>, transform_indices = @transform_6, window_bounds = array<i64: 544, 128>}, {pipeline_mode = #tpu.pipeline_mode<synchronous>, transform_indices = @transform_7, window_bounds = array<i64: 32, 512>}, {pipeline_mode = #tpu.pipeline_mode<synchronous>, transform_indices = @transform_8, window_bounds = array<i64: 1, 512>}, {pipeline_mode = #tpu.pipeline_mode<synchronous>, transform_indices = @transform_9, window_bounds = array<i64: 32, 128>}, {pipeline_mode = #tpu.pipeline_mode<synchronous>, transform_indices = @transform_10, window_bounds = array<i64: 1, 128>}, {pipeline_mode = #tpu.pipeline_mode<synchronous>, transform_indices = @transform_11, window_bounds = array<i64: 8, 128>}]} {
    %c0 = arith.constant 0 : index
    %c0_0 = arith.constant 0 : index
    %0 = vector.load %arg2[%c0, %c0_0] : memref<8x576xf32, #tpu.memory_space<vmem>>, vector<8x576xf32>
    %c0_1 = arith.constant 0 : index
    %c0_2 = arith.constant 0 : index
    %1 = vector.load %arg1[%c0_1, %c0_2] : memref<576x512xf32, #tpu.memory_space<vmem>>, vector<576x512xf32>
    %cst = arith.constant dense<0.000000e+00> : vector<8x512xf32>
    %2 = tpu.matmul %0, %1, %cst {dimension_numbers = #tpu.dot_dimension_numbers<[1], [0], [0], [1], [0, 0, 1, 1], [], []>} : vector<8x576xf32>, vector<576x512xf32>, vector<8x512xf32> -> vector<8x512xf32>
    %c0_3 = arith.constant 0 : index
    %c0_4 = arith.constant 0 : index
    %3 = vector.load %arg3[%c0_3, %c0_4] : memref<8x1xf32, #tpu.memory_space<vmem>>, vector<8x1xf32>
    %4 = vector.broadcast %3 : vector<8x1xf32> to vector<8x512xf32>
    %5 = arith.addf %2, %4 : vector<8x512xf32>
    %6 = tpu.iota {dimensions = array<i32: 0>} : vector<8x512xi32>
    %cst_5 = arith.constant 0.000000e+00 : f32
    %7 = vector.broadcast %cst_5 : f32 to vector<8x512xf32>
    %8 = vector.extract_strided_slice %5 {offsets = [0, 0], sizes = [1, 64], strides = [1, 1]} : vector<8x512xf32> to vector<1x64xf32>
    %9 = vector.extract_strided_slice %5 {offsets = [1, 0], sizes = [1, 64], strides = [1, 1]} : vector<8x512xf32> to vector<1x64xf32>
    %10 = vector.extract_strided_slice %5 {offsets = [2, 0], sizes = [1, 64], strides = [1, 1]} : vector<8x512xf32> to vector<1x64xf32>
    %11 = vector.extract_strided_slice %5 {offsets = [3, 0], sizes = [1, 64], strides = [1, 1]} : vector<8x512xf32> to vector<1x64xf32>
    %12 = vector.extract_strided_slice %5 {offsets = [4, 0], sizes = [1, 64], strides = [1, 1]} : vector<8x512xf32> to vector<1x64xf32>
    %13 = vector.extract_strided_slice %5 {offsets = [5, 0], sizes = [1, 64], strides = [1, 1]} : vector<8x512xf32> to vector<1x64xf32>
    %14 = vector.extract_strided_slice %5 {offsets = [6, 0], sizes = [1, 64], strides = [1, 1]} : vector<8x512xf32> to vector<1x64xf32>
    %15 = vector.extract_strided_slice %5 {offsets = [7, 0], sizes = [1, 64], strides = [1, 1]} : vector<8x512xf32> to vector<1x64xf32>
    %16 = tpu.concatenate %8, %9, %10, %11, %12, %13, %14, %15 in 1 : vector<1x64xf32>, vector<1x64xf32>, vector<1x64xf32>, vector<1x64xf32>, vector<1x64xf32>, vector<1x64xf32>, vector<1x64xf32>, vector<1x64xf32> -> vector<1x512xf32>
    %c0_i32 = arith.constant 0 : i32
    %17 = vector.broadcast %c0_i32 : i32 to vector<8x512xi32>
    %18 = arith.cmpi eq, %6, %17 : vector<8x512xi32>
    %19 = vector.shape_cast %16 : vector<1x512xf32> to vector<1x512xf32>
    %20 = vector.broadcast %19 : vector<1x512xf32> to vector<8x512xf32>
    %21 = arith.select %18, %20, %7 : vector<8x512xi1>, vector<8x512xf32>
    %22 = vector.extract_strided_slice %5 {offsets = [0, 64], sizes = [1, 64], strides = [1, 1]} : vector<8x512xf32> to vector<1x64xf32>
    %23 = vector.extract_strided_slice %5 {offsets = [1, 64], sizes = [1, 64], strides = [1, 1]} : vector<8x512xf32> to vector<1x64xf32>
    %24 = vector.extract_strided_slice %5 {offsets = [2, 64], sizes = [1, 64], strides = [1, 1]} : vector<8x512xf32> to vector<1x64xf32>
    %25 = vector.extract_strided_slice %5 {offsets = [3, 64], sizes = [1, 64], strides = [1, 1]} : vector<8x512xf32> to vector<1x64xf32>
    %26 = vector.extract_strided_slice %5 {offsets = [4, 64], sizes = [1, 64], strides = [1, 1]} : vector<8x512xf32> to vector<1x64xf32>
    %27 = vector.extract_strided_slice %5 {offsets = [5, 64], sizes = [1, 64], strides = [1, 1]} : vector<8x512xf32> to vector<1x64xf32>
    %28 = vector.extract_strided_slice %5 {offsets = [6, 64], sizes = [1, 64], strides = [1, 1]} : vector<8x512xf32> to vector<1x64xf32>
    %29 = vector.extract_strided_slice %5 {offsets = [7, 64], sizes = [1, 64], strides = [1, 1]} : vector<8x512xf32> to vector<1x64xf32>
    %30 = tpu.concatenate %22, %23, %24, %25, %26, %27, %28, %29 in 1 : vector<1x64xf32>, vector<1x64xf32>, vector<1x64xf32>, vector<1x64xf32>, vector<1x64xf32>, vector<1x64xf32>, vector<1x64xf32>, vector<1x64xf32> -> vector<1x512xf32>
    %c1_i32 = arith.constant 1 : i32
    %31 = vector.broadcast %c1_i32 : i32 to vector<8x512xi32>
    %32 = arith.cmpi eq, %6, %31 : vector<8x512xi32>
    %33 = vector.shape_cast %30 : vector<1x512xf32> to vector<1x512xf32>
    %34 = vector.broadcast %33 : vector<1x512xf32> to vector<8x512xf32>
    %35 = arith.select %32, %34, %21 : vector<8x512xi1>, vector<8x512xf32>
    %36 = vector.extract_strided_slice %5 {offsets = [0, 128], sizes = [1, 64], strides = [1, 1]} : vector<8x512xf32> to vector<1x64xf32>
    %37 = vector.extract_strided_slice %5 {offsets = [1, 128], sizes = [1, 64], strides = [1, 1]} : vector<8x512xf32> to vector<1x64xf32>
    %38 = vector.extract_strided_slice %5 {offsets = [2, 128], sizes = [1, 64], strides = [1, 1]} : vector<8x512xf32> to vector<1x64xf32>
    %39 = vector.extract_strided_slice %5 {offsets = [3, 128], sizes = [1, 64], strides = [1, 1]} : vector<8x512xf32> to vector<1x64xf32>
    %40 = vector.extract_strided_slice %5 {offsets = [4, 128], sizes = [1, 64], strides = [1, 1]} : vector<8x512xf32> to vector<1x64xf32>
    %41 = vector.extract_strided_slice %5 {offsets = [5, 128], sizes = [1, 64], strides = [1, 1]} : vector<8x512xf32> to vector<1x64xf32>
    %42 = vector.extract_strided_slice %5 {offsets = [6, 128], sizes = [1, 64], strides = [1, 1]} : vector<8x512xf32> to vector<1x64xf32>
    %43 = vector.extract_strided_slice %5 {offsets = [7, 128], sizes = [1, 64], strides = [1, 1]} : vector<8x512xf32> to vector<1x64xf32>
    %44 = tpu.concatenate %36, %37, %38, %39, %40, %41, %42, %43 in 1 : vector<1x64xf32>, vector<1x64xf32>, vector<1x64xf32>, vector<1x64xf32>, vector<1x64xf32>, vector<1x64xf32>, vector<1x64xf32>, vector<1x64xf32> -> vector<1x512xf32>
    %c2_i32 = arith.constant 2 : i32
    %45 = vector.broadcast %c2_i32 : i32 to vector<8x512xi32>
    %46 = arith.cmpi eq, %6, %45 : vector<8x512xi32>
    %47 = vector.shape_cast %44 : vector<1x512xf32> to vector<1x512xf32>
    %48 = vector.broadcast %47 : vector<1x512xf32> to vector<8x512xf32>
    %49 = arith.select %46, %48, %35 : vector<8x512xi1>, vector<8x512xf32>
    %50 = vector.extract_strided_slice %5 {offsets = [0, 192], sizes = [1, 64], strides = [1, 1]} : vector<8x512xf32> to vector<1x64xf32>
    %51 = vector.extract_strided_slice %5 {offsets = [1, 192], sizes = [1, 64], strides = [1, 1]} : vector<8x512xf32> to vector<1x64xf32>
    %52 = vector.extract_strided_slice %5 {offsets = [2, 192], sizes = [1, 64], strides = [1, 1]} : vector<8x512xf32> to vector<1x64xf32>
    %53 = vector.extract_strided_slice %5 {offsets = [3, 192], sizes = [1, 64], strides = [1, 1]} : vector<8x512xf32> to vector<1x64xf32>
    %54 = vector.extract_strided_slice %5 {offsets = [4, 192], sizes = [1, 64], strides = [1, 1]} : vector<8x512xf32> to vector<1x64xf32>
    %55 = vector.extract_strided_slice %5 {offsets = [5, 192], sizes = [1, 64], strides = [1, 1]} : vector<8x512xf32> to vector<1x64xf32>
    %56 = vector.extract_strided_slice %5 {offsets = [6, 192], sizes = [1, 64], strides = [1, 1]} : vector<8x512xf32> to vector<1x64xf32>
    %57 = vector.extract_strided_slice %5 {offsets = [7, 192], sizes = [1, 64], strides = [1, 1]} : vector<8x512xf32> to vector<1x64xf32>
    %58 = tpu.concatenate %50, %51, %52, %53, %54, %55, %56, %57 in 1 : vector<1x64xf32>, vector<1x64xf32>, vector<1x64xf32>, vector<1x64xf32>, vector<1x64xf32>, vector<1x64xf32>, vector<1x64xf32>, vector<1x64xf32> -> vector<1x512xf32>
    %c3_i32 = arith.constant 3 : i32
    %59 = vector.broadcast %c3_i32 : i32 to vector<8x512xi32>
    %60 = arith.cmpi eq, %6, %59 : vector<8x512xi32>
    %61 = vector.shape_cast %58 : vector<1x512xf32> to vector<1x512xf32>
    %62 = vector.broadcast %61 : vector<1x512xf32> to vector<8x512xf32>
    %63 = arith.select %60, %62, %49 : vector<8x512xi1>, vector<8x512xf32>
    %64 = vector.extract_strided_slice %5 {offsets = [0, 256], sizes = [1, 64], strides = [1, 1]} : vector<8x512xf32> to vector<1x64xf32>
    %65 = vector.extract_strided_slice %5 {offsets = [1, 256], sizes = [1, 64], strides = [1, 1]} : vector<8x512xf32> to vector<1x64xf32>
    %66 = vector.extract_strided_slice %5 {offsets = [2, 256], sizes = [1, 64], strides = [1, 1]} : vector<8x512xf32> to vector<1x64xf32>
    %67 = vector.extract_strided_slice %5 {offsets = [3, 256], sizes = [1, 64], strides = [1, 1]} : vector<8x512xf32> to vector<1x64xf32>
    %68 = vector.extract_strided_slice %5 {offsets = [4, 256], sizes = [1, 64], strides = [1, 1]} : vector<8x512xf32> to vector<1x64xf32>
    %69 = vector.extract_strided_slice %5 {offsets = [5, 256], sizes = [1, 64], strides = [1, 1]} : vector<8x512xf32> to vector<1x64xf32>
    %70 = vector.extract_strided_slice %5 {offsets = [6, 256], sizes = [1, 64], strides = [1, 1]} : vector<8x512xf32> to vector<1x64xf32>
    %71 = vector.extract_strided_slice %5 {offsets = [7, 256], sizes = [1, 64], strides = [1, 1]} : vector<8x512xf32> to vector<1x64xf32>
    %72 = tpu.concatenate %64, %65, %66, %67, %68, %69, %70, %71 in 1 : vector<1x64xf32>, vector<1x64xf32>, vector<1x64xf32>, vector<1x64xf32>, vector<1x64xf32>, vector<1x64xf32>, vector<1x64xf32>, vector<1x64xf32> -> vector<1x512xf32>
    %c4_i32 = arith.constant 4 : i32
    %73 = vector.broadcast %c4_i32 : i32 to vector<8x512xi32>
    %74 = arith.cmpi eq, %6, %73 : vector<8x512xi32>
    %75 = vector.shape_cast %72 : vector<1x512xf32> to vector<1x512xf32>
    %76 = vector.broadcast %75 : vector<1x512xf32> to vector<8x512xf32>
    %77 = arith.select %74, %76, %63 : vector<8x512xi1>, vector<8x512xf32>
    %78 = vector.extract_strided_slice %5 {offsets = [0, 320], sizes = [1, 64], strides = [1, 1]} : vector<8x512xf32> to vector<1x64xf32>
    %79 = vector.extract_strided_slice %5 {offsets = [1, 320], sizes = [1, 64], strides = [1, 1]} : vector<8x512xf32> to vector<1x64xf32>
    %80 = vector.extract_strided_slice %5 {offsets = [2, 320], sizes = [1, 64], strides = [1, 1]} : vector<8x512xf32> to vector<1x64xf32>
    %81 = vector.extract_strided_slice %5 {offsets = [3, 320], sizes = [1, 64], strides = [1, 1]} : vector<8x512xf32> to vector<1x64xf32>
    %82 = vector.extract_strided_slice %5 {offsets = [4, 320], sizes = [1, 64], strides = [1, 1]} : vector<8x512xf32> to vector<1x64xf32>
    %83 = vector.extract_strided_slice %5 {offsets = [5, 320], sizes = [1, 64], strides = [1, 1]} : vector<8x512xf32> to vector<1x64xf32>
    %84 = vector.extract_strided_slice %5 {offsets = [6, 320], sizes = [1, 64], strides = [1, 1]} : vector<8x512xf32> to vector<1x64xf32>
    %85 = vector.extract_strided_slice %5 {offsets = [7, 320], sizes = [1, 64], strides = [1, 1]} : vector<8x512xf32> to vector<1x64xf32>
    %86 = tpu.concatenate %78, %79, %80, %81, %82, %83, %84, %85 in 1 : vector<1x64xf32>, vector<1x64xf32>, vector<1x64xf32>, vector<1x64xf32>, vector<1x64xf32>, vector<1x64xf32>, vector<1x64xf32>, vector<1x64xf32> -> vector<1x512xf32>
    %c5_i32 = arith.constant 5 : i32
    %87 = vector.broadcast %c5_i32 : i32 to vector<8x512xi32>
    %88 = arith.cmpi eq, %6, %87 : vector<8x512xi32>
    %89 = vector.shape_cast %86 : vector<1x512xf32> to vector<1x512xf32>
    %90 = vector.broadcast %89 : vector<1x512xf32> to vector<8x512xf32>
    %91 = arith.select %88, %90, %77 : vector<8x512xi1>, vector<8x512xf32>
    %92 = vector.extract_strided_slice %5 {offsets = [0, 384], sizes = [1, 64], strides = [1, 1]} : vector<8x512xf32> to vector<1x64xf32>
    %93 = vector.extract_strided_slice %5 {offsets = [1, 384], sizes = [1, 64], strides = [1, 1]} : vector<8x512xf32> to vector<1x64xf32>
    %94 = vector.extract_strided_slice %5 {offsets = [2, 384], sizes = [1, 64], strides = [1, 1]} : vector<8x512xf32> to vector<1x64xf32>
    %95 = vector.extract_strided_slice %5 {offsets = [3, 384], sizes = [1, 64], strides = [1, 1]} : vector<8x512xf32> to vector<1x64xf32>
    %96 = vector.extract_strided_slice %5 {offsets = [4, 384], sizes = [1, 64], strides = [1, 1]} : vector<8x512xf32> to vector<1x64xf32>
    %97 = vector.extract_strided_slice %5 {offsets = [5, 384], sizes = [1, 64], strides = [1, 1]} : vector<8x512xf32> to vector<1x64xf32>
    %98 = vector.extract_strided_slice %5 {offsets = [6, 384], sizes = [1, 64], strides = [1, 1]} : vector<8x512xf32> to vector<1x64xf32>
    %99 = vector.extract_strided_slice %5 {offsets = [7, 384], sizes = [1, 64], strides = [1, 1]} : vector<8x512xf32> to vector<1x64xf32>
    %100 = tpu.concatenate %92, %93, %94, %95, %96, %97, %98, %99 in 1 : vector<1x64xf32>, vector<1x64xf32>, vector<1x64xf32>, vector<1x64xf32>, vector<1x64xf32>, vector<1x64xf32>, vector<1x64xf32>, vector<1x64xf32> -> vector<1x512xf32>
    %c6_i32 = arith.constant 6 : i32
    %101 = vector.broadcast %c6_i32 : i32 to vector<8x512xi32>
    %102 = arith.cmpi eq, %6, %101 : vector<8x512xi32>
    %103 = vector.shape_cast %100 : vector<1x512xf32> to vector<1x512xf32>
    %104 = vector.broadcast %103 : vector<1x512xf32> to vector<8x512xf32>
    %105 = arith.select %102, %104, %91 : vector<8x512xi1>, vector<8x512xf32>
    %106 = vector.extract_strided_slice %5 {offsets = [0, 448], sizes = [1, 64], strides = [1, 1]} : vector<8x512xf32> to vector<1x64xf32>
    %107 = vector.extract_strided_slice %5 {offsets = [1, 448], sizes = [1, 64], strides = [1, 1]} : vector<8x512xf32> to vector<1x64xf32>
    %108 = vector.extract_strided_slice %5 {offsets = [2, 448], sizes = [1, 64], strides = [1, 1]} : vector<8x512xf32> to vector<1x64xf32>
    %109 = vector.extract_strided_slice %5 {offsets = [3, 448], sizes = [1, 64], strides = [1, 1]} : vector<8x512xf32> to vector<1x64xf32>
    %110 = vector.extract_strided_slice %5 {offsets = [4, 448], sizes = [1, 64], strides = [1, 1]} : vector<8x512xf32> to vector<1x64xf32>
    %111 = vector.extract_strided_slice %5 {offsets = [5, 448], sizes = [1, 64], strides = [1, 1]} : vector<8x512xf32> to vector<1x64xf32>
    %112 = vector.extract_strided_slice %5 {offsets = [6, 448], sizes = [1, 64], strides = [1, 1]} : vector<8x512xf32> to vector<1x64xf32>
    %113 = vector.extract_strided_slice %5 {offsets = [7, 448], sizes = [1, 64], strides = [1, 1]} : vector<8x512xf32> to vector<1x64xf32>
    %114 = tpu.concatenate %106, %107, %108, %109, %110, %111, %112, %113 in 1 : vector<1x64xf32>, vector<1x64xf32>, vector<1x64xf32>, vector<1x64xf32>, vector<1x64xf32>, vector<1x64xf32>, vector<1x64xf32>, vector<1x64xf32> -> vector<1x512xf32>
    %c7_i32 = arith.constant 7 : i32
    %115 = vector.broadcast %c7_i32 : i32 to vector<8x512xi32>
    %116 = arith.cmpi eq, %6, %115 : vector<8x512xi32>
    %117 = vector.shape_cast %114 : vector<1x512xf32> to vector<1x512xf32>
    %118 = vector.broadcast %117 : vector<1x512xf32> to vector<8x512xf32>
    %119 = arith.select %116, %118, %105 : vector<8x512xi1>, vector<8x512xf32>
    %c0_6 = arith.constant 0 : index
    %c0_7 = arith.constant 0 : index
    %120 = vector.load %arg13[%c0_6, %c0_7] : memref<8x512xf32, #tpu.memory_space<vmem>>, vector<8x512xf32>
    tpu.vector_store %arg13[%c0_6, %c0_7], %119 {strides = array<i32>} : memref<8x512xf32, #tpu.memory_space<vmem>>, vector<8x512xf32>,
    %c0_8 = arith.constant 0 : index
    %c0_9 = arith.constant 0 : index
    %121 = vector.load %arg4[%c0_8, %c0_9] : memref<8x64xf32, #tpu.memory_space<vmem>>, vector<8x64xf32>
    %c0_10 = arith.constant 0 : index
    %c0_11 = arith.constant 0 : index
    %122 = vector.load %arg5[%c0_10, %c0_11] : memref<64x128xf32, #tpu.memory_space<vmem>>, vector<64x128xf32>
    %cst_12 = arith.constant dense<0.000000e+00> : vector<8x128xf32>
    %123 = tpu.matmul %121, %122, %cst_12 {dimension_numbers = #tpu.dot_dimension_numbers<[1], [0], [0], [1], [0, 0, 1, 1], [], []>} : vector<8x64xf32>, vector<64x128xf32>, vector<8x128xf32> -> vector<8x128xf32>
    %c0_13 = arith.constant 0 : index
    %c0_14 = arith.constant 0 : index
    %124 = vector.load %arg6[%c0_13, %c0_14] : memref<1x128xf32, #tpu.memory_space<vmem>>, vector<1x128xf32>
    %125 = vector.broadcast %124 : vector<1x128xf32> to vector<8x128xf32>
    %126 = arith.addf %123, %125 : vector<8x128xf32>
    %cst_15 = arith.constant 0.000000e+00 : f32
    %127 = vector.broadcast %cst_15 : f32 to vector<2x32xf32>
    %128 = vector.extract_strided_slice %126 {offsets = [0, 0], sizes = [2, 128], strides = [1, 1]} : vector<8x128xf32> to vector<2x128xf32>
    %129 = arith.negf %128 : vector<2x128xf32>
    %130 = math.exp %129 : vector<2x128xf32>
    %cst_16 = arith.constant 1.000000e+00 : f32
    %131 = vector.broadcast %cst_16 : f32 to vector<2x128xf32>
    %132 = arith.addf %131, %130 : vector<2x128xf32>
    %133 = arith.divf %131, %132 : vector<2x128xf32>
    %134 = math.tanh %128 : vector<2x128xf32>
    %135 = vector.extract_strided_slice %133 {offsets = [0, 0], sizes = [2, 32], strides = [1, 1]} : vector<2x128xf32> to vector<2x32xf32>
    %136 = vector.extract_strided_slice %133 {offsets = [0, 32], sizes = [2, 32], strides = [1, 1]} : vector<2x128xf32> to vector<2x32xf32>
    %137 = vector.extract_strided_slice %134 {offsets = [0, 64], sizes = [2, 32], strides = [1, 1]} : vector<2x128xf32> to vector<2x32xf32>
    %138 = vector.extract_strided_slice %133 {offsets = [0, 96], sizes = [2, 32], strides = [1, 1]} : vector<2x128xf32> to vector<2x32xf32>
    %139 = arith.mulf %136, %127 : vector<2x32xf32>
    %140 = arith.mulf %135, %137 : vector<2x32xf32>
    %141 = arith.addf %139, %140 : vector<2x32xf32>
    %142 = math.tanh %141 : vector<2x32xf32>
    %143 = arith.mulf %138, %142 : vector<2x32xf32>
    %cst_17 = arith.constant 0.000000e+00 : f32
    %144 = vector.broadcast %cst_17 : f32 to vector<2x32xf32>
    %145 = arith.maximumf %143, %144 : vector<2x32xf32>
    %c0_18 = arith.constant 0 : index
    %c0_19 = arith.constant 0 : index
    %146 = vector.load %arg14[%c0_18, %c0_19] : memref<8x32xf32, #tpu.memory_space<vmem>>, vector<2x32xf32>
    tpu.vector_store %arg14[%c0_18, %c0_19], %145 {strides = array<i32>} : memref<8x32xf32, #tpu.memory_space<vmem>>, vector<2x32xf32>,
    %c0_20 = arith.constant 0 : index
    %c0_21 = arith.constant 0 : index
    %147 = vector.load %arg8[%c0_20, %c0_21] : memref<32x512xf32, #tpu.memory_space<vmem>>, vector<32x512xf32>
    %cst_22 = arith.constant dense<0.000000e+00> : vector<2x512xf32>
    %148 = tpu.matmul %145, %147, %cst_22 {dimension_numbers = #tpu.dot_dimension_numbers<[1], [0], [0], [1], [0, 0, 1, 1], [], []>} : vector<2x32xf32>, vector<32x512xf32>, vector<2x512xf32> -> vector<2x512xf32>
    %c0_23 = arith.constant 0 : index
    %c0_24 = arith.constant 0 : index
    %149 = vector.load %arg9[%c0_23, %c0_24] : memref<1x512xf32, #tpu.memory_space<vmem>>, vector<1x512xf32>
    %150 = vector.broadcast %149 : vector<1x512xf32> to vector<2x512xf32>
    %151 = arith.addf %148, %150 : vector<2x512xf32>
    %152 = arith.negf %151 : vector<2x512xf32>
    %153 = math.exp %152 : vector<2x512xf32>
    %cst_25 = arith.constant 1.000000e+00 : f32
    %154 = vector.broadcast %cst_25 : f32 to vector<2x512xf32>
    %155 = arith.addf %154, %153 : vector<2x512xf32>
    %156 = arith.divf %154, %155 : vector<2x512xf32>
    %c2 = arith.constant 2 : index
    %c0_26 = arith.constant 0 : index
    %157 = vector.load %arg13[%c2, %c0_26] : memref<8x512xf32, #tpu.memory_space<vmem>>, vector<2x512xf32>
    %158 = arith.mulf %157, %156 : vector<2x512xf32>
    %159 = tpu.concatenate %158, %143 in 1 : vector<2x512xf32>, vector<2x32xf32> -> vector<2x544xf32>
    %c0_27 = arith.constant 0 : index
    %c0_28 = arith.constant 0 : index
    %160 = vector.load %arg7[%c0_27, %c0_28] : memref<544x128xf32, #tpu.memory_space<vmem>>, vector<544x128xf32>
    %cst_29 = arith.constant dense<0.000000e+00> : vector<2x128xf32>
    %161 = tpu.matmul %159, %160, %cst_29 {dimension_numbers = #tpu.dot_dimension_numbers<[1], [0], [0], [1], [0, 0, 1, 1], [], []>} : vector<2x544xf32>, vector<544x128xf32>, vector<2x128xf32> -> vector<2x128xf32>
    %162 = vector.extract_strided_slice %126 {offsets = [2, 0], sizes = [2, 128], strides = [1, 1]} : vector<8x128xf32> to vector<2x128xf32>
    %163 = arith.addf %161, %162 : vector<2x128xf32>
    %164 = arith.negf %163 : vector<2x128xf32>
    %165 = math.exp %164 : vector<2x128xf32>
    %cst_30 = arith.constant 1.000000e+00 : f32
    %166 = vector.broadcast %cst_30 : f32 to vector<2x128xf32>
    %167 = arith.addf %166, %165 : vector<2x128xf32>
    %168 = arith.divf %166, %167 : vector<2x128xf32>
    %169 = math.tanh %163 : vector<2x128xf32>
    %170 = vector.extract_strided_slice %168 {offsets = [0, 0], sizes = [2, 32], strides = [1, 1]} : vector<2x128xf32> to vector<2x32xf32>
    %171 = vector.extract_strided_slice %168 {offsets = [0, 32], sizes = [2, 32], strides = [1, 1]} : vector<2x128xf32> to vector<2x32xf32>
    %172 = vector.extract_strided_slice %169 {offsets = [0, 64], sizes = [2, 32], strides = [1, 1]} : vector<2x128xf32> to vector<2x32xf32>
    %173 = vector.extract_strided_slice %168 {offsets = [0, 96], sizes = [2, 32], strides = [1, 1]} : vector<2x128xf32> to vector<2x32xf32>
    %174 = arith.mulf %171, %141 : vector<2x32xf32>
    %175 = arith.mulf %170, %172 : vector<2x32xf32>
    %176 = arith.addf %174, %175 : vector<2x32xf32>
    %177 = math.tanh %176 : vector<2x32xf32>
    %178 = arith.mulf %173, %177 : vector<2x32xf32>
    %cst_31 = arith.constant 0.000000e+00 : f32
    %179 = vector.broadcast %cst_31 : f32 to vector<2x32xf32>
    %180 = arith.maximumf %178, %179 : vector<2x32xf32>
    %c2_32 = arith.constant 2 : index
    %c0_33 = arith.constant 0 : index
    %181 = vector.load %arg14[%c2_32, %c0_33] : memref<8x32xf32, #tpu.memory_space<vmem>>, vector<2x32xf32>
    tpu.vector_store %arg14[%c2_32, %c0_33], %180 {strides = array<i32>} : memref<8x32xf32, #tpu.memory_space<vmem>>, vector<2x32xf32>,
    %c0_34 = arith.constant 0 : index
    %c0_35 = arith.constant 0 : index
    %182 = vector.load %arg8[%c0_34, %c0_35] : memref<32x512xf32, #tpu.memory_space<vmem>>, vector<32x512xf32>
    %cst_36 = arith.constant dense<0.000000e+00> : vector<2x512xf32>
    %183 = tpu.matmul %180, %182, %cst_36 {dimension_numbers = #tpu.dot_dimension_numbers<[1], [0], [0], [1], [0, 0, 1, 1], [], []>} : vector<2x32xf32>, vector<32x512xf32>, vector<2x512xf32> -> vector<2x512xf32>
    %c0_37 = arith.constant 0 : index
    %c0_38 = arith.constant 0 : index
    %184 = vector.load %arg9[%c0_37, %c0_38] : memref<1x512xf32, #tpu.memory_space<vmem>>, vector<1x512xf32>
    %185 = vector.broadcast %184 : vector<1x512xf32> to vector<2x512xf32>
    %186 = arith.addf %183, %185 : vector<2x512xf32>
    %187 = arith.negf %186 : vector<2x512xf32>
    %188 = math.exp %187 : vector<2x512xf32>
    %cst_39 = arith.constant 1.000000e+00 : f32
    %189 = vector.broadcast %cst_39 : f32 to vector<2x512xf32>
    %190 = arith.addf %189, %188 : vector<2x512xf32>
    %191 = arith.divf %189, %190 : vector<2x512xf32>
    %c4 = arith.constant 4 : index
    %c0_40 = arith.constant 0 : index
    %192 = vector.load %arg13[%c4, %c0_40] : memref<8x512xf32, #tpu.memory_space<vmem>>, vector<2x512xf32>
    %193 = arith.mulf %192, %191 : vector<2x512xf32>
    %194 = tpu.concatenate %193, %178 in 1 : vector<2x512xf32>, vector<2x32xf32> -> vector<2x544xf32>
    %c0_41 = arith.constant 0 : index
    %c0_42 = arith.constant 0 : index
    %195 = vector.load %arg7[%c0_41, %c0_42] : memref<544x128xf32, #tpu.memory_space<vmem>>, vector<544x128xf32>
    %cst_43 = arith.constant dense<0.000000e+00> : vector<2x128xf32>
    %196 = tpu.matmul %194, %195, %cst_43 {dimension_numbers = #tpu.dot_dimension_numbers<[1], [0], [0], [1], [0, 0, 1, 1], [], []>} : vector<2x544xf32>, vector<544x128xf32>, vector<2x128xf32> -> vector<2x128xf32>
    %197 = vector.extract_strided_slice %126 {offsets = [4, 0], sizes = [2, 128], strides = [1, 1]} : vector<8x128xf32> to vector<2x128xf32>
    %198 = arith.addf %196, %197 : vector<2x128xf32>
    %199 = arith.negf %198 : vector<2x128xf32>
    %200 = math.exp %199 : vector<2x128xf32>
    %cst_44 = arith.constant 1.000000e+00 : f32
    %201 = vector.broadcast %cst_44 : f32 to vector<2x128xf32>
    %202 = arith.addf %201, %200 : vector<2x128xf32>
    %203 = arith.divf %201, %202 : vector<2x128xf32>
    %204 = math.tanh %198 : vector<2x128xf32>
    %205 = vector.extract_strided_slice %203 {offsets = [0, 0], sizes = [2, 32], strides = [1, 1]} : vector<2x128xf32> to vector<2x32xf32>
    %206 = vector.extract_strided_slice %203 {offsets = [0, 32], sizes = [2, 32], strides = [1, 1]} : vector<2x128xf32> to vector<2x32xf32>
    %207 = vector.extract_strided_slice %204 {offsets = [0, 64], sizes = [2, 32], strides = [1, 1]} : vector<2x128xf32> to vector<2x32xf32>
    %208 = vector.extract_strided_slice %203 {offsets = [0, 96], sizes = [2, 32], strides = [1, 1]} : vector<2x128xf32> to vector<2x32xf32>
    %209 = arith.mulf %206, %176 : vector<2x32xf32>
    %210 = arith.mulf %205, %207 : vector<2x32xf32>
    %211 = arith.addf %209, %210 : vector<2x32xf32>
    %212 = math.tanh %211 : vector<2x32xf32>
    %213 = arith.mulf %208, %212 : vector<2x32xf32>
    %cst_45 = arith.constant 0.000000e+00 : f32
    %214 = vector.broadcast %cst_45 : f32 to vector<2x32xf32>
    %215 = arith.maximumf %213, %214 : vector<2x32xf32>
    %c4_46 = arith.constant 4 : index
    %c0_47 = arith.constant 0 : index
    %216 = vector.load %arg14[%c4_46, %c0_47] : memref<8x32xf32, #tpu.memory_space<vmem>>, vector<2x32xf32>
    tpu.vector_store %arg14[%c4_46, %c0_47], %215 {strides = array<i32>} : memref<8x32xf32, #tpu.memory_space<vmem>>, vector<2x32xf32>,
    %c0_48 = arith.constant 0 : index
    %c0_49 = arith.constant 0 : index
    %217 = vector.load %arg8[%c0_48, %c0_49] : memref<32x512xf32, #tpu.memory_space<vmem>>, vector<32x512xf32>
    %cst_50 = arith.constant dense<0.000000e+00> : vector<2x512xf32>
    %218 = tpu.matmul %215, %217, %cst_50 {dimension_numbers = #tpu.dot_dimension_numbers<[1], [0], [0], [1], [0, 0, 1, 1], [], []>} : vector<2x32xf32>, vector<32x512xf32>, vector<2x512xf32> -> vector<2x512xf32>
    %c0_51 = arith.constant 0 : index
    %c0_52 = arith.constant 0 : index
    %219 = vector.load %arg9[%c0_51, %c0_52] : memref<1x512xf32, #tpu.memory_space<vmem>>, vector<1x512xf32>
    %220 = vector.broadcast %219 : vector<1x512xf32> to vector<2x512xf32>
    %221 = arith.addf %218, %220 : vector<2x512xf32>
    %222 = arith.negf %221 : vector<2x512xf32>
    %223 = math.exp %222 : vector<2x512xf32>
    %cst_53 = arith.constant 1.000000e+00 : f32
    %224 = vector.broadcast %cst_53 : f32 to vector<2x512xf32>
    %225 = arith.addf %224, %223 : vector<2x512xf32>
    %226 = arith.divf %224, %225 : vector<2x512xf32>
    %c6 = arith.constant 6 : index
    %c0_54 = arith.constant 0 : index
    %227 = vector.load %arg13[%c6, %c0_54] : memref<8x512xf32, #tpu.memory_space<vmem>>, vector<2x512xf32>
    %228 = arith.mulf %227, %226 : vector<2x512xf32>
    %229 = tpu.concatenate %228, %213 in 1 : vector<2x512xf32>, vector<2x32xf32> -> vector<2x544xf32>
    %c0_55 = arith.constant 0 : index
    %c0_56 = arith.constant 0 : index
    %230 = vector.load %arg7[%c0_55, %c0_56] : memref<544x128xf32, #tpu.memory_space<vmem>>, vector<544x128xf32>
    %cst_57 = arith.constant dense<0.000000e+00> : vector<2x128xf32>
    %231 = tpu.matmul %229, %230, %cst_57 {dimension_numbers = #tpu.dot_dimension_numbers<[1], [0], [0], [1], [0, 0, 1, 1], [], []>} : vector<2x544xf32>, vector<544x128xf32>, vector<2x128xf32> -> vector<2x128xf32>
    %232 = vector.extract_strided_slice %126 {offsets = [6, 0], sizes = [2, 128], strides = [1, 1]} : vector<8x128xf32> to vector<2x128xf32>
    %233 = arith.addf %231, %232 : vector<2x128xf32>
    %234 = arith.negf %233 : vector<2x128xf32>
    %235 = math.exp %234 : vector<2x128xf32>
    %cst_58 = arith.constant 1.000000e+00 : f32
    %236 = vector.broadcast %cst_58 : f32 to vector<2x128xf32>
    %237 = arith.addf %236, %235 : vector<2x128xf32>
    %238 = arith.divf %236, %237 : vector<2x128xf32>
    %239 = math.tanh %233 : vector<2x128xf32>
    %240 = vector.extract_strided_slice %238 {offsets = [0, 0], sizes = [2, 32], strides = [1, 1]} : vector<2x128xf32> to vector<2x32xf32>
    %241 = vector.extract_strided_slice %238 {offsets = [0, 32], sizes = [2, 32], strides = [1, 1]} : vector<2x128xf32> to vector<2x32xf32>
    %242 = vector.extract_strided_slice %239 {offsets = [0, 64], sizes = [2, 32], strides = [1, 1]} : vector<2x128xf32> to vector<2x32xf32>
    %243 = vector.extract_strided_slice %238 {offsets = [0, 96], sizes = [2, 32], strides = [1, 1]} : vector<2x128xf32> to vector<2x32xf32>
    %244 = arith.mulf %241, %211 : vector<2x32xf32>
    %245 = arith.mulf %240, %242 : vector<2x32xf32>
    %246 = arith.addf %244, %245 : vector<2x32xf32>
    %247 = math.tanh %246 : vector<2x32xf32>
    %248 = arith.mulf %243, %247 : vector<2x32xf32>
    %cst_59 = arith.constant 0.000000e+00 : f32
    %249 = vector.broadcast %cst_59 : f32 to vector<2x32xf32>
    %250 = arith.maximumf %248, %249 : vector<2x32xf32>
    %c6_60 = arith.constant 6 : index
    %c0_61 = arith.constant 0 : index
    %251 = vector.load %arg14[%c6_60, %c0_61] : memref<8x32xf32, #tpu.memory_space<vmem>>, vector<2x32xf32>
    tpu.vector_store %arg14[%c6_60, %c0_61], %250 {strides = array<i32>} : memref<8x32xf32, #tpu.memory_space<vmem>>, vector<2x32xf32>,
    %c0_62 = arith.constant 0 : index
    %c0_63 = arith.constant 0 : index
    %252 = vector.load %arg14[%c0_62, %c0_63] : memref<8x32xf32, #tpu.memory_space<vmem>>, vector<8x32xf32>
    %c0_64 = arith.constant 0 : index
    %c0_65 = arith.constant 0 : index
    %253 = vector.load %arg10[%c0_64, %c0_65] : memref<32x128xf32, #tpu.memory_space<vmem>>, vector<32x128xf32>
    %cst_66 = arith.constant dense<0.000000e+00> : vector<8x128xf32>
    %254 = tpu.matmul %252, %253, %cst_66 {dimension_numbers = #tpu.dot_dimension_numbers<[1], [0], [0], [1], [0, 0, 1, 1], [], []>} : vector<8x32xf32>, vector<32x128xf32>, vector<8x128xf32> -> vector<8x128xf32>
    %c0_67 = arith.constant 0 : index
    %c0_68 = arith.constant 0 : index
    %255 = vector.load %arg11[%c0_67, %c0_68] : memref<1x128xf32, #tpu.memory_space<vmem>>, vector<1x128xf32>
    %256 = vector.broadcast %255 : vector<1x128xf32> to vector<8x128xf32>
    %257 = arith.addf %254, %256 : vector<8x128xf32>
    %c0_69 = arith.constant 0 : index
    %c0_70 = arith.constant 0 : index
    %258 = vector.load %arg12[%c0_69, %c0_70] : memref<8x128xf32, #tpu.memory_space<vmem>>, vector<8x128xf32>
    tpu.vector_store %arg12[%c0_69, %c0_70], %257 {strides = array<i32>} : memref<8x128xf32, #tpu.memory_space<vmem>>, vector<8x128xf32>,
    return
  }
  func.func @transform_0(%arg0: i32) -> (i32, i32) {
    %c0_i32 = arith.constant 0 : i32
    %c0_i32_0 = arith.constant 0 : i32
    %c0_i32_1 = arith.constant 0 : i32
    return %c0_i32, %c0_i32_0 : i32, i32
  }
  func.func @transform_1(%arg0: i32) -> (i32, i32) {
    %c0_i32 = arith.constant 0 : i32
    %c0_i32_0 = arith.constant 0 : i32
    %c0_i32_1 = arith.constant 0 : i32
    return %c0_i32, %c0_i32_0 : i32, i32
  }
  func.func @transform_2(%arg0: i32) -> (i32, i32) {
    %c0_i32 = arith.constant 0 : i32
    %c0_i32_0 = arith.constant 0 : i32
    %c0_i32_1 = arith.constant 0 : i32
    return %c0_i32, %c0_i32_0 : i32, i32
  }
  func.func @transform_3(%arg0: i32) -> (i32, i32) {
    %c0_i32 = arith.constant 0 : i32
    %c0_i32_0 = arith.constant 0 : i32
    %c0_i32_1 = arith.constant 0 : i32
    return %c0_i32, %c0_i32_0 : i32, i32
  }
  func.func @transform_4(%arg0: i32) -> (i32, i32) {
    %c0_i32 = arith.constant 0 : i32
    %c0_i32_0 = arith.constant 0 : i32
    %c0_i32_1 = arith.constant 0 : i32
    return %c0_i32, %c0_i32_0 : i32, i32
  }
  func.func @transform_5(%arg0: i32) -> (i32, i32) {
    %c0_i32 = arith.constant 0 : i32
    %c0_i32_0 = arith.constant 0 : i32
    %c0_i32_1 = arith.constant 0 : i32
    return %c0_i32, %c0_i32_0 : i32, i32
  }
  func.func @transform_6(%arg0: i32) -> (i32, i32) {
    %c0_i32 = arith.constant 0 : i32
    %c0_i32_0 = arith.constant 0 : i32
    %c0_i32_1 = arith.constant 0 : i32
    return %c0_i32, %c0_i32_0 : i32, i32
  }
  func.func @transform_7(%arg0: i32) -> (i32, i32) {
    %c0_i32 = arith.constant 0 : i32
    %c0_i32_0 = arith.constant 0 : i32
    %c0_i32_1 = arith.constant 0 : i32
    return %c0_i32, %c0_i32_0 : i32, i32
  }
  func.func @transform_8(%arg0: i32) -> (i32, i32) {
    %c0_i32 = arith.constant 0 : i32
    %c0_i32_0 = arith.constant 0 : i32
    %c0_i32_1 = arith.constant 0 : i32
    return %c0_i32, %c0_i32_0 : i32, i32
  }
  func.func @transform_9(%arg0: i32) -> (i32, i32) {
    %c0_i32 = arith.constant 0 : i32
    %c0_i32_0 = arith.constant 0 : i32
    %c0_i32_1 = arith.constant 0 : i32
    return %c0_i32, %c0_i32_0 : i32, i32
  }
  func.func @transform_10(%arg0: i32) -> (i32, i32) {
    %c0_i32 = arith.constant 0 : i32
    %c0_i32_0 = arith.constant 0 : i32
    %c0_i32_1 = arith.constant 0 : i32
    return %c0_i32, %c0_i32_0 : i32, i32
  }
  func.func @transform_11(%arg0: i32) -> (i32, i32) {
    %c0_i32 = arith.constant 0 : i32
    %c0_i32_0 = arith.constant 0 : i32
    %c0_i32_1 = arith.constant 0 : i32
    return %c0_i32, %c0_i32_0 : i32, i32
  }
}

</mosaic_0001>

<bundles_post_ra>
// kernel: tile.14
= control target key start
LH: loop header
LB: loop body
LE: loop exit
PB: predicated region body
PF: predicated region fallthrough
CT: control target
= control target key end

     0   :  { %vm116_vm0 = vcmask 1047556   ;;  %s381_s14 = smov 64   ;;  %vm3_vm1 = vcmask 523264   ;;  %vm120_vm2 = vcmask 1048064   ;;  %s760_s0 = inlined_call_operand.vmem [shape: f32[32,8,64], index: 0, kind: input, shape index: {}]   ;;  %s761_s1 = inlined_call_operand.vmem [shape: f32[32,512], index: 1, kind: output, shape index: {}]  }
   0x1   :  { %v333_v0 = vld [vmem:[%s760_s0 + $0x1] ss:$8 sm:$0xf]   ;;  %v344_v11 = vld [vmem:[%s760_s0 + $0x3] ss:$8 sm:$0xf]  }
   0x2   :  { %v334_v1 = vld [vmem:[%s760_s0 + $0x1] ss:$8 sm:$0xf0]   ;;  %v345_v12 = vld [vmem:[%s760_s0 + $0x3] ss:$8 sm:$0xf0]  }
   0x3   :  { %v117_v2 = vsel %vm116_vm0, %v334_v1, %v333_v0  ;;  %v338_v3 = vld [vmem:[%s760_s0 + $0x81] ss:$8 sm:$0xf]   ;;  %v160_v14 = vsel %vm116_vm0, %v345_v12, %v344_v11  ;;  %v347_v15 = vld [vmem:[%s760_s0 + $0x43] ss:$8 sm:$0xf]  }
   0x4   :  { %v339_v4 = vld [vmem:[%s760_s0 + $0x81] ss:$8 sm:$0xf0]   ;;  %118 = vrot.lane.b32.xlu0 %v117_v2, %s381_s14  ;;  %161 = vrot.lane.b32.xlu2 %v160_v14, %s381_s14  ;;  %v348_v16 = vld [vmem:[%s760_s0 + $0x43] ss:$8 sm:$0xf0]  }
   0x5   :  { %v138_v5 = vsel %vm116_vm0, %v339_v4, %v338_v3  ;;  %v335_v6 = vld [vmem:[%s760_s0 + $0x41] ss:$8 sm:$0xf]   ;;  %v350_v17 = vld [vmem:[%s760_s0 + $0x83] ss:$8 sm:$0xf]   ;;  %v171_v21 = vsel %vm116_vm0, %v348_v16, %v347_v15 }
   0x6   :  { %139 = vrot.lane.b32.xlu1 %v138_v5, %s381_s14  ;;  %v336_v7 = vld [vmem:[%s760_s0 + $0x41] ss:$8 sm:$0xf0]   ;;  %v351_v18 = vld [vmem:[%s760_s0 + $0x83] ss:$8 sm:$0xf0]  }
   0x7   :  { %v341_v8 = vld [vmem:[%s760_s0 + $0xc1] ss:$8 sm:$0xf]   ;;  %v127_v10 = vsel %vm116_vm0, %v336_v7, %v335_v6  ;;  %v353_v19 = vld [vmem:[%s760_s0 + $0xc3] ss:$8 sm:$0xf]   ;;  %v182_v22 = vsel %vm116_vm0, %v351_v18, %v350_v17 }
   0x8   :  { %v342_v9 = vld [vmem:[%s760_s0 + $0xc1] ss:$8 sm:$0xf0]   ;;  %v354_v20 = vld [vmem:[%s760_s0 + $0xc3] ss:$8 sm:$0xf0]  }
   0x9   :  { %v149_v13 = vsel %vm116_vm0, %v342_v9, %v341_v8  ;;  %v193_v23 = vsel %vm116_vm0, %v354_v20, %v353_v19  ;;  %v356_v24 = vld [vmem:[%s760_s0 + $0x5] ss:$8 sm:$0xf]   ;;  %v368_v35 = vld [vmem:[%s760_s0 + $0x7] ss:$8 sm:$0xf]  }
   0xa   :  { %v357_v25 = vld [vmem:[%s760_s0 + $0x5] ss:$8 sm:$0xf0]   ;;  %v369_v36 = vld [vmem:[%s760_s0 + $0x7] ss:$8 sm:$0xf0]  }
   0xb   :  { %v359_v26 = vld [vmem:[%s760_s0 + $0x45] ss:$8 sm:$0xf]   ;;  %v204_v30 = vsel %vm116_vm0, %v357_v25, %v356_v24  ;;  %v371_v37 = vld [vmem:[%s760_s0 + $0x47] ss:$8 sm:$0xf]   ;;  %v248_v40 = vsel %vm116_vm0, %v369_v36, %v368_v35 }
   0xc   :  { %128 = vrot.lane.b32.xlu0 %v127_v10, %s381_s14  ;;  %172 = vrot.lane.b32.xlu2 %v171_v21, %s381_s14  ;;  %v360_v27 = vld [vmem:[%s760_s0 + $0x45] ss:$8 sm:$0xf0]   ;;  %v372_v38 = vld [vmem:[%s760_s0 + $0x47] ss:$8 sm:$0xf0]  }
   0xd   :  { %v362_v28 = vld [vmem:[%s760_s0 + $0x85] ss:$8 sm:$0xf]   ;;  %v215_v31 = vsel %vm116_vm0, %v360_v27, %v359_v26  ;;  %v259_v41 = vsel %vm116_vm0, %v372_v38, %v371_v37  ;;  %v374_v42 = vld [vmem:[%s760_s0 + $0x87] ss:$8 sm:$0xf]  }
   0xe   :  { %150 = vrot.lane.b32.xlu1 %v149_v13, %s381_s14  ;;  %v363_v29 = vld [vmem:[%s760_s0 + $0x85] ss:$8 sm:$0xf0]   ;;  %v375_v43 = vld [vmem:[%s760_s0 + $0x87] ss:$8 sm:$0xf0]  }
   0xf   :  { %v226_v32 = vsel %vm116_vm0, %v363_v29, %v362_v28  ;;  %v365_v33 = vld [vmem:[%s760_s0 + $0xc5] ss:$8 sm:$0xf]   ;;  %v377_v44 = vld [vmem:[%s760_s0 + $0xc7] ss:$8 sm:$0xf]   ;;  %v270_v46 = vsel %vm116_vm0, %v375_v43, %v374_v42 }
  0x10   :  { %v366_v34 = vld [vmem:[%s760_s0 + $0xc5] ss:$8 sm:$0xf0]   ;;  %v378_v45 = vld [vmem:[%s760_s0 + $0xc7] ss:$8 sm:$0xf0]  }
  0x11   :  { %v237_v39 = vsel %vm116_vm0, %v366_v34, %v365_v33  ;;  %v281_v47 = vsel %vm116_vm0, %v378_v45, %v377_v44  ;;  %v2_v48 = vld [vmem:[%s760_s0] ss:$2 sm:$0xff]   ;;  %v288_v49 = vld [vmem:[%s760_s0 + $0x10] ss:$2 sm:$0xff]  }
  0x12   :  { %4 = vst.msk [vmem:[%s761_s1] ss:$8 sm:$0xf] %vm3_vm1, %v2_v48   ;;  %v291_v50 = vld [vmem:[%s760_s0 + $0x20] ss:$2 sm:$0xff]  }
  0x13   :  { %287 = vst.msk [vmem:[%s761_s1 - $0x1f] ss:$8 sm:$0xf0] %vm3_vm1, %v2_v48   ;;  %v294_v51 = vld [vmem:[%s760_s0 + $0x30] ss:$2 sm:$0xff]  }
  0x14   :  { %183 = vrot.lane.b32.xlu0 %v182_v22, %s381_s14  ;;  %205 = vrot.lane.b32.xlu2 %v204_v30, %s381_s14  ;;  %289 = vst.msk [vmem:[%s761_s1 + $0x2] ss:$8 sm:$0xf] %vm3_vm1, %v288_v49   ;;  %v309_v52 = vld [vmem:[%s760_s0 + $0x80] ss:$2 sm:$0xff]  }
  0x15   :  { %290 = vst.msk [vmem:[%s761_s1 - $0x1d] ss:$8 sm:$0xf0] %vm3_vm1, %v288_v49   ;;  %v312_v53 = vld [vmem:[%s760_s0 + $0x90] ss:$2 sm:$0xff]  }
  0x16   :  { %194 = vrot.lane.b32.xlu1 %v193_v23, %s381_s14  ;;  %292 = vst.msk [vmem:[%s761_s1 + $0x4] ss:$8 sm:$0xf] %vm3_vm1, %v291_v50   ;;  %v315_v54 = vld [vmem:[%s760_s0 + $0xa0] ss:$2 sm:$0xff]  }
  0x17   :  { %293 = vst.msk [vmem:[%s761_s1 - $0x1b] ss:$8 sm:$0xf0] %vm3_vm1, %v291_v50   ;;  %v318_v55 = vld [vmem:[%s760_s0 + $0xb0] ss:$2 sm:$0xff]  }
  0x18   :  { %295 = vst.msk [vmem:[%s761_s1 + $0x6] ss:$8 sm:$0xf] %vm3_vm1, %v294_v51   ;;  %v297_v56 = vld [vmem:[%s760_s0 + $0x40] ss:$2 sm:$0xff]  }
  0x19   :  { %296 = vst.msk [vmem:[%s761_s1 - $0x19] ss:$8 sm:$0xf0] %vm3_vm1, %v294_v51   ;;  %v300_v58 = vld [vmem:[%s760_s0 + $0x50] ss:$2 sm:$0xff]  }
  0x1a   :  { %310 = vst.msk [vmem:[%s761_s1 + $0x40] ss:$8 sm:$0xf] %vm3_vm1, %v309_v52   ;;  %v303_v59 = vld [vmem:[%s760_s0 + $0x60] ss:$2 sm:$0xff]  }
  0x1b   :  { %311 = vst.msk [vmem:[%s761_s1 + $0x21] ss:$8 sm:$0xf0] %vm3_vm1, %v309_v52   ;;  %v306_v60 = vld [vmem:[%s760_s0 + $0x70] ss:$2 sm:$0xff]  }
  0x1c   :  { %216 = vrot.lane.b32.xlu0 %v215_v31, %s381_s14  ;;  %238 = vrot.lane.b32.xlu2 %v237_v39, %s381_s14  ;;  %313 = vst.msk [vmem:[%s761_s1 + $0x42] ss:$8 sm:$0xf] %vm3_vm1, %v312_v53   ;;  %v321_v62 = vld [vmem:[%s760_s0 + $0xc0] ss:$2 sm:$0xff]  }
  0x1d   :  { %314 = vst.msk [vmem:[%s761_s1 + $0x23] ss:$8 sm:$0xf0] %vm3_vm1, %v312_v53   ;;  %v324_v63 = vld [vmem:[%s760_s0 + $0xd0] ss:$2 sm:$0xff]  }
  0x1e   :  { %227 = vrot.lane.b32.xlu1 %v226_v32, %s381_s14  ;;  %316 = vst.msk [vmem:[%s761_s1 + $0x44] ss:$8 sm:$0xf] %vm3_vm1, %v315_v54   ;;  %v327_v0 = vld [vmem:[%s760_s0 + $0xe0] ss:$2 sm:$0xff]  }
  0x1f   :  { %317 = vst.msk [vmem:[%s761_s1 + $0x25] ss:$8 sm:$0xf0] %vm3_vm1, %v315_v54   ;;  %v330_v1 = vld [vmem:[%s760_s0 + $0xf0] ss:$2 sm:$0xff]  }
  0x20   :  { %319 = vst.msk [vmem:[%s761_s1 + $0x46] ss:$8 sm:$0xf] %vm3_vm1, %v318_v55  }
  0x21   :  { %320 = vst.msk [vmem:[%s761_s1 + $0x27] ss:$8 sm:$0xf0] %vm3_vm1, %v318_v55  }
  0x22   :  { %298 = vst.msk [vmem:[%s761_s1 + $0x20] ss:$8 sm:$0xf] %vm3_vm1, %v297_v56  }
  0x23   :  { %299 = vst.msk [vmem:[%s761_s1 + $0x1] ss:$8 sm:$0xf0] %vm3_vm1, %v297_v56  }
  0x24   :  { %249 = vrot.lane.b32.xlu0 %v248_v40, %s381_s14  ;;  %271 = vrot.lane.b32.xlu2 %v270_v46, %s381_s14  ;;  %301 = vst.msk [vmem:[%s761_s1 + $0x22] ss:$8 sm:$0xf] %vm3_vm1, %v300_v58  }
  0x25   :  { %302 = vst.msk [vmem:[%s761_s1 + $0x3] ss:$8 sm:$0xf0] %vm3_vm1, %v300_v58  }
  0x26   :  { %260 = vrot.lane.b32.xlu1 %v259_v41, %s381_s14  ;;  %304 = vst.msk [vmem:[%s761_s1 + $0x24] ss:$8 sm:$0xf] %vm3_vm1, %v303_v59  }
  0x27   :  { %305 = vst.msk [vmem:[%s761_s1 + $0x5] ss:$8 sm:$0xf0] %vm3_vm1, %v303_v59  }
  0x28   :  { %307 = vst.msk [vmem:[%s761_s1 + $0x26] ss:$8 sm:$0xf] %vm3_vm1, %v306_v60  }
  0x29   :  { %308 = vst.msk [vmem:[%s761_s1 + $0x7] ss:$8 sm:$0xf0] %vm3_vm1, %v306_v60  }
  0x2a   :  { %322 = vst.msk [vmem:[%s761_s1 + $0x60] ss:$8 sm:$0xf] %vm3_vm1, %v321_v62  }
  0x2b   :  { %323 = vst.msk [vmem:[%s761_s1 + $0x41] ss:$8 sm:$0xf0] %vm3_vm1, %v321_v62  }
  0x2c   :  { %282 = vrot.lane.b32.xlu0 %v281_v47, %s381_s14  ;;  %325 = vst.msk [vmem:[%s761_s1 + $0x62] ss:$8 sm:$0xf] %vm3_vm1, %v324_v63  }
  0x2d   :  { %326 = vst.msk [vmem:[%s761_s1 + $0x43] ss:$8 sm:$0xf0] %vm3_vm1, %v324_v63  }
  0x2e   :  { %328 = vst.msk [vmem:[%s761_s1 + $0x64] ss:$8 sm:$0xf] %vm3_vm1, %v327_v0  }
  0x2f   :  { %329 = vst.msk [vmem:[%s761_s1 + $0x45] ss:$8 sm:$0xf0] %vm3_vm1, %v327_v0  }
  0x30   :  { %331 = vst.msk [vmem:[%s761_s1 + $0x66] ss:$8 sm:$0xf] %vm3_vm1, %v330_v1  }
  0x31   :  { %332 = vst.msk [vmem:[%s761_s1 + $0x47] ss:$8 sm:$0xf0] %vm3_vm1, %v330_v1  }
  0x5e   :  { %v162_v57 = vpop.permute.xlu2 %161  }
  0x5f   :  { %346 = vst.msk [vmem:[%s761_s1 + $0x8] sm:$0xff] %vm120_vm2, %v162_v57  }
  0x66   :  { %v173_v61 = vpop.permute.xlu2 %172  }
  0x67   :  { %349 = vst.msk [vmem:[%s761_s1 + $0x28] sm:$0xff] %vm120_vm2, %v173_v61  }
  0x6e   :  { %v206_v2 = vpop.permute.xlu2 %205  }
  0x6f   :  { %358 = vst.msk [vmem:[%s761_s1 + $0x10] sm:$0xff] %vm120_vm2, %v206_v2  }
  0x76   :  { %v119_v3 = vpop.permute.xlu0 %118   ;;  %v239_v5 = vpop.permute.xlu2 %238  }
  0x77   :  { %121 = vst.msk [vmem:[%s761_s1] sm:$0xff] %vm120_vm2, %v119_v3  }
  0x78   :  { %v140_v4 = vpop.permute.xlu1 %139   ;;  %367 = vst.msk [vmem:[%s761_s1 + $0x70] sm:$0xff] %vm120_vm2, %v239_v5  }
  0x79   :  { %340 = vst.msk [vmem:[%s761_s1 + $0x40] sm:$0xff] %vm120_vm2, %v140_v4  }
  0x7e   :  { %v129_v6 = vpop.permute.xlu0 %128   ;;  %v272_v8 = vpop.permute.xlu2 %271  }
  0x7f   :  { %337 = vst.msk [vmem:[%s761_s1 + $0x20] sm:$0xff] %vm120_vm2, %v129_v6  }
  0x80   :  { %v151_v7 = vpop.permute.xlu1 %150   ;;  %376 = vst.msk [vmem:[%s761_s1 + $0x58] sm:$0xff] %vm120_vm2, %v272_v8  }
  0x81   :  { %343 = vst.msk [vmem:[%s761_s1 + $0x60] sm:$0xff] %vm120_vm2, %v151_v7  }
  0x86   :  { %v184_v9 = vpop.permute.xlu0 %183  }
  0x87   :  { %352 = vst.msk [vmem:[%s761_s1 + $0x48] sm:$0xff] %vm120_vm2, %v184_v9  }
  0x88   :  { %v195_v10 = vpop.permute.xlu1 %194  }
  0x89   :  { %355 = vst.msk [vmem:[%s761_s1 + $0x68] sm:$0xff] %vm120_vm2, %v195_v10  }
  0x8e   :  { %v217_v11 = vpop.permute.xlu0 %216  }
  0x8f   :  { %361 = vst.msk [vmem:[%s761_s1 + $0x30] sm:$0xff] %vm120_vm2, %v217_v11  }
  0x90   :  { %v228_v12 = vpop.permute.xlu1 %227  }
  0x91   :  { %364 = vst.msk [vmem:[%s761_s1 + $0x50] sm:$0xff] %vm120_vm2, %v228_v12  }
  0x96   :  { %v250_v13 = vpop.permute.xlu0 %249  }
  0x97   :  { %370 = vst.msk [vmem:[%s761_s1 + $0x18] sm:$0xff] %vm120_vm2, %v250_v13  }
  0x98   :  { %v261_v14 = vpop.permute.xlu1 %260  }
  0x99   :  { %373 = vst.msk [vmem:[%s761_s1 + $0x38] sm:$0xff] %vm120_vm2, %v261_v14  }
  0x9e   :  { %v283_v15 = vpop.permute.xlu0 %282  }
  0x9f   :  { %379 = vst.msk [vmem:[%s761_s1 + $0x78] sm:$0xff] %vm120_vm2, %v283_v15  }

// kernel: tile.18
= control target key start
LH: loop header
LB: loop body
LE: loop exit
PB: predicated region body
PF: predicated region fallthrough
CT: control target
= control target key end

     0   :  { %s22_s0 = inlined_call_operand.vmem [shape: f32[64], index: 0, kind: input, shape index: {}]   ;;  %s23_s1 = inlined_call_operand.vmem [shape: f32[8,64], index: 1, kind: output, shape index: {}]  }
   0x1   :  { %v4_v0 = vld [vmem:[%s22_s0] ss:$0 sm:$0xff] }
   0x2   :  { %5 = vst [vmem:[%s23_s1] sm:$0xff] %v4_v0 }

// kernel: tile.19
= control target key start
LH: loop header
LB: loop body
LE: loop exit
PB: predicated region body
PF: predicated region fallthrough
CT: control target
= control target key end

     0   :  { %vm3_vm0 = vcmask 523264   ;;  %s40_s8 = smov 64   ;;  %vm9_vm1 = vcmask 1048064   ;;  %s69_s0 = inlined_call_operand.vmem [shape: f32[8,64], index: 0, kind: input, shape index: {}]   ;;  %s70_s1 = inlined_call_operand.vmem [shape: f32[1,512], index: 1, kind: output, shape index: {}]  }
   0x1   :  { %v35_v0 = vld [vmem:[%s69_s0 + $0x1] ss:$2 sm:$0xf]   ;;  %v2_v1 = vld [vmem:[%s69_s0] ss:$2 sm:$0xf]  }
   0x2   :  { %7 = vrot.lane.b32.xlu0 %v35_v0, %s40_s8  ;;  %4 = vst.msk [vmem:[#allocation0] ss:$8 sm:$0xf] %vm3_vm0, %v2_v1  }
  0x74   :  { %v8_v2 = vpop.permute.xlu0 %7  }
  0x75   :  { %10 = vst.msk [vmem:[#allocation0] ss:$8 sm:$0xf] %vm9_vm1, %v8_v2  }
  0x7c   :  { %v13_v3 = vld [vmem:[#allocation0] sm:$0x1]  ;;  %v18_v4 = vld [vmem:[#allocation0 + $0x8] sm:$0x1]  ;;  %v24_v5 = vld [vmem:[#allocation0 + $0x10] sm:$0x1] }
  0x7d   :  { %16 = vst [vmem:[%s70_s1] sm:$0x1] %v13_v3  ;;  %v30_v6 = vld [vmem:[#allocation0 + $0x18] sm:$0x1] }
  0x7e   :  { %36 = vst [vmem:[%s70_s1 + $0x1] sm:$0x1] %v18_v4 }
  0x7f   :  { %37 = vst [vmem:[%s70_s1 + $0x2] sm:$0x1] %v24_v5 }
  0x80   :  { %38 = vst [vmem:[%s70_s1 + $0x3] sm:$0x1] %v30_v6 }

// kernel: rnn_forward.1
= control target key start
LH: loop header
LB: loop body
LE: loop exit
PB: predicated region body
PF: predicated region fallthrough
CT: control target
= control target key end

     0   :  { %vm337_vm0 = vcmask 523264   ;;  %vm1113_vm5 = vcmask 261120   ;;  %vm1085_vm6 = vcmask 254976   ;;  %s4839_s0 = inlined_call_operand.vmem [shape: f32[576,512], index: 0, kind: input, shape index: {}]   ;;  %s4840_s1 = inlined_call_operand.vmem [shape: f32[8,576], index: 1, kind: input, shape index: {}]   ;;  %s4841_s2 = inlined_call_operand.vmem [shape: f32[8,1], index: 2, kind: input, shape index: {}]   ;;  %s4842_s4 = inlined_call_operand.vmem [shape: f32[64,128], index: 4, kind: input, shape index: {}]   ;;  %s4843_s3 = inlined_call_operand.vmem [shape: f32[8,64], index: 3, kind: input, shape index: {}]   ;;  %s4844_s5 = inlined_call_operand.vmem [shape: f32[1,128], index: 5, kind: input, shape index: {}]   ;;  %s4845_s7 = inlined_call_operand.vmem [shape: f32[32,512], index: 7, kind: input, shape index: {}]   ;;  %s4846_s6 = inlined_call_operand.vmem [shape: f32[544,128], index: 6, kind: input, shape index: {}]   ;;  %s4847_s8 = inlined_call_operand.vmem [shape: f32[1,512], index: 8, kind: input, shape index: {}]   ;;  %s4848_s10 = inlined_call_operand.vmem [shape: f32[1,128], index: 10, kind: input, shape index: {}]   ;;  %s4849_s9 = inlined_call_operand.vmem [shape: f32[32,128], index: 9, kind: input, shape index: {}]   ;;  %s4850_s11 = inlined_call_operand.vmem [shape: f32[8,128], index: 11, kind: output, shape index: {}]  }
   0x1   :  { %v103_v0 = vld [vmem:[%s4839_s0 + $0x1e0] sm:$0xff]  ;;  %v168_v63 = vld [vmem:[%s4839_s0 + $0x3e8] sm:$0xff] }
   0x2   :  { %v231_v1 = vld [vmem:[%s4839_s0 + $0x5e0] sm:$0xff]  ;;  %341 = vmatpush.msra.mxu0 %v103_v0 }
   0x3   :  { %v99_v2 = vld [vmem:[%s4839_s0 + $0x1c0] sm:$0xff]  ;;  %381 = vmatpush.msra.mxu2 %v231_v1 }
   0x4   :  { %v167_v3 = vld [vmem:[%s4839_s0 + $0x3e0] sm:$0xff]  ;;  %342 = vmatpush.msra.mxu0 %v99_v2 }
   0x5   :  { %v227_v4 = vld [vmem:[%s4839_s0 + $0x5c0] sm:$0xff]  ;;  %361 = vmatpush.msra.mxu1 %v167_v3  ;;  %v104_v3 = vld [vmem:[%s4839_s0 + $0x1e8] sm:$0xff] }
   0x6   :  { %v295_v5 = vld [vmem:[%s4839_s0 + $0x7e0] sm:$0xff]  ;;  %382 = vmatpush.msra.mxu2 %v227_v4  ;;  %v164_v4 = vld [vmem:[%s4839_s0 + $0x3c8] sm:$0xff] }
   0x7   :  { %401 = vmatpush.msra.mxu3 %v295_v5  ;;  %v95_v6 = vld [vmem:[%s4839_s0 + $0x1a0] sm:$0xff]  ;;  %v232_v5 = vld [vmem:[%s4839_s0 + $0x5e8] sm:$0xff] }
   0x8   :  { %v163_v7 = vld [vmem:[%s4839_s0 + $0x3c0] sm:$0xff]  ;;  %343 = vmatpush.msra.mxu0 %v95_v6 }
   0x9   :  { %v223_v8 = vld [vmem:[%s4839_s0 + $0x5a0] sm:$0xff]  ;;  %362 = vmatpush.msra.mxu1 %v163_v7  ;;  %v100_v7 = vld [vmem:[%s4839_s0 + $0x1c8] sm:$0xff] }
   0xa   :  { %v291_v9 = vld [vmem:[%s4839_s0 + $0x7c0] sm:$0xff]  ;;  %383 = vmatpush.msra.mxu2 %v223_v8  ;;  %v160_v8 = vld [vmem:[%s4839_s0 + $0x3a8] sm:$0xff] }
   0xb   :  { %v159_v10 = vld [vmem:[%s4839_s0 + $0x3a0] sm:$0xff]  ;;  %402 = vmatpush.msra.mxu3 %v291_v9  ;;  %v228_v9 = vld [vmem:[%s4839_s0 + $0x5c8] sm:$0xff] }
   0xc   :  { %v91_v11 = vld [vmem:[%s4839_s0 + $0x180] sm:$0xff]  ;;  %363 = vmatpush.msra.mxu1 %v159_v10  ;;  %v2846_v10 = vld [vmem:[%s4840_s1 + $0x10] sm:$0xff] }
   0xd   :  { %v219_v12 = vld [vmem:[%s4839_s0 + $0x580] sm:$0xff]  ;;  %344 = vmatpush.msra.mxu0 %v91_v11 }
   0xe   :  { %v287_v13 = vld [vmem:[%s4839_s0 + $0x7a0] sm:$0xff]  ;;  %384 = vmatpush.msra.mxu2 %v219_v12  ;;  %v96_v12 = vld [vmem:[%s4839_s0 + $0x1a8] sm:$0xff] }
   0xf   :  { %v155_v14 = vld [vmem:[%s4839_s0 + $0x380] sm:$0xff]  ;;  %403 = vmatpush.msra.mxu3 %v287_v13  ;;  %v156_v13 = vld [vmem:[%s4839_s0 + $0x388] sm:$0xff] }
  0x10   :  { %v283_v15 = vld [vmem:[%s4839_s0 + $0x780] sm:$0xff]  ;;  %364 = vmatpush.msra.mxu1 %v155_v14  ;;  %v224_v14 = vld [vmem:[%s4839_s0 + $0x5a8] sm:$0xff] }
  0x11   :  { %v87_v16 = vld [vmem:[%s4839_s0 + $0x160] sm:$0xff]  ;;  %404 = vmatpush.msra.mxu3 %v283_v15 }
  0x12   :  { %v215_v17 = vld [vmem:[%s4839_s0 + $0x560] sm:$0xff]  ;;  %345 = vmatpush.msra.mxu0 %v87_v16  ;;  %v2869_v16 = vld [vmem:[%s4840_s1 + $0x18] sm:$0xff] }
  0x13   :  { %v151_v18 = vld [vmem:[%s4839_s0 + $0x360] sm:$0xff]  ;;  %385 = vmatpush.msra.mxu2 %v215_v17 }
  0x14   :  { %v279_v19 = vld [vmem:[%s4839_s0 + $0x760] sm:$0xff]  ;;  %365 = vmatpush.msra.mxu1 %v151_v18  ;;  %v92_v18 = vld [vmem:[%s4839_s0 + $0x188] sm:$0xff] }
  0x15   :  { %v83_v20 = vld [vmem:[%s4839_s0 + $0x140] sm:$0xff]  ;;  %405 = vmatpush.msra.mxu3 %v279_v19  ;;  %v152_v19 = vld [vmem:[%s4839_s0 + $0x368] sm:$0xff] }
  0x16   :  { %v211_v21 = vld [vmem:[%s4839_s0 + $0x540] sm:$0xff]  ;;  %346 = vmatpush.msra.mxu0 %v83_v20  ;;  %v220_v20 = vld [vmem:[%s4839_s0 + $0x588] sm:$0xff] }
  0x17   :  { %v147_v22 = vld [vmem:[%s4839_s0 + $0x340] sm:$0xff]  ;;  %386 = vmatpush.msra.mxu2 %v211_v21  ;;  %v2887_v21 = vld [vmem:[%s4840_s1 + $0x8] sm:$0xff] }
  0x18   :  { %v275_v23 = vld [vmem:[%s4839_s0 + $0x740] sm:$0xff]  ;;  %366 = vmatpush.msra.mxu1 %v147_v22 }
  0x19   :  { %v79_v24 = vld [vmem:[%s4839_s0 + $0x120] sm:$0xff]  ;;  %406 = vmatpush.msra.mxu3 %v275_v23  ;;  %v88_v23 = vld [vmem:[%s4839_s0 + $0x168] sm:$0xff] }
  0x1a   :  { %v207_v25 = vld [vmem:[%s4839_s0 + $0x520] sm:$0xff]  ;;  %347 = vmatpush.msra.mxu0 %v79_v24  ;;  %v148_v24 = vld [vmem:[%s4839_s0 + $0x348] sm:$0xff] }
  0x1b   :  { %v143_v26 = vld [vmem:[%s4839_s0 + $0x320] sm:$0xff]  ;;  %387 = vmatpush.msra.mxu2 %v207_v25  ;;  %v216_v25 = vld [vmem:[%s4839_s0 + $0x568] sm:$0xff] }
  0x1c   :  { %v271_v27 = vld [vmem:[%s4839_s0 + $0x720] sm:$0xff]  ;;  %367 = vmatpush.msra.mxu1 %v143_v26 }
  0x1d   :  { %v75_v28 = vld [vmem:[%s4839_s0 + $0x100] sm:$0xff]  ;;  %407 = vmatpush.msra.mxu3 %v271_v27  ;;  %v84_v27 = vld [vmem:[%s4839_s0 + $0x148] sm:$0xff] }
  0x1e   :  { %v203_v29 = vld [vmem:[%s4839_s0 + $0x500] sm:$0xff]  ;;  %348 = vmatpush.msra.mxu0 %v75_v28  ;;  %v144_v28 = vld [vmem:[%s4839_s0 + $0x328] sm:$0xff] }
  0x1f   :  { %v139_v30 = vld [vmem:[%s4839_s0 + $0x300] sm:$0xff]  ;;  %388 = vmatpush.msra.mxu2 %v203_v29  ;;  %v212_v29 = vld [vmem:[%s4839_s0 + $0x548] sm:$0xff] }
  0x20   :  { %v267_v31 = vld [vmem:[%s4839_s0 + $0x700] sm:$0xff]  ;;  %368 = vmatpush.msra.mxu1 %v139_v30 }
  0x21   :  { %v71_v32 = vld [vmem:[%s4839_s0 + $0xe0] sm:$0xff]  ;;  %408 = vmatpush.msra.mxu3 %v267_v31  ;;  %v80_v31 = vld [vmem:[%s4839_s0 + $0x128] sm:$0xff] }
  0x22   :  { %v199_v33 = vld [vmem:[%s4839_s0 + $0x4e0] sm:$0xff]  ;;  %349 = vmatpush.msra.mxu0 %v71_v32  ;;  %v140_v32 = vld [vmem:[%s4839_s0 + $0x308] sm:$0xff] }
  0x23   :  { %v135_v34 = vld [vmem:[%s4839_s0 + $0x2e0] sm:$0xff]  ;;  %389 = vmatpush.msra.mxu2 %v199_v33  ;;  %v208_v33 = vld [vmem:[%s4839_s0 + $0x528] sm:$0xff] }
  0x24   :  { %v263_v35 = vld [vmem:[%s4839_s0 + $0x6e0] sm:$0xff]  ;;  %369 = vmatpush.msra.mxu1 %v135_v34 }
  0x25   :  { %v67_v36 = vld [vmem:[%s4839_s0 + $0xc0] sm:$0xff]  ;;  %409 = vmatpush.msra.mxu3 %v263_v35  ;;  %v76_v35 = vld [vmem:[%s4839_s0 + $0x108] sm:$0xff] }
  0x26   :  { %v195_v37 = vld [vmem:[%s4839_s0 + $0x4c0] sm:$0xff]  ;;  %350 = vmatpush.msra.mxu0 %v67_v36  ;;  %v296_v36 = vld [vmem:[%s4839_s0 + $0x7e8] sm:$0xff] }
  0x27   :  { %v131_v38 = vld [vmem:[%s4839_s0 + $0x2c0] sm:$0xff]  ;;  %390 = vmatpush.msra.mxu2 %v195_v37  ;;  %v136_v37 = vld [vmem:[%s4839_s0 + $0x2e8] sm:$0xff] }
  0x28   :  { %v259_v39 = vld [vmem:[%s4839_s0 + $0x6c0] sm:$0xff]  ;;  %370 = vmatpush.msra.mxu1 %v131_v38  ;;  %v204_v38 = vld [vmem:[%s4839_s0 + $0x508] sm:$0xff] }
  0x29   :  { %v63_v40 = vld [vmem:[%s4839_s0 + $0xa0] sm:$0xff]  ;;  %410 = vmatpush.msra.mxu3 %v259_v39  ;;  %v72_v39 = vld [vmem:[%s4839_s0 + $0xe8] sm:$0xff] }
  0x2a   :  { %v191_v41 = vld [vmem:[%s4839_s0 + $0x4a0] sm:$0xff]  ;;  %351 = vmatpush.msra.mxu0 %v63_v40  ;;  %v292_v40 = vld [vmem:[%s4839_s0 + $0x7c8] sm:$0xff] }
  0x2b   :  { %v127_v42 = vld [vmem:[%s4839_s0 + $0x2a0] sm:$0xff]  ;;  %391 = vmatpush.msra.mxu2 %v191_v41  ;;  %v132_v41 = vld [vmem:[%s4839_s0 + $0x2c8] sm:$0xff] }
  0x2c   :  { %v255_v43 = vld [vmem:[%s4839_s0 + $0x6a0] sm:$0xff]  ;;  %371 = vmatpush.msra.mxu1 %v127_v42  ;;  %v200_v42 = vld [vmem:[%s4839_s0 + $0x4e8] sm:$0xff] }
  0x2d   :  { %v59_v44 = vld [vmem:[%s4839_s0 + $0x80] sm:$0xff]  ;;  %411 = vmatpush.msra.mxu3 %v255_v43  ;;  %v68_v43 = vld [vmem:[%s4839_s0 + $0xc8] sm:$0xff] }
  0x2e   :  { %v187_v45 = vld [vmem:[%s4839_s0 + $0x480] sm:$0xff]  ;;  %352 = vmatpush.msra.mxu0 %v59_v44  ;;  %v288_v44 = vld [vmem:[%s4839_s0 + $0x7a8] sm:$0xff] }
  0x2f   :  { %v123_v46 = vld [vmem:[%s4839_s0 + $0x280] sm:$0xff]  ;;  %392 = vmatpush.msra.mxu2 %v187_v45  ;;  %v128_v45 = vld [vmem:[%s4839_s0 + $0x2a8] sm:$0xff] }
  0x30   :  { %v251_v47 = vld [vmem:[%s4839_s0 + $0x680] sm:$0xff]  ;;  %372 = vmatpush.msra.mxu1 %v123_v46  ;;  %v196_v46 = vld [vmem:[%s4839_s0 + $0x4c8] sm:$0xff] }
  0x31   :  { %v55_v48 = vld [vmem:[%s4839_s0 + $0x60] sm:$0xff]  ;;  %412 = vmatpush.msra.mxu3 %v251_v47  ;;  %v64_v47 = vld [vmem:[%s4839_s0 + $0xa8] sm:$0xff] }
  0x32   :  { %v183_v49 = vld [vmem:[%s4839_s0 + $0x460] sm:$0xff]  ;;  %353 = vmatpush.msra.mxu0 %v55_v48  ;;  %v284_v48 = vld [vmem:[%s4839_s0 + $0x788] sm:$0xff] }
  0x33   :  { %v119_v50 = vld [vmem:[%s4839_s0 + $0x260] sm:$0xff]  ;;  %393 = vmatpush.msra.mxu2 %v183_v49  ;;  %v124_v49 = vld [vmem:[%s4839_s0 + $0x288] sm:$0xff] }
  0x34   :  { %v247_v51 = vld [vmem:[%s4839_s0 + $0x660] sm:$0xff]  ;;  %373 = vmatpush.msra.mxu1 %v119_v50  ;;  %v192_v50 = vld [vmem:[%s4839_s0 + $0x4a8] sm:$0xff] }
  0x35   :  { %v51_v52 = vld [vmem:[%s4839_s0 + $0x40] sm:$0xff]  ;;  %413 = vmatpush.msra.mxu3 %v247_v51  ;;  %v60_v51 = vld [vmem:[%s4839_s0 + $0x88] sm:$0xff] }
  0x36   :  { %v179_v53 = vld [vmem:[%s4839_s0 + $0x440] sm:$0xff]  ;;  %354 = vmatpush.msra.mxu0 %v51_v52  ;;  %v280_v52 = vld [vmem:[%s4839_s0 + $0x768] sm:$0xff] }
  0x37   :  { %v115_v54 = vld [vmem:[%s4839_s0 + $0x240] sm:$0xff]  ;;  %394 = vmatpush.msra.mxu2 %v179_v53  ;;  %v120_v53 = vld [vmem:[%s4839_s0 + $0x268] sm:$0xff] }
  0x38   :  { %v243_v55 = vld [vmem:[%s4839_s0 + $0x640] sm:$0xff]  ;;  %374 = vmatpush.msra.mxu1 %v115_v54  ;;  %v188_v54 = vld [vmem:[%s4839_s0 + $0x488] sm:$0xff] }
  0x39   :  { %v47_v56 = vld [vmem:[%s4839_s0 + $0x20] sm:$0xff]  ;;  %414 = vmatpush.msra.mxu3 %v243_v55  ;;  %v56_v55 = vld [vmem:[%s4839_s0 + $0x68] sm:$0xff] }
  0x3a   :  { %v175_v57 = vld [vmem:[%s4839_s0 + $0x420] sm:$0xff]  ;;  %355 = vmatpush.msra.mxu0 %v47_v56  ;;  %v276_v56 = vld [vmem:[%s4839_s0 + $0x748] sm:$0xff] }
  0x3b   :  { %v111_v58 = vld [vmem:[%s4839_s0 + $0x220] sm:$0xff]  ;;  %395 = vmatpush.msra.mxu2 %v175_v57  ;;  %v116_v57 = vld [vmem:[%s4839_s0 + $0x248] sm:$0xff] }
  0x3c   :  { %v239_v59 = vld [vmem:[%s4839_s0 + $0x620] sm:$0xff]  ;;  %375 = vmatpush.msra.mxu1 %v111_v58  ;;  %v184_v58 = vld [vmem:[%s4839_s0 + $0x468] sm:$0xff] }
  0x3d   :  { %v43_v60 = vld [vmem:[%s4839_s0] sm:$0xff]  ;;  %415 = vmatpush.msra.mxu3 %v239_v59  ;;  %v52_v59 = vld [vmem:[%s4839_s0 + $0x48] sm:$0xff] }
  0x3e   :  { %v171_v61 = vld [vmem:[%s4839_s0 + $0x400] sm:$0xff]  ;;  %356 = vmatpush.msra.mxu0 %v43_v60  ;;  %v272_v60 = vld [vmem:[%s4839_s0 + $0x728] sm:$0xff] }
  0x3f   :  { %v327_v62 = vld [vmem:[%s4839_s0 + $0x8e0] sm:$0xff]  ;;  %396 = vmatpush.msra.mxu2 %v171_v61  ;;  %v112_v61 = vld [vmem:[%s4839_s0 + $0x228] sm:$0xff] }
  0x40   :  { %v107_v0 = vld [vmem:[%s4839_s0 + $0x200] sm:$0xff]  ;;  %429 = vmatpush.msrb.mxu0 %v327_v62  ;;  %397 = vmatmul.f32.vlgmr.msra.gmra.mxu2 %v2846_v10  ;;  %v180_v62 = vld [vmem:[%s4839_s0 + $0x448] sm:$0xff] }
  0x41   :  { %v235_v1 = vld [vmem:[%s4839_s0 + $0x600] sm:$0xff]  ;;  %461 = vmatpush.msrb.mxu2 %v168_v63  ;;  %376 = vmatpush.msra.mxu1 %v107_v0  ;;  %v48_v63 = vld [vmem:[%s4839_s0 + $0x28] sm:$0xff] }
  0x42   :  { %v323_v2 = vld [vmem:[%s4839_s0 + $0x8c0] sm:$0xff]  ;;  %416 = vmatpush.msra.mxu3 %v235_v1  ;;  %377 = vmatmul.f32.vlgmr.msra.gmra.mxu1 %v2887_v21  ;;  %v268_v0 = vld [vmem:[%s4839_s0 + $0x708] sm:$0xff] }
  0x43   :  { %v319_v6 = vld [vmem:[%s4839_s0 + $0x8a0] sm:$0xff]  ;;  %430 = vmatpush.msrb.mxu0 %v323_v2  ;;  %441 = vmatpush.msrb.mxu1 %v104_v3  ;;  %v108_v1 = vld [vmem:[%s4839_s0 + $0x208] sm:$0xff]  ;;  %v105_v3 = vld [vmem:[%s4839_s0 + $0x1f0] sm:$0xff] }
  0x44   :  { %462 = vmatpush.msrb.mxu2 %v164_v4  ;;  %481 = vmatpush.msrb.mxu3 %v232_v5  ;;  %v315_v11 = vld [vmem:[%s4839_s0 + $0x880] sm:$0xff]  ;;  %v176_v2 = vld [vmem:[%s4839_s0 + $0x428] sm:$0xff] }
  0x45   :  { %431 = vmatpush.msrb.mxu0 %v319_v6  ;;  %442 = vmatpush.msrb.mxu1 %v100_v7  ;;  %v2863_v15 = vld [vmem:[%s4840_s1] sm:$0xff]  ;;  %v264_v4 = vld [vmem:[%s4839_s0 + $0x6e8] sm:$0xff] }
  0x46   :  { %463 = vmatpush.msrb.mxu2 %v160_v8  ;;  %482 = vmatpush.msrb.mxu3 %v228_v9  ;;  %v311_v17 = vld [vmem:[%s4839_s0 + $0x860] sm:$0xff]  ;;  %v44_v5 = vld [vmem:[%s4839_s0 + $0x8] sm:$0xff]  ;;  %v101_v9 = vld [vmem:[%s4839_s0 + $0x1d0] sm:$0xff] }
  0x47   :  { %432 = vmatpush.msrb.mxu0 %v315_v11  ;;  %443 = vmatpush.msrb.mxu1 %v96_v12  ;;  %v307_v22 = vld [vmem:[%s4839_s0 + $0x840] sm:$0xff]  ;;  %v172_v6 = vld [vmem:[%s4839_s0 + $0x408] sm:$0xff]  ;;  %v169_v11 = vld [vmem:[%s4839_s0 + $0x3f0] sm:$0xff] }
  0x48   :  { %464 = vmatpush.msrb.mxu2 %v156_v13  ;;  %483 = vmatpush.msrb.mxu3 %v224_v14  ;;  %v303_v26 = vld [vmem:[%s4839_s0 + $0x820] sm:$0xff]  ;;  %v328_v7 = vld [vmem:[%s4839_s0 + $0x8e8] sm:$0xff]  ;;  %v97_v14 = vld [vmem:[%s4839_s0 + $0x1b0] sm:$0xff] }
  0x49   :  { %357 = vmatmul.f32.vlgmr.msra.gmra.mxu0 %v2863_v15  ;;  %417 = vmatmul.f32.vlgmr.msra.gmra.mxu3 %v2869_v16  ;;  %v299_v30 = vld [vmem:[%s4839_s0 + $0x800] sm:$0xff]  ;;  %v260_v8 = vld [vmem:[%s4839_s0 + $0x6c8] sm:$0xff] }
  0x4a   :  { %433 = vmatpush.msrb.mxu0 %v311_v17  ;;  %444 = vmatpush.msrb.mxu1 %v92_v18  ;;  %v2930_v34 = vld [vmem:[%s4840_s1 + $0x20] sm:$0xff]  ;;  %v324_v12 = vld [vmem:[%s4839_s0 + $0x8c8] sm:$0xff]  ;;  %v165_v17 = vld [vmem:[%s4839_s0 + $0x3d0] sm:$0xff] }
  0x4b   :  { %465 = vmatpush.msrb.mxu2 %v152_v19  ;;  %484 = vmatpush.msrb.mxu3 %v220_v20  ;;  %v256_v13 = vld [vmem:[%s4839_s0 + $0x6a8] sm:$0xff]  ;;  %v93_v20 = vld [vmem:[%s4839_s0 + $0x190] sm:$0xff] }
  0x4c   :  { %434 = vmatpush.msrb.mxu0 %v307_v22  ;;  %445 = vmatpush.msrb.mxu1 %v88_v23  ;;  %v252_v18 = vld [vmem:[%s4839_s0 + $0x688] sm:$0xff]  ;;  %v161_v22 = vld [vmem:[%s4839_s0 + $0x3b0] sm:$0xff] }
  0x4d   :  { %466 = vmatpush.msrb.mxu2 %v148_v24  ;;  %485 = vmatpush.msrb.mxu3 %v216_v25  ;;  %v320_v19 = vld [vmem:[%s4839_s0 + $0x8a8] sm:$0xff]  ;;  %v89_v25 = vld [vmem:[%s4839_s0 + $0x170] sm:$0xff] }
  0x4e   :  { %435 = vmatpush.msrb.mxu0 %v303_v26  ;;  %446 = vmatpush.msrb.mxu1 %v84_v27  ;;  %v248_v23 = vld [vmem:[%s4839_s0 + $0x668] sm:$0xff]  ;;  %v157_v26 = vld [vmem:[%s4839_s0 + $0x390] sm:$0xff] }
  0x4f   :  { %467 = vmatpush.msrb.mxu2 %v144_v28  ;;  %486 = vmatpush.msrb.mxu3 %v212_v29  ;;  %v316_v24 = vld [vmem:[%s4839_s0 + $0x888] sm:$0xff]  ;;  %v85_v29 = vld [vmem:[%s4839_s0 + $0x150] sm:$0xff] }
  0x50   :  { %436 = vmatpush.msrb.mxu0 %v299_v30  ;;  %447 = vmatpush.msrb.mxu1 %v80_v31  ;;  %v244_v27 = vld [vmem:[%s4839_s0 + $0x648] sm:$0xff]  ;;  %v153_v30 = vld [vmem:[%s4839_s0 + $0x370] sm:$0xff]  ;;  %v331_v31 = vld [vmem:[%s4841_s2] sm:$0xff] }
  0x51   :  { %468 = vmatpush.msrb.mxu2 %v140_v32  ;;  %487 = vmatpush.msrb.mxu3 %v208_v33  ;;  %v312_v28 = vld [vmem:[%s4839_s0 + $0x868] sm:$0xff]  ;;  %v2558_v32 = vmov 0  }
  0x52   :  { %2434 = vmatmul.msk.f32.vlgmr.msrb.gmra.mxu0 %vm337_vm0, %v2930_v34  ;;  %448 = vmatpush.msrb.mxu1 %v76_v35  ;;  %v240_v33 = vld [vmem:[%s4839_s0 + $0x628] sm:$0xff] }
  0x53   :  { %501 = vmatpush.msra.mxu0 %v296_v36  ;;  %469 = vmatpush.msrb.mxu2 %v136_v37  ;;  %v308_v35 = vld [vmem:[%s4839_s0 + $0x848] sm:$0xff]  ;;  %v81_v36 = vld [vmem:[%s4839_s0 + $0x130] sm:$0xff] }
  0x54   :  { %488 = vmatpush.msrb.mxu3 %v204_v38  ;;  %449 = vmatpush.msrb.mxu1 %v72_v39  ;;  %v149_v37 = vld [vmem:[%s4839_s0 + $0x350] sm:$0xff]  ;;  %v236_v38 = vld [vmem:[%s4839_s0 + $0x608] sm:$0xff] }
  0x55   :  { %502 = vmatpush.msra.mxu0 %v292_v40  ;;  %470 = vmatpush.msrb.mxu2 %v132_v41  ;;  %v304_v39 = vld [vmem:[%s4839_s0 + $0x828] sm:$0xff]  ;;  %v77_v40 = vld [vmem:[%s4839_s0 + $0x110] sm:$0xff] }
  0x56   :  { %489 = vmatpush.msrb.mxu3 %v200_v42  ;;  %450 = vmatpush.msrb.mxu1 %v68_v43  ;;  %v145_v41 = vld [vmem:[%s4839_s0 + $0x330] sm:$0xff]  ;;  %v300_v42 = vld [vmem:[%s4839_s0 + $0x808] sm:$0xff] }
  0x57   :  { %503 = vmatpush.msra.mxu0 %v288_v44  ;;  %471 = vmatpush.msrb.mxu2 %v128_v45  ;;  %v233_v43 = vld [vmem:[%s4839_s0 + $0x5f0] sm:$0xff] }
  0x58   :  { %490 = vmatpush.msrb.mxu3 %v196_v46  ;;  %451 = vmatpush.msrb.mxu1 %v64_v47  ;;  %v73_v44 = vld [vmem:[%s4839_s0 + $0xf0] sm:$0xff] }
  0x59   :  { %504 = vmatpush.msra.mxu0 %v284_v48  ;;  %472 = vmatpush.msrb.mxu2 %v124_v49  ;;  %v141_v45 = vld [vmem:[%s4839_s0 + $0x310] sm:$0xff] }
  0x5a   :  { %491 = vmatpush.msrb.mxu3 %v192_v50  ;;  %452 = vmatpush.msrb.mxu1 %v60_v51  ;;  %v229_v46 = vld [vmem:[%s4839_s0 + $0x5d0] sm:$0xff] }
  0x5b   :  { %505 = vmatpush.msra.mxu0 %v280_v52  ;;  %473 = vmatpush.msrb.mxu2 %v120_v53  ;;  %v69_v47 = vld [vmem:[%s4839_s0 + $0xd0] sm:$0xff] }
  0x5c   :  { %492 = vmatpush.msrb.mxu3 %v188_v54  ;;  %453 = vmatpush.msrb.mxu1 %v56_v55  ;;  %v137_v48 = vld [vmem:[%s4839_s0 + $0x2f0] sm:$0xff] }
  0x5d   :  { %506 = vmatpush.msra.mxu0 %v276_v56  ;;  %474 = vmatpush.msrb.mxu2 %v116_v57  ;;  %v297_v49 = vld [vmem:[%s4839_s0 + $0x7f0] sm:$0xff] }
  0x5e   :  { %493 = vmatpush.msrb.mxu3 %v184_v58  ;;  %454 = vmatpush.msrb.mxu1 %v52_v59  ;;  %v225_v50 = vld [vmem:[%s4839_s0 + $0x5b0] sm:$0xff] }
  0x5f   :  { %507 = vmatpush.msra.mxu0 %v272_v60  ;;  %475 = vmatpush.msrb.mxu2 %v112_v61  ;;  %v65_v51 = vld [vmem:[%s4839_s0 + $0xb0] sm:$0xff] }
  0x60   :  { %494 = vmatpush.msrb.mxu3 %v180_v62  ;;  %455 = vmatpush.msrb.mxu1 %v48_v63  ;;  %v133_v52 = vld [vmem:[%s4839_s0 + $0x2d0] sm:$0xff] }
  0x61   :  { %508 = vmatpush.msra.mxu0 %v268_v0  ;;  %476 = vmatpush.msrb.mxu2 %v108_v1  ;;  %v293_v53 = vld [vmem:[%s4839_s0 + $0x7d0] sm:$0xff] }
  0x62   :  { %495 = vmatpush.msrb.mxu3 %v176_v2  ;;  %456 = vmatpush.msrb.mxu1 %v44_v5  ;;  %v221_v54 = vld [vmem:[%s4839_s0 + $0x590] sm:$0xff] }
  0x63   :  { %541 = vmatpush.msra.mxu2 %v105_v3  ;;  %509 = vmatpush.msra.mxu0 %v264_v4  ;;  %v61_v55 = vld [vmem:[%s4839_s0 + $0x90] sm:$0xff] }
  0x64   :  { %496 = vmatpush.msrb.mxu3 %v172_v6  ;;  %529 = vmatpush.msra.mxu1 %v328_v7  ;;  %v129_v56 = vld [vmem:[%s4839_s0 + $0x2b0] sm:$0xff] }
  0x65   :  { %510 = vmatpush.msra.mxu0 %v260_v8  ;;  %542 = vmatpush.msra.mxu2 %v101_v9  ;;  %v289_v57 = vld [vmem:[%s4839_s0 + $0x7b0] sm:$0xff] }
  0x66   :  { %561 = vmatpush.msra.mxu3 %v169_v11  ;;  %530 = vmatpush.msra.mxu1 %v324_v12  ;;  %v217_v58 = vld [vmem:[%s4839_s0 + $0x570] sm:$0xff] }
  0x67   :  { %511 = vmatpush.msra.mxu0 %v256_v13  ;;  %543 = vmatpush.msra.mxu2 %v97_v14  ;;  %v57_v59 = vld [vmem:[%s4839_s0 + $0x70] sm:$0xff] }
  0x68   :  { %562 = vmatpush.msra.mxu3 %v165_v17  ;;  %477 = vmatmul.f32.vlgmr.msrb.gmra.mxu2 %v2887_v21  ;;  %v125_v60 = vld [vmem:[%s4839_s0 + $0x290] sm:$0xff] }
  0x69   :  { %512 = vmatpush.msra.mxu0 %v252_v18  ;;  %531 = vmatpush.msra.mxu1 %v320_v19  ;;  %v285_v61 = vld [vmem:[%s4839_s0 + $0x790] sm:$0xff]  ;;  %v106_v19 = vld [vmem:[%s4839_s0 + $0x1f8] sm:$0xff] }
  0x6a   :  { %544 = vmatpush.msra.mxu2 %v93_v20  ;;  %563 = vmatpush.msra.mxu3 %v161_v22  ;;  %v213_v62 = vld [vmem:[%s4839_s0 + $0x550] sm:$0xff] }
  0x6b   :  { %497 = vmatmul.f32.vlgmr.msrb.gmra.mxu3 %v2846_v10  ;;  %513 = vmatpush.msra.mxu0 %v248_v23  ;;  %v53_v63 = vld [vmem:[%s4839_s0 + $0x50] sm:$0xff] }
  0x6c   :  { %532 = vmatpush.msra.mxu1 %v316_v24  ;;  %545 = vmatpush.msra.mxu2 %v89_v25  ;;  %v121_v0 = vld [vmem:[%s4839_s0 + $0x270] sm:$0xff]  ;;  %v102_v24 = vld [vmem:[%s4839_s0 + $0x1d8] sm:$0xff] }
  0x6d   :  { %564 = vmatpush.msra.mxu3 %v157_v26  ;;  %457 = vmatmul.f32.vlgmr.msrb.gmra.mxu1 %v2863_v15  ;;  %v281_v1 = vld [vmem:[%s4839_s0 + $0x770] sm:$0xff] }
  0x6e   :  { %2474 = vset.pattern.permute.xlu2 %v2558_v32  ;;  %514 = vmatpush.msra.mxu0 %v244_v27  ;;  %v209_v2 = vld [vmem:[%s4839_s0 + $0x530] sm:$0xff] }
  0x6f   :  { %533 = vmatpush.msra.mxu1 %v312_v28  ;;  %546 = vmatpush.msra.mxu2 %v85_v29  ;;  %v49_v3 = vld [vmem:[%s4839_s0 + $0x30] sm:$0xff]  ;;  %v98_v28 = vld [vmem:[%s4839_s0 + $0x1b8] sm:$0xff] }
  0x70   :  { %565 = vmatpush.msra.mxu3 %v153_v30  ;;  %334 = vperm.xlu2 %2474, %v331_v31   ;;  %v117_v4 = vld [vmem:[%s4839_s0 + $0x250] sm:$0xff] }
  0x71   :  { %515 = vmatpush.msra.mxu0 %v240_v33  ;;  %534 = vmatpush.msra.mxu1 %v308_v35  ;;  %v277_v5 = vld [vmem:[%s4839_s0 + $0x750] sm:$0xff]  ;;  %v94_v33 = vld [vmem:[%s4839_s0 + $0x198] sm:$0xff] }
  0x72   :  { %547 = vmatpush.msra.mxu2 %v81_v36  ;;  %566 = vmatpush.msra.mxu3 %v149_v37  ;;  %v205_v6 = vld [vmem:[%s4839_s0 + $0x510] sm:$0xff] }
  0x73   :  { %516 = vmatpush.msra.mxu0 %v236_v38  ;;  %535 = vmatpush.msra.mxu1 %v304_v39  ;;  %v45_v7 = vld [vmem:[%s4839_s0 + $0x10] sm:$0xff]  ;;  %v90_v38 = vld [vmem:[%s4839_s0 + $0x178] sm:$0xff] }
  0x74   :  { %548 = vmatpush.msra.mxu2 %v77_v40  ;;  %567 = vmatpush.msra.mxu3 %v145_v41  ;;  %v113_v8 = vld [vmem:[%s4839_s0 + $0x230] sm:$0xff] }
  0x75   :  { %517 = vmatmul.f32.vlgmr.msra.gmra.mxu0 %v2869_v16  ;;  %536 = vmatpush.msra.mxu1 %v300_v42  ;;  %v273_v9 = vld [vmem:[%s4839_s0 + $0x730] sm:$0xff]  ;;  %v86_v42 = vld [vmem:[%s4839_s0 + $0x158] sm:$0xff] }
  0x76   :  { %581 = vmatpush.msrb.mxu0 %v233_v43  ;;  %549 = vmatpush.msra.mxu2 %v73_v44  ;;  %v201_v11 = vld [vmem:[%s4839_s0 + $0x4f0] sm:$0xff] }
  0x77   :  { %568 = vmatpush.msra.mxu3 %v141_v45  ;;  %2435 = vmatmul.msk.f32.vlgmr.msra.gmra.mxu1 %vm337_vm0, %v2930_v34  ;;  %v329_v12 = vld [vmem:[%s4839_s0 + $0x8f0] sm:$0xff] }
  0x78   :  { %582 = vmatpush.msrb.mxu0 %v229_v46  ;;  %550 = vmatpush.msra.mxu2 %v69_v47  ;;  %v109_v13 = vld [vmem:[%s4839_s0 + $0x210] sm:$0xff]  ;;  %v82_v46 = vld [vmem:[%s4839_s0 + $0x138] sm:$0xff] }
  0x79   :  { %569 = vmatpush.msra.mxu3 %v137_v48  ;;  %601 = vmatpush.msrb.mxu1 %v297_v49  ;;  %v269_v14 = vld [vmem:[%s4839_s0 + $0x710] sm:$0xff]  ;;  %v170_v47 = vld [vmem:[%s4839_s0 + $0x3f8] sm:$0xff] }
  0x7a   :  { %583 = vmatpush.msrb.mxu0 %v225_v50  ;;  %551 = vmatpush.msra.mxu2 %v65_v51  ;;  %v197_v17 = vld [vmem:[%s4839_s0 + $0x4d0] sm:$0xff]  ;;  %v298_v48 = vld [vmem:[%s4839_s0 + $0x7f8] sm:$0xff] }
  0x7b   :  { %570 = vmatpush.msra.mxu3 %v133_v52  ;;  %602 = vmatpush.msrb.mxu1 %v293_v53  ;;  %v325_v18 = vld [vmem:[%s4839_s0 + $0x8d0] sm:$0xff]  ;;  %v78_v50 = vld [vmem:[%s4839_s0 + $0x118] sm:$0xff] }
  0x7c   :  { %584 = vmatpush.msrb.mxu0 %v221_v54  ;;  %552 = vmatpush.msra.mxu2 %v61_v55  ;;  %v265_v20 = vld [vmem:[%s4839_s0 + $0x6f0] sm:$0xff]  ;;  %v294_v51 = vld [vmem:[%s4839_s0 + $0x7d8] sm:$0xff] }
  0x7d   :  { %571 = vmatpush.msra.mxu3 %v129_v56  ;;  %603 = vmatpush.msrb.mxu1 %v289_v57  ;;  %v193_v22 = vld [vmem:[%s4839_s0 + $0x4b0] sm:$0xff]  ;;  %v166_v52 = vld [vmem:[%s4839_s0 + $0x3d8] sm:$0xff] }
  0x7e   :  { %585 = vmatpush.msrb.mxu0 %v217_v58  ;;  %553 = vmatpush.msra.mxu2 %v57_v59  ;;  %v321_v23 = vld [vmem:[%s4839_s0 + $0x8b0] sm:$0xff]  ;;  %v74_v54 = vld [vmem:[%s4839_s0 + $0xf8] sm:$0xff] }
  0x7f   :  { %572 = vmatpush.msra.mxu3 %v125_v60  ;;  %604 = vmatpush.msrb.mxu1 %v285_v61  ;;  %v261_v25 = vld [vmem:[%s4839_s0 + $0x6d0] sm:$0xff]  ;;  %v162_v55 = vld [vmem:[%s4839_s0 + $0x3b8] sm:$0xff] }
  0x80   :  { %586 = vmatpush.msrb.mxu0 %v213_v62  ;;  %554 = vmatpush.msra.mxu2 %v53_v63  ;;  %v189_v26 = vld [vmem:[%s4839_s0 + $0x490] sm:$0xff]  ;;  %v234_v56 = vld [vmem:[%s4839_s0 + $0x5f8] sm:$0xff] }
  0x81   :  { %573 = vmatpush.msra.mxu3 %v121_v0  ;;  %605 = vmatpush.msrb.mxu1 %v281_v1  ;;  %v317_v27 = vld [vmem:[%s4839_s0 + $0x890] sm:$0xff]  ;;  %v290_v57 = vld [vmem:[%s4839_s0 + $0x7b8] sm:$0xff] }
  0x82   :  { %587 = vmatpush.msrb.mxu0 %v209_v2  ;;  %555 = vmatpush.msra.mxu2 %v49_v3  ;;  %v185_v29 = vld [vmem:[%s4839_s0 + $0x470] sm:$0xff]  ;;  %v70_v58 = vld [vmem:[%s4839_s0 + $0xd8] sm:$0xff] }
  0x83   :  { %574 = vmatpush.msra.mxu3 %v117_v4  ;;  %606 = vmatpush.msrb.mxu1 %v277_v5  ;;  %v257_v30 = vld [vmem:[%s4839_s0 + $0x6b0] sm:$0xff]  ;;  %v158_v59 = vld [vmem:[%s4839_s0 + $0x398] sm:$0xff] }
  0x84   :  { %588 = vmatpush.msrb.mxu0 %v205_v6  ;;  %556 = vmatpush.msra.mxu2 %v45_v7  ;;  %v313_v31 = vld [vmem:[%s4839_s0 + $0x870] sm:$0xff]  ;;  %v230_v60 = vld [vmem:[%s4839_s0 + $0x5d8] sm:$0xff] }
  0x85   :  { %575 = vmatpush.msra.mxu3 %v113_v8  ;;  %607 = vmatpush.msrb.mxu1 %v273_v9  ;;  %v181_v35 = vld [vmem:[%s4839_s0 + $0x450] sm:$0xff]  ;;  %v286_v61 = vld [vmem:[%s4839_s0 + $0x798] sm:$0xff] }
  0x86   :  { %589 = vmatpush.msrb.mxu0 %v201_v11  ;;  %629 = vmatpush.msrb.mxu2 %v329_v12  ;;  %v253_v36 = vld [vmem:[%s4839_s0 + $0x690] sm:$0xff]  ;;  %v66_v62 = vld [vmem:[%s4839_s0 + $0xb8] sm:$0xff] }
  0x87   :  { %576 = vmatpush.msra.mxu3 %v109_v13  ;;  %608 = vmatpush.msrb.mxu1 %v269_v14  ;;  %v309_v37 = vld [vmem:[%s4839_s0 + $0x850] sm:$0xff]  ;;  %v154_v63 = vld [vmem:[%s4839_s0 + $0x378] sm:$0xff] }
  0x88   :  { %590 = vmatpush.msrb.mxu0 %v197_v17  ;;  %630 = vmatpush.msrb.mxu2 %v325_v18  ;;  %v177_v39 = vld [vmem:[%s4839_s0 + $0x430] sm:$0xff]  ;;  %v226_v0 = vld [vmem:[%s4839_s0 + $0x5b8] sm:$0xff] }
  0x89   :  { %641 = vmatpush.msrb.mxu3 %v106_v19  ;;  %609 = vmatpush.msrb.mxu1 %v265_v20  ;;  %v249_v40 = vld [vmem:[%s4839_s0 + $0x670] sm:$0xff]  ;;  %v282_v1 = vld [vmem:[%s4839_s0 + $0x778] sm:$0xff] }
  0x8a   :  { %591 = vmatpush.msrb.mxu0 %v193_v22  ;;  %631 = vmatpush.msrb.mxu2 %v321_v23  ;;  %v305_v41 = vld [vmem:[%s4839_s0 + $0x830] sm:$0xff]  ;;  %v62_v2 = vld [vmem:[%s4839_s0 + $0x98] sm:$0xff] }
  0x8b   :  { %642 = vmatpush.msrb.mxu3 %v102_v24  ;;  %610 = vmatpush.msrb.mxu1 %v261_v25  ;;  %v173_v43 = vld [vmem:[%s4839_s0 + $0x410] sm:$0xff]  ;;  %v150_v3 = vld [vmem:[%s4839_s0 + $0x358] sm:$0xff] }
  0x8c   :  { %592 = vmatpush.msrb.mxu0 %v189_v26  ;;  %632 = vmatpush.msrb.mxu2 %v317_v27  ;;  %v245_v44 = vld [vmem:[%s4839_s0 + $0x650] sm:$0xff]  ;;  %v222_v4 = vld [vmem:[%s4839_s0 + $0x598] sm:$0xff] }
  0x8d   :  { %643 = vmatpush.msrb.mxu3 %v98_v28  ;;  %557 = vmatmul.f32.vlgmr.msra.gmra.mxu2 %v2863_v15  ;;  %v301_v45 = vld [vmem:[%s4839_s0 + $0x810] sm:$0xff]  ;;  %v278_v5 = vld [vmem:[%s4839_s0 + $0x758] sm:$0xff] }
  0x8e   :  { %593 = vmatpush.msrb.mxu0 %v185_v29  ;;  %611 = vmatpush.msrb.mxu1 %v257_v30  ;;  %v241_v49 = vld [vmem:[%s4839_s0 + $0x630] sm:$0xff]  ;;  %v58_v6 = vld [vmem:[%s4839_s0 + $0x78] sm:$0xff] }
  0x8f   :  { %633 = vmatpush.msrb.mxu2 %v313_v31  ;;  %644 = vmatpush.msrb.mxu3 %v94_v33  ;;  %v237_v53 = vld [vmem:[%s4839_s0 + $0x610] sm:$0xff]  ;;  %v146_v7 = vld [vmem:[%s4839_s0 + $0x338] sm:$0xff] }
  0x90   :  { %577 = vmatmul.f32.vlgmr.msra.gmra.mxu3 %v2887_v21  ;;  %594 = vmatpush.msrb.mxu0 %v181_v35  ;;  %v218_v8 = vld [vmem:[%s4839_s0 + $0x578] sm:$0xff] }
  0x91   :  { %612 = vmatpush.msrb.mxu1 %v253_v36  ;;  %634 = vmatpush.msrb.mxu2 %v309_v37  ;;  %v274_v9 = vld [vmem:[%s4839_s0 + $0x738] sm:$0xff] }
  0x92   :  { %645 = vmatpush.msrb.mxu3 %v90_v38  ;;  %595 = vmatpush.msrb.mxu0 %v177_v39  ;;  %v54_v11 = vld [vmem:[%s4839_s0 + $0x58] sm:$0xff] }
  0x93   :  { %613 = vmatpush.msrb.mxu1 %v249_v40  ;;  %635 = vmatpush.msrb.mxu2 %v305_v41  ;;  %v142_v12 = vld [vmem:[%s4839_s0 + $0x318] sm:$0xff] }
  0x94   :  { %646 = vmatpush.msrb.mxu3 %v86_v42  ;;  %596 = vmatpush.msrb.mxu0 %v173_v43  ;;  %v214_v13 = vld [vmem:[%s4839_s0 + $0x558] sm:$0xff] }
  0x95   :  { %614 = vmatpush.msrb.mxu1 %v245_v44  ;;  %636 = vmatpush.msrb.mxu2 %v301_v45  ;;  %v270_v14 = vld [vmem:[%s4839_s0 + $0x718] sm:$0xff] }
  0x96   :  { %647 = vmatpush.msrb.mxu3 %v82_v46  ;;  %2436 = vmatmul.msk.f32.vlgmr.msrb.gmra.mxu2 %vm337_vm0, %v2930_v34  ;;  %v50_v17 = vld [vmem:[%s4839_s0 + $0x38] sm:$0xff] }
  0x97   :  { %661 = vmatpush.msra.mxu0 %v170_v47  ;;  %701 = vmatpush.msra.mxu2 %v298_v48  ;;  %v138_v18 = vld [vmem:[%s4839_s0 + $0x2f8] sm:$0xff] }
  0x98   :  { %615 = vmatpush.msrb.mxu1 %v241_v49  ;;  %648 = vmatpush.msrb.mxu3 %v78_v50  ;;  %v210_v19 = vld [vmem:[%s4839_s0 + $0x538] sm:$0xff] }
  0x99   :  { %597 = vmatmul.f32.vlgmr.msrb.gmra.mxu0 %v2846_v10  ;;  %702 = vmatpush.msra.mxu2 %v294_v51  ;;  %v266_v20 = vld [vmem:[%s4839_s0 + $0x6f8] sm:$0xff] }
  0x9a   :  { %662 = vmatpush.msra.mxu0 %v166_v52  ;;  %616 = vmatpush.msrb.mxu1 %v237_v53  ;;  %v46_v22 = vld [vmem:[%s4839_s0 + $0x18] sm:$0xff] }
  0x9b   :  { %649 = vmatpush.msrb.mxu3 %v74_v54  ;;  %617 = vmatmul.f32.vlgmr.msrb.gmra.mxu1 %v2869_v16  ;;  %v134_v23 = vld [vmem:[%s4839_s0 + $0x2d8] sm:$0xff] }
  0x9c   :  { %663 = vmatpush.msra.mxu0 %v162_v55  ;;  %681 = vmatpush.msra.mxu1 %v234_v56  ;;  %v206_v24 = vld [vmem:[%s4839_s0 + $0x518] sm:$0xff]  ;;  %v1014_v55 = vld [vmem:[%s4842_s4 + $0x30] sm:$0xff] }
  0x9d   :  { %703 = vmatpush.msra.mxu2 %v290_v57  ;;  %650 = vmatpush.msrb.mxu3 %v70_v58  ;;  %v262_v25 = vld [vmem:[%s4839_s0 + $0x6d8] sm:$0xff]  ;;  %v1013_v57 = vld [vmem:[%s4842_s4 + $0x28] sm:$0xff] }
  0x9e   :  { %664 = vmatpush.msra.mxu0 %v158_v59  ;;  %682 = vmatpush.msra.mxu1 %v230_v60  ;;  %v330_v26 = vld [vmem:[%s4839_s0 + $0x8f8] sm:$0xff]  ;;  %v1009_v58 = vld [vmem:[%s4842_s4 + $0x8] sm:$0xff] }
  0x9f   :  { %704 = vmatpush.msra.mxu2 %v286_v61  ;;  %651 = vmatpush.msrb.mxu3 %v66_v62  ;;  %v130_v27 = vld [vmem:[%s4839_s0 + $0x2b8] sm:$0xff] }
  0xa0   :  { %665 = vmatpush.msra.mxu0 %v154_v63  ;;  %683 = vmatpush.msra.mxu1 %v226_v0  ;;  %v202_v28 = vld [vmem:[%s4839_s0 + $0x4f8] sm:$0xff] }
  0xa1   :  { %705 = vmatpush.msra.mxu2 %v282_v1  ;;  %652 = vmatpush.msrb.mxu3 %v62_v2  ;;  %v258_v29 = vld [vmem:[%s4839_s0 + $0x6b8] sm:$0xff] }
  0xa2   :  { %666 = vmatpush.msra.mxu0 %v150_v3  ;;  %684 = vmatpush.msra.mxu1 %v222_v4  ;;  %v326_v30 = vld [vmem:[%s4839_s0 + $0x8d8] sm:$0xff] }
  0xa3   :  { %706 = vmatpush.msra.mxu2 %v278_v5  ;;  %653 = vmatpush.msrb.mxu3 %v58_v6  ;;  %v126_v31 = vld [vmem:[%s4839_s0 + $0x298] sm:$0xff] }
  0xa4   :  { %667 = vmatpush.msra.mxu0 %v146_v7  ;;  %685 = vmatpush.msra.mxu1 %v218_v8  ;;  %v198_v33 = vld [vmem:[%s4839_s0 + $0x4d8] sm:$0xff] }
  0xa5   :  { %707 = vmatpush.msra.mxu2 %v274_v9  ;;  %654 = vmatpush.msrb.mxu3 %v54_v11  ;;  %v254_v35 = vld [vmem:[%s4839_s0 + $0x698] sm:$0xff] }
  0xa6   :  { %668 = vmatpush.msra.mxu0 %v142_v12  ;;  %686 = vmatpush.msra.mxu1 %v214_v13  ;;  %v322_v36 = vld [vmem:[%s4839_s0 + $0x8b8] sm:$0xff] }
  0xa7   :  { %708 = vmatpush.msra.mxu2 %v270_v14  ;;  %655 = vmatpush.msrb.mxu3 %v50_v17  ;;  %v122_v37 = vld [vmem:[%s4839_s0 + $0x278] sm:$0xff] }
  0xa8   :  { %669 = vmatpush.msra.mxu0 %v138_v18  ;;  %687 = vmatpush.msra.mxu1 %v210_v19  ;;  %v194_v38 = vld [vmem:[%s4839_s0 + $0x4b8] sm:$0xff] }
  0xa9   :  { %709 = vmatpush.msra.mxu2 %v266_v20  ;;  %656 = vmatpush.msrb.mxu3 %v46_v22  ;;  %v250_v39 = vld [vmem:[%s4839_s0 + $0x678] sm:$0xff] }
  0xaa   :  { %670 = vmatpush.msra.mxu0 %v134_v23  ;;  %688 = vmatpush.msra.mxu1 %v206_v24  ;;  %v318_v40 = vld [vmem:[%s4839_s0 + $0x898] sm:$0xff] }
  0xab   :  { %710 = vmatpush.msra.mxu2 %v262_v25  ;;  %729 = vmatpush.msra.mxu3 %v330_v26  ;;  %v118_v41 = vld [vmem:[%s4839_s0 + $0x258] sm:$0xff] }
  0xac   :  { %671 = vmatpush.msra.mxu0 %v130_v27  ;;  %689 = vmatpush.msra.mxu1 %v202_v28  ;;  %v190_v42 = vld [vmem:[%s4839_s0 + $0x498] sm:$0xff] }
  0xad   :  { %711 = vmatpush.msra.mxu2 %v258_v29  ;;  %730 = vmatpush.msra.mxu3 %v326_v30  ;;  %v246_v43 = vld [vmem:[%s4839_s0 + $0x658] sm:$0xff] }
  0xae   :  { %672 = vmatpush.msra.mxu0 %v126_v31  ;;  %690 = vmatpush.msra.mxu1 %v198_v33  ;;  %v314_v44 = vld [vmem:[%s4839_s0 + $0x878] sm:$0xff] }
  0xaf   :  { %712 = vmatpush.msra.mxu2 %v254_v35  ;;  %731 = vmatpush.msra.mxu3 %v322_v36  ;;  %v114_v45 = vld [vmem:[%s4839_s0 + $0x238] sm:$0xff] }
  0xb0   :  { %673 = vmatpush.msra.mxu0 %v122_v37  ;;  %691 = vmatpush.msra.mxu1 %v194_v38  ;;  %v186_v46 = vld [vmem:[%s4839_s0 + $0x478] sm:$0xff] }
  0xb1   :  { %713 = vmatpush.msra.mxu2 %v250_v39  ;;  %732 = vmatpush.msra.mxu3 %v318_v40  ;;  %v242_v47 = vld [vmem:[%s4839_s0 + $0x638] sm:$0xff] }
  0xb2   :  { %657 = vmatmul.f32.vlgmr.msrb.gmra.mxu3 %v2863_v15  ;;  %674 = vmatpush.msra.mxu0 %v118_v41  ;;  %v310_v48 = vld [vmem:[%s4839_s0 + $0x858] sm:$0xff] }
  0xb3   :  { %692 = vmatpush.msra.mxu1 %v190_v42  ;;  %714 = vmatpush.msra.mxu2 %v246_v43  ;;  %v110_v49 = vld [vmem:[%s4839_s0 + $0x218] sm:$0xff] }
  0xb4   :  { %733 = vmatpush.msra.mxu3 %v314_v44  ;;  %675 = vmatpush.msra.mxu0 %v114_v45  ;;  %v182_v15 = vld [vmem:[%s4839_s0 + $0x458] sm:$0xff] }
  0xb5   :  { %v238_v50 = vld [vmem:[%s4839_s0 + $0x618] sm:$0xff]  ;;  %693 = vmatpush.msra.mxu1 %v186_v46  ;;  %715 = vmatpush.msra.mxu2 %v242_v47  ;;  %v2476_v47 = vld [vmem:[%s4844_s5] ss:$0 sm:$0xff]  ;;  %s2560_s5 = smov 32  }
  0xb6   :  { %v306_v51 = vld [vmem:[%s4839_s0 + $0x838] sm:$0xff]  ;;  %734 = vmatpush.msra.mxu3 %v310_v48  ;;  %676 = vmatpush.msra.mxu0 %v110_v49 }
  0xb7   :  { %v1015_v52 = vld [vmem:[%s4842_s4 + $0x38] sm:$0xff]  ;;  %694 = vmatpush.msra.mxu1 %v182_v15  ;;  %716 = vmatpush.msra.mxu2 %v238_v50 }
  0xb8   :  { %v178_v53 = vld [vmem:[%s4839_s0 + $0x438] sm:$0xff]  ;;  %735 = vmatpush.msra.mxu3 %v306_v51  ;;  %717 = vmatmul.f32.vlgmr.msra.gmra.mxu2 %v2869_v16  ;;  %v1012_v16 = vld [vmem:[%s4842_s4 + $0x20] sm:$0xff] }
  0xb9   :  { %v302_v54 = vld [vmem:[%s4839_s0 + $0x818] sm:$0xff]  ;;  %1031 = vmatpush.msrb.mxu0 %v1015_v52  ;;  %695 = vmatpush.msra.mxu1 %v178_v53 }
  0xba   :  { %v174_v56 = vld [vmem:[%s4839_s0 + $0x418] sm:$0xff]  ;;  %736 = vmatpush.msra.mxu3 %v302_v54  ;;  %677 = vmatmul.f32.vlgmr.msra.gmra.mxu0 %v2887_v21 }
  0xbb   :  { %2437 = vmatmul.msk.f32.vlgmr.msra.gmra.mxu3 %vm337_vm0, %v2930_v34  ;;  %1032 = vmatpush.msrb.mxu0 %v1014_v55  ;;  %v1011_v21 = vld [vmem:[%s4842_s4 + $0x18] sm:$0xff]  ;;  %v1010_v34 = vld [vmem:[%s4842_s4 + $0x10] sm:$0xff] }
  0xbc   :  { %696 = vmatpush.msra.mxu1 %v174_v56  ;;  %2475 = vset.pattern.permute.xlu0 %v2558_v32  ;;  %v1007_v32 = vld [vmem:[%s4843_s3] sm:$0xff] }
  0xbd   :  { %697 = vmatmul.f32.vlgmr.msra.gmra.mxu1 %v2846_v10  ;;  %1033 = vmatpush.msrb.mxu0 %v1013_v57  ;;  %v1008_v10 = vld [vmem:[%s4842_s4] sm:$0xff]  ;;  %s2559_s4 = smov 64  }
  0xbf   :  { %1034 = vmatpush.msrb.mxu0 %v1012_v16  ;;  %v378_v61 = vpop.f32.mrf.mxu1 }
  0xc1   :  { %1035 = vmatpush.msrb.mxu0 %v1011_v21 }
  0xc3   :  { %1036 = vmatpush.msrb.mxu0 %v1010_v34  ;;  %v398_v63 = vpop.f32.mrf.mxu2 }
  0xc5   :  { %1037 = vmatpush.msrb.mxu0 %v1009_v58 }
  0xc6   :  { %v358_v59 = vpop.f32.mrf.mxu0 }
  0xc7   :  { %1038 = vmatpush.msrb.mxu0 %v1008_v10 }
  0xc8   :  { %2438 = vmatmul.msk.f32.vlgmr.msrb.gmra.mxu0 %vm337_vm0, %v1007_v32 }
  0xca   :  { %v335_v60 = vpop.permute.xlu2 %334 }
  0xcb   :  { %v359_v62 = vadd.f32 %v358_v59, %v335_v60 }
  0xcc   :  { %v418_v1 = vpop.f32.mrf.mxu3 }
  0xcd   :  { %v379_v0 = vadd.f32 %v378_v61, %v359_v62 }
  0xcf   :  { %v399_v2 = vadd.f32 %v398_v63, %v379_v0  ;;  %v438_v3 = vpop.f32.mrf.mxu0 }
  0xd1   :  { %v419_v4 = vadd.f32 %v418_v1, %v399_v2 }
  0xd3   :  { %v3567_v5 = vadd.f32 %v438_v3, %v419_v4 }
  0xd5   :  { %v744_v6 = vrot.slane %v3567_v5, 1  ;;  %v762_v15 = vrot.slane %v3567_v5, 7  ;;  %v748_v1 = vrot.slane %v3567_v5, 2  ;;  %v756_v4 = vrot.slane %v3567_v5, 5 }
  0xd7   :  { %745 = vrot.lane.b32.xlu2 %v744_v6, %s2559_s4 }
  0xea   :  { %v458_v7 = vpop.f32.mrf.mxu1 }
  0xeb   :  { %v459_v8 = vadd.f32 %v458_v7, %v335_v60  ;;  %v478_v9 = vpop.f32.mrf.mxu2 }
  0xed   :  { %v479_v11 = vadd.f32 %v478_v9, %v459_v8 }
  0xee   :  { %v498_v12 = vpop.f32.mrf.mxu3 }
  0xef   :  { %v499_v13 = vadd.f32 %v498_v12, %v479_v11 }
  0xf2   :  { %v518_v14 = vpop.f32.mrf.mxu0 }
  0xf3   :  { %v519_v17 = vadd.f32 %v518_v14, %v499_v13 }
  0xf4   :  { %v538_v18 = vpop.f32.mrf.mxu1 }
  0xf5   :  { %v3573_v19 = vadd.f32 %v538_v18, %v519_v17 }
  0xf7   :  { %v809_v20 = vrot.slane %v3573_v19, 1  ;;  %v815_v22 = vrot.slane %v3573_v19, 3  ;;  %v819_v51 = vrot.slane %v3573_v19, 4  ;;  %v825_v52 = vrot.slane %v3573_v19, 6 }
  0xf8   :  { %v4858_v7 = vrot.slane %v3573_v19, 5  ;;  %v827_v8 = vrot.slane %v3573_v19, 7 }
  0xf9   :  { %810 = vrot.lane.b32.xlu2 %v809_v20, %s2559_s4 }
 0x101   :  { %816 = vrot.lane.b32.xlu2 %v815_v22, %s2559_s4 }
 0x110   :  { %v558_v23 = vpop.f32.mrf.mxu2 }
 0x111   :  { %v559_v24 = vadd.f32 %v558_v23, %v335_v60 }
 0x113   :  { %v578_v25 = vpop.f32.mrf.mxu3 }
 0x114   :  { %v579_v26 = vadd.f32 %v578_v25, %v559_v24 }
 0x116   :  { %v598_v27 = vpop.f32.mrf.mxu0 }
 0x117   :  { %v599_v28 = vadd.f32 %v598_v27, %v579_v26  ;;  %v750_v26 = vrot.slane %v3567_v5, 3  ;;  %v813_v27 = vrot.slane %v3573_v19, 2 }
 0x118   :  { %v618_v29 = vpop.f32.mrf.mxu1 }
 0x119   :  { %v619_v30 = vadd.f32 %v618_v29, %v599_v28  ;;  %v638_v31 = vpop.f32.mrf.mxu2 }
 0x11b   :  { %v3583_v33 = vadd.f32 %v638_v31, %v619_v30  ;;  %v754_v30 = vrot.slane %v3567_v5, 4  ;;  %v760_v31 = vrot.slane %v3567_v5, 6 }
 0x11d   :  { %909 = vrot.lane.b32.xlu2 %v3583_v33, %s2559_s4  ;;  %v878_v35 = vrot.slane %v3583_v33, 2  ;;  %v874_v2 = vrot.slane %v3583_v33, 1  ;;  %v880_v3 = vrot.slane %v3583_v33, 3  ;;  %v4859_v9 = vrot.slane %v3583_v33, 4 }
 0x11e   :  { %v4855_v11 = vrot.slane %v3583_v33, 6 }
 0x125   :  { %913 = vrot.lane.b32.xlu2 %v878_v35, %s2559_s4 }
 0x135   :  { %v658_v36 = vpop.f32.mrf.mxu3 }
 0x136   :  { %v659_v37 = vadd.f32 %v658_v36, %v335_v60  ;;  %v3700_v36 = vld [vmem:[%s4845_s7 + $0x68] sm:$0xff] }
 0x137   :  { %v678_v38 = vpop.f32.mrf.mxu0  ;;  %1148 = vmatpush.msrb.mxu2 %v3700_v36 }
 0x138   :  { %v679_v39 = vadd.f32 %v678_v38, %v659_v37  ;;  %v3705_v37 = vld [vmem:[%s4845_s7 + $0x60] sm:$0xff]  ;;  %v3710_v38 = vld [vmem:[%s4845_s7 + $0x70] sm:$0xff] }
 0x139   :  { %1128 = vmatpush.msrb.mxu1 %v3705_v37  ;;  %1168 = vmatpush.msrb.mxu3 %v3710_v38 }
 0x13a   :  { %v698_v40 = vpop.f32.mrf.mxu1 }
 0x13b   :  { %v699_v41 = vadd.f32 %v698_v40, %v679_v39  ;;  %v718_v42 = vpop.f32.mrf.mxu2  ;;  %v3717_v39 = vld [vmem:[%s4845_s7 + $0x48] sm:$0xff]  ;;  %v3722_v40 = vld [vmem:[%s4845_s7 + $0x40] sm:$0xff] }
 0x13c   :  { %1149 = vmatpush.msrb.mxu2 %v3717_v39  ;;  %1129 = vmatpush.msrb.mxu1 %v3722_v40 }
 0x13d   :  { %v719_v43 = vadd.f32 %v718_v42, %v699_v41  ;;  %v3727_v41 = vld [vmem:[%s4845_s7 + $0x50] sm:$0xff]  ;;  %v3733_v42 = vld [vmem:[%s4845_s7 + $0x28] sm:$0xff] }
 0x13e   :  { %v738_v44 = vpop.f32.mrf.mxu3  ;;  %1169 = vmatpush.msrb.mxu3 %v3727_v41  ;;  %1150 = vmatpush.msrb.mxu2 %v3733_v42 }
 0x13f   :  { %v3591_v45 = vadd.f32 %v738_v44, %v719_v43  ;;  %v3738_v43 = vld [vmem:[%s4845_s7 + $0x20] sm:$0xff]  ;;  %v3745_v44 = vld [vmem:[%s4845_s7 + $0x30] sm:$0xff] }
 0x140   :  { %1130 = vmatpush.msrb.mxu1 %v3738_v43  ;;  %1170 = vmatpush.msrb.mxu3 %v3745_v44 }
 0x141   :  { %v943_v46 = vrot.slane %v3591_v45, 2  ;;  %v4851_v53 = vrot.slane %v3591_v45, 5  ;;  %v4854_v54 = vrot.slane %v3591_v45, 7  ;;  %v4856_v12 = vrot.slane %v3591_v45, 6 }
 0x142   :  { %v939_v28 = vrot.slane %v3591_v45, 1  ;;  %v945_v29 = vrot.slane %v3591_v45, 3 }
 0x143   :  { %978 = vrot.lane.b32.xlu2 %v943_v46, %s2559_s4 }
 0x145   :  { %v1040_v48 = vpop.f32.mrf.mxu0 }
 0x146   :  { %v3600_v49 = vadd.f32 %v2476_v47, %v1040_v48  ;;  %v3751_v47 = vld [vmem:[%s4845_s7 + $0x8] sm:$0xff]  ;;  %v3756_v48 = vld [vmem:[%s4845_s7] sm:$0xff] }
 0x147   :  { %1151 = vmatpush.msrb.mxu2 %v3751_v47  ;;  %1131 = vmatpush.msrb.mxu1 %v3756_v48 }
 0x148   :  { %4898 = vst [vmem:[#allocation4_spill] sm:$0xff] %v3600_v49  ;;  %2478 = vtanh.f32 %v3600_v49  ;;  %v2439_v55 = vmul.f32 -1.442695, %v3600_v49  ;;  %v4251_v49 = vld [vmem:[%s4846_s6 + $0x128] sm:$0xff] }
 0x149   :  { %4921 = vst [vmem:[#allocation18_spill] sm:$0xff] %v4251_v49 }
 0x14a   :  { %2480 = vpow2.f32 %v2439_v55  ;;  %v4853_v55 = vrot.slane %v3583_v33, 5 }
 0x14b   :  { %763 = vrot.lane.b32.xlu2 %v762_v15, %s2559_s4 }
 0x14e   :  { %v2479_v50 = vpop.eup %2478 }
 0x14f   :  { %1065 = vrot.lane.b32.xlu0 %v2479_v50, %s2559_s4  ;;  %v3763_v50 = vld [vmem:[%s4845_s7 + $0x10] sm:$0xff] }
 0x150   :  { %v2481_v56 = vpop.eup %2480  ;;  %1171 = vmatpush.msrb.mxu3 %v3763_v50 }
 0x151   :  { %v1046_v57 = vadd.f32 1.0, %v2481_v56  ;;  %v4857_v56 = vrot.slane %v3583_v33, 7 }
 0x153   :  { %852 = vrot.lane.b32.xlu2 %v819_v51, %s2559_s4  ;;  %2482 = vrcp.f32 %v1046_v57  ;;  %v1058_v32 = vand.u32 2147483648, %v1046_v57  ;;  %vm1052_vm2 = vweird.f32 %v1046_v57  ;;  %v1056_v59 = vand.u32 2147483647, %v1046_v57 }
 0x155   :  { %v1059_v61 = vor.u32 1.1754944e-38, %v1058_v32  ;;  %vm1057_vm4 = vcmp.eq.f32.partialorder %v1056_v59, 8.507059e+37  ;;  %v3802_v32 = vld [vmem:[%s4845_s7 + $0x18] sm:$0xff]  ;;  %v746_v59 = vpop.permute.xlu2 %745 }
 0x159   :  { %v2483_v16 = vpop.eup %2482 }
 0x15a   :  { %v1048_v21 = vmul.f32 %v2483_v16, %v1046_v57  ;;  %vm1053_vm1 = vweird.f32 %v2483_v16  ;;  %v4852_v57 = vrot.slane %v3591_v45, 4 }
 0x15b   :  { %856 = vrot.lane.b32.xlu2 %v825_v52, %s2559_s4  ;;  %vm1054_vm3 = vmor %vm1052_vm2, %vm1053_vm1 }
 0x15c   :  { %v1049_v34 = vsub.f32 1.0, %v1048_v21  ;;  %v3789_v21 = vld [vmem:[%s4845_s7 + $0x58] sm:$0xff] }
 0x15e   :  { %v1050_v58 = vmul.f32 %v2483_v16, %v1049_v34 }
 0x160   :  { %v1051_v10 = vadd.f32 %v2483_v16, %v1050_v58 }
 0x162   :  { %v1055_v60 = vsel %vm1054_vm3, %v2483_v16, %v1051_v10  ;;  %v3784_v16 = vld [vmem:[%s4845_s7 + $0x78] sm:$0xff] }
 0x163   :  { %952 = vrot.lane.b32.xlu2 %v4851_v53, %s2559_s4  ;;  %v1060_v63 = vsel %vm1057_vm4, %v1059_v61, %v1055_v60  ;;  %1188 = vmatpush.msra.mxu1 %v3784_v16  ;;  %v3795_v10 = vld [vmem:[%s4845_s7 + $0x38] sm:$0xff]  ;;  %v811_v61 = vpop.permute.xlu2 %810 }
 0x164   :  { %v1063_v13 = vmul.f32 0.0, %v1060_v63 }
 0x165   :  { %1189 = vmatpush.msra.mxu1 %v3789_v21 }
 0x167   :  { %1190 = vmatpush.msra.mxu1 %v3795_v10 }
 0x169   :  { %1191 = vmatpush.msra.mxu1 %v3802_v32 }
 0x16b   :  { %958 = vrot.lane.b32.xlu2 %v4854_v54, %s2559_s4 }
 0x1c1   :  { %v1066_v62 = vpop.permute.xlu0 %1065 }
 0x1c2   :  { %v1068_v0 = vmul.f32 %v1066_v62, %v1060_v63 }
 0x1c4   :  { %1070 = vrot.lane.b32.xlu0 %v1068_v0, %s2560_s5 }
 0x1cc   :  { %779 = vrot.lane.b32.xlu0 %v3567_v5, %s2559_s4 }
 0x1d4   :  { %783 = vrot.lane.b32.xlu0 %v748_v1, %s2559_s4 }
 0x1dc   :  { %875 = vrot.lane.b32.xlu0 %v874_v2, %s2559_s4 }
 0x1e4   :  { %881 = vrot.lane.b32.xlu0 %v880_v3, %s2559_s4 }
 0x1ec   :  { %974 = vrot.lane.b32.xlu0 %v3591_v45, %s2559_s4 }
 0x1f4   :  { %757 = vrot.lane.b32.xlu0 %v756_v4, %s2559_s4 }
 0x1fc   :  { %822 = vrot.lane.b32.xlu0 %v4858_v7, %s2559_s4 }
 0x204   :  { %828 = vrot.lane.b32.xlu0 %v827_v8, %s2559_s4 }
 0x20c   :  { %917 = vrot.lane.b32.xlu0 %v4859_v9, %s2559_s4 }
 0x214   :  { %921 = vrot.lane.b32.xlu0 %v4855_v11, %s2559_s4 }
 0x21c   :  { %986 = vrot.lane.b32.xlu0 %v4856_v12, %s2559_s4 }
 0x236   :  { %v1071_v14 = vpop.permute.xlu0 %1070 }
 0x237   :  { %v3666_v17 = vadd.f32 %v1071_v14, %v1063_v13 }
 0x239   :  { %4899 = vst [vmem:[#allocation5_spill] sm:$0xff] %v3666_v17  ;;  %2484 = vtanh.f32 %v3666_v17  ;;  %v4246_v17 = vld [vmem:[%s4846_s6 + $0xa8] sm:$0xff] }
 0x23a   :  { %4920 = vst [vmem:[#allocation17_spill] sm:$0xff] %v4246_v17 }
 0x23e   :  { %v780_v34 = vpop.permute.xlu0 %779 }
 0x23f   :  { %v2485_v18 = vpop.eup %2484 }
 0x240   :  { %1076 = vrot.lane.b32.xlu1 %v2485_v18, %s2559_s4 }
 0x246   :  { %v784_v60 = vpop.permute.xlu0 %783 }
 0x24e   :  { %v876_v62 = vpop.permute.xlu0 %875 }
 0x256   :  { %v882_v13 = vpop.permute.xlu0 %881 }
 0x2b2   :  { %v1077_v23 = vpop.permute.xlu1 %1076 }
 0x2b3   :  { %v1079_v24 = vmul.f32 %v1077_v23, %v1060_v63  ;;  %v817_v63 = vpop.permute.xlu2 %816  ;;  %v975_v23 = vpop.permute.xlu0 %974 }
 0x2b5   :  { %v1080_v25 = vmax.f32 %v1079_v24, 0.0  ;;  %v1293_v58 = vrot.slane %v1079_v24, 6 }
 0x2b7   :  { %1082 = vrot.lane.b32.xlu1 %v1080_v25, %s2560_s5  ;;  %v741_v25 = vlaneseq }
 0x2b9   :  { %v3811_v53 = vshrl.u32 %v741_v25, 7 }
 0x2bb   :  { %v910_v14 = vpop.permute.xlu2 %909  ;;  %vm770_vm7 = vcmp.eq.s32.totalorder %v3811_v53, 0  ;;  %vm799_vm8 = vcmp.eq.s32.totalorder %v3811_v53, 1  ;;  %vm835_vm9 = vcmp.eq.s32.totalorder %v3811_v53, 2  ;;  %vm864_vm10 = vcmp.eq.s32.totalorder %v3811_v53, 3 }
 0x2bc   :  { %vm900_vm11 = vcmp.eq.s32.totalorder %v3811_v53, 4  ;;  %vm929_vm12 = vcmp.eq.s32.totalorder %v3811_v53, 5  ;;  %vm965_vm13 = vcmp.eq.s32.totalorder %v3811_v53, 6  ;;  %vm994_vm14 = vcmp.eq.s32.totalorder %v3811_v53, 7  ;;  %v3995_v53 = vld [vmem:[%s4846_s6 + $0x68] sm:$0xff] }
 0x2bf   :  { %751 = vrot.lane.b32.xlu1 %v750_v26, %s2559_s4 }
 0x2c3   :  { %v914_v24 = vpop.permute.xlu2 %913 }
 0x2c7   :  { %844 = vrot.lane.b32.xlu1 %v3573_v19, %s2559_s4 }
 0x2cb   :  { %v979_v11 = vpop.permute.xlu2 %978 }
 0x2cf   :  { %848 = vrot.lane.b32.xlu1 %v813_v27, %s2559_s4 }
 0x2d7   :  { %940 = vrot.lane.b32.xlu1 %v939_v28, %s2559_s4 }
 0x2df   :  { %946 = vrot.lane.b32.xlu1 %v945_v29, %s2559_s4 }
 0x2e7   :  { %787 = vrot.lane.b32.xlu1 %v754_v30, %s2559_s4 }
 0x2ef   :  { %791 = vrot.lane.b32.xlu1 %v760_v31, %s2559_s4 }
 0x2f7   :  { %887 = vrot.lane.b32.xlu1 %v4853_v55, %s2559_s4  ;;  %v795_v55 = vsel %vm337_vm0, %v780_v34, %v744_v6 }
 0x2f8   :  { %v800_v12 = vperm.slane %v795_v55, 0 }
 0x2ff   :  { %893 = vrot.lane.b32.xlu1 %v4857_v56, %s2559_s4  ;;  %v3819_v56 = vpop.permute.xlu0 %757 }
 0x307   :  { %982 = vrot.lane.b32.xlu1 %v4852_v57, %s2559_s4  ;;  %v766_v57 = vsel %vm337_vm0, %v3567_v5, %v746_v59  ;;  %v831_v59 = vsel %vm337_vm0, %v3573_v19, %v811_v61 }
 0x308   :  { %v771_v54 = vperm.slane %v766_v57, 0  ;;  %v836_v7 = vperm.slane %v831_v59, 0 }
 0x30a   :  { %v775_v57 = vsel %vm770_vm7, %v771_v54, 0.0 }
 0x30b   :  { %v804_v55 = vsel %vm799_vm8, %v800_v12, %v775_v57  ;;  %v925_v12 = vsel %vm337_vm0, %v910_v14, %v874_v2  ;;  %v823_v2 = vpop.permute.xlu0 %822 }
 0x30c   :  { %v840_v54 = vsel %vm835_vm9, %v836_v7, %v804_v55  ;;  %v832_v7 = vsel %vm337_vm0, %v813_v27, %v817_v63  ;;  %v930_v14 = vperm.slane %v925_v12, 0 }
 0x30d   :  { %v837_v63 = vperm.slane %v832_v7, 0 }
 0x30f   :  { %1294 = vrot.lane.b32.xlu1 %v1293_v58, %s2560_s5 }
 0x329   :  { %v1083_v0 = vpop.permute.xlu1 %1082 }
 0x32a   :  { %2440 = vmatmul.msk.f32.vlgmr.msrb.gmra.mxu1 %vm1113_vm5, %v1083_v0  ;;  %2441 = vmatmul.msk.f32.vlgmr.msrb.gmra.mxu2 %vm1113_vm5, %v1083_v0  ;;  %1086 = vst.msk [vmem:[#allocation3] sm:$0x3] %vm1085_vm6, %v1083_v0 }
 0x32b   :  { %2442 = vmatmul.msk.f32.vlgmr.msrb.gmra.mxu3 %vm1113_vm5, %v1083_v0 }
 0x331   :  { %v752_v18 = vpop.permute.xlu1 %751 }
 0x332   :  { %2443 = vmatmul.msk.f32.vlgmr.msra.gmra.mxu1 %vm1113_vm5, %v1083_v0  ;;  %v767_v6 = vsel %vm337_vm0, %v748_v1, %v752_v18  ;;  %v796_v1 = vsel %vm337_vm0, %v784_v60, %v750_v26  ;;  %v764_v18 = vpop.permute.xlu2 %763 }
 0x333   :  { %v772_v9 = vperm.slane %v767_v6, 0  ;;  %v801_v60 = vperm.slane %v796_v1, 0 }
 0x339   :  { %v845_v58 = vpop.permute.xlu1 %844 }
 0x33a   :  { %v860_v0 = vsel %vm337_vm0, %v845_v58, %v809_v20  ;;  %v896_v20 = vsel %vm337_vm0, %v3583_v33, %v876_v62  ;;  %v776_v62 = vsel %vm770_vm7, %v772_v9, 0.0  ;;  %v853_v12 = vpop.permute.xlu2 %852 }
 0x33b   :  { %v865_v25 = vperm.slane %v860_v0, 0  ;;  %v901_v58 = vperm.slane %v896_v20, 0  ;;  %v990_v0 = vsel %vm337_vm0, %v975_v23, %v939_v28  ;;  %v897_v28 = vsel %vm337_vm0, %v878_v35, %v882_v13 }
 0x33c   :  { %v995_v23 = vperm.slane %v990_v0, 0  ;;  %v926_v35 = vsel %vm337_vm0, %v914_v24, %v880_v3  ;;  %v902_v13 = vperm.slane %v897_v28, 0 }
 0x33d   :  { %v869_v61 = vsel %vm864_vm10, %v865_v25, %v840_v54  ;;  %v991_v54 = vsel %vm337_vm0, %v979_v11, %v945_v29 }
 0x33e   :  { %v905_v59 = vsel %vm900_vm11, %v901_v58, %v869_v61 }
 0x341   :  { %v849_v34 = vpop.permute.xlu1 %848 }
 0x342   :  { %v861_v26 = vsel %vm337_vm0, %v849_v34, %v815_v22  ;;  %v805_v22 = vsel %vm799_vm8, %v801_v60, %v776_v62  ;;  %v934_v34 = vsel %vm929_vm12, %v930_v14, %v905_v59  ;;  %v931_v62 = vperm.slane %v926_v35, 0  ;;  %v857_v0 = vpop.permute.xlu2 %856 }
 0x343   :  { %v866_v6 = vperm.slane %v861_v26, 0  ;;  %v841_v55 = vsel %vm835_vm9, %v837_v63, %v805_v22  ;;  %v829_v26 = vpop.permute.xlu0 %828  ;;  %v996_v14 = vperm.slane %v991_v54, 0  ;;  %v863_v5 = vsel %vm337_vm0, %v857_v0, %v827_v8 }
 0x344   :  { %v868_v54 = vperm.slane %v863_v5, 0 }
 0x345   :  { %v870_v20 = vsel %vm864_vm10, %v866_v6, %v841_v55 }
 0x346   :  { %v906_v61 = vsel %vm900_vm11, %v902_v13, %v870_v20 }
 0x347   :  { %v935_v3 = vsel %vm929_vm12, %v931_v62, %v906_v61  ;;  %v4902_v61 = vrot.slane %v3583_v33, 7 }
 0x349   :  { %v941_v9 = vpop.permute.xlu1 %940 }
 0x34a   :  { %v961_v27 = vsel %vm337_vm0, %v3591_v45, %v941_v9  ;;  %v953_v22 = vpop.permute.xlu2 %952 }
 0x34b   :  { %v966_v57 = vperm.slane %v961_v27, 0  ;;  %v918_v59 = vpop.permute.xlu0 %917  ;;  %v768_v27 = vsel %vm337_vm0, %v754_v30, %v3819_v56 }
 0x34d   :  { %v970_v25 = vsel %vm965_vm13, %v966_v57, %v934_v34  ;;  %v773_v34 = vperm.slane %v768_v27, 0 }
 0x34e   :  { %v999_v1 = vsel %vm994_vm14, %v995_v23, %v970_v25 }
 0x34f   :  { %1003 = vst [vmem:[#allocation2 + $0x10] sm:$0xff] %v999_v1  ;;  %v4900_v1 = vrot.slane %v3583_v33, 4 }
 0x351   :  { %v947_v58 = vpop.permute.xlu1 %946 }
 0x352   :  { %v962_v7 = vsel %vm337_vm0, %v943_v46, %v947_v58  ;;  %v769_v46 = vsel %vm337_vm0, %v760_v31, %v764_v18  ;;  %v834_v31 = vsel %vm337_vm0, %v825_v52, %v829_v26  ;;  %v959_v18 = vpop.permute.xlu2 %958 }
 0x353   :  { %v967_v60 = vperm.slane %v962_v7, 0  ;;  %v922_v6 = vpop.permute.xlu0 %921  ;;  %v774_v28 = vperm.slane %v769_v46, 0  ;;  %v839_v20 = vperm.slane %v834_v31, 0  ;;  %v4903_v7 = vrot.slane %v3591_v45, 6 }
 0x354   :  { %v928_v58 = vsel %vm337_vm0, %v922_v6, %v4902_v61  ;;  %v4036_v61 = vld [vmem:[%s4846_s6 + $0x1f8] sm:$0xff] }
 0x355   :  { %v971_v24 = vsel %vm965_vm13, %v967_v60, %v935_v3  ;;  %v778_v30 = vsel %vm770_vm7, %v774_v28, 0.0  ;;  %v964_v60 = vsel %vm337_vm0, %v4903_v7, %v959_v18  ;;  %v933_v6 = vperm.slane %v928_v58, 0  ;;  %1442 = vmatpush.msrb.mxu1 %v4036_v61  ;;  %v4043_v58 = vld [vmem:[%s4846_s6 + $0x50] sm:$0xff] }
 0x356   :  { %v1000_v11 = vsel %vm994_vm14, %v996_v14, %v971_v24  ;;  %v4060_v7 = vld [vmem:[%s4846_s6 + $0x1f0] sm:$0xff] }
 0x357   :  { %1004 = vst [vmem:[#allocation2] sm:$0xff] %v1000_v11  ;;  %v4905_v11 = vrot.slane %v3591_v45, 7  ;;  %1443 = vmatpush.msrb.mxu1 %v4060_v7 }
 0x359   :  { %v788_v29 = vpop.permute.xlu1 %787 }
 0x35a   :  { %v797_v57 = vsel %vm337_vm0, %v788_v29, %v756_v4  ;;  %v777_v4 = vsel %vm770_vm7, %v773_v34, 0.0 }
 0x35b   :  { %v802_v25 = vperm.slane %v797_v57, 0  ;;  %v987_v13 = vpop.permute.xlu0 %986 }
 0x35c   :  { %v993_v29 = vsel %vm337_vm0, %v987_v13, %v4905_v11  ;;  %v4024_v13 = vld [vmem:[%s4846_s6 + $0xf0] sm:$0xff]  ;;  %v4101_v11 = vld [vmem:[%s4846_s6 + $0x158] sm:$0xff] }
 0x35d   :  { %v806_v52 = vsel %vm799_vm8, %v802_v25, %v777_v4 }
 0x361   :  { %v792_v9 = vpop.permute.xlu1 %791 }
 0x362   :  { %v798_v63 = vsel %vm337_vm0, %v792_v9, %v762_v15  ;;  %v833_v15 = vsel %vm337_vm0, %v819_v51, %v823_v2  ;;  %v4901_v51 = vrot.slane %v3573_v19, 5  ;;  %v4906_v9 = vrot.slane %v3583_v33, 5 }
 0x363   :  { %v803_v55 = vperm.slane %v798_v63, 0  ;;  %v838_v8 = vperm.slane %v833_v15, 0  ;;  %v969_v63 = vperm.slane %v964_v60, 0  ;;  %v4067_v60 = vld [vmem:[%s4846_s6 + $0x48] sm:$0xff] }
 0x364   :  { %v862_v2 = vsel %vm337_vm0, %v853_v12, %v4901_v51  ;;  %v4904_v12 = vrot.slane %v3583_v33, 6  ;;  %v927_v46 = vsel %vm337_vm0, %v918_v59, %v4906_v9  ;;  %v4907_v59 = vrot.slane %v3591_v45, 4  ;;  %v4006_v51 = vld [vmem:[%s4846_s6 + $0xf8] sm:$0xff]  ;;  %v4120_v9 = vld [vmem:[%s4846_s6 + $0xd0] sm:$0xff] }
 0x365   :  { %v807_v56 = vsel %vm799_vm8, %v803_v55, %v778_v30  ;;  %v842_v19 = vsel %vm835_vm9, %v838_v8, %v806_v52  ;;  %v867_v24 = vperm.slane %v862_v2, 0  ;;  %v932_v25 = vperm.slane %v927_v46, 0  ;;  %v4011_v2 = vld [vmem:[%s4846_s6 + $0x178] sm:$0xff]  ;;  %1402 = vmatpush.msra.mxu3 %v4006_v51  ;;  %v4125_v46 = vld [vmem:[%s4846_s6 + $0x150] sm:$0xff] }
 0x366   :  { %v843_v62 = vsel %vm835_vm9, %v839_v20, %v807_v56  ;;  %v963_v55 = vsel %vm337_vm0, %v4907_v59, %v953_v22  ;;  %v4908_v56 = vrot.slane %v3591_v45, 5  ;;  %v3989_v45 = vld [vmem:[%s4846_s6 + $0x70] sm:$0xff]  ;;  %1422 = vmatpush.msra.mxu0 %v4011_v2  ;;  %v4019_v8 = vld [vmem:[%s4846_s6 + $0x58] sm:$0xff]  ;;  %v4178_v59 = vld [vmem:[%s4846_s6 + $0x140] sm:$0xff] }
 0x367   :  { %v872_v27 = vsel %vm864_vm10, %v868_v54, %v843_v62  ;;  %v871_v57 = vsel %vm864_vm10, %v867_v24, %v842_v19  ;;  %v968_v4 = vperm.slane %v963_v55, 0  ;;  %v4029_v54 = vld [vmem:[%s4846_s6 + $0x170] sm:$0xff]  ;;  %1403 = vmatpush.msra.mxu3 %v4024_v13  ;;  %v4048_v62 = vld [vmem:[%s4846_s6 + $0xe8] sm:$0xff]  ;;  %v4072_v19 = vld [vmem:[%s4846_s6 + $0xe0] sm:$0xff] }
 0x368   :  { %1423 = vmatpush.msra.mxu0 %v4029_v54  ;;  %v4096_v24 = vld [vmem:[%s4846_s6 + $0xd8] sm:$0xff]  ;;  %v4185_v55 = vld [vmem:[%s4846_s6 + $0x1c8] sm:$0xff] }
 0x369   :  { %v888_v23 = vpop.permute.xlu1 %887  ;;  %1404 = vmatpush.msra.mxu3 %v4048_v62 }
 0x36a   :  { %v898_v35 = vsel %vm337_vm0, %v4900_v1, %v888_v23  ;;  %v998_v23 = vperm.slane %v993_v29, 0  ;;  %v3983_v1 = vld [vmem:[%s4846_s6 + $0x78] sm:$0xff]  ;;  %v4108_v29 = vld [vmem:[%s4846_s6 + $0x1e0] sm:$0xff] }
 0x36b   :  { %v903_v14 = vperm.slane %v898_v35, 0  ;;  %1382 = vmatpush.msra.mxu2 %v3983_v1  ;;  %v4001_v35 = vld [vmem:[%s4846_s6 + $0x60] sm:$0xff]  ;;  %1405 = vmatpush.msra.mxu3 %v4072_v19 }
 0x36d   :  { %v907_v34 = vsel %vm900_vm11, %v903_v14, %v871_v57  ;;  %1383 = vmatpush.msra.mxu2 %v3989_v45  ;;  %v4077_v14 = vld [vmem:[%s4846_s6 + $0x160] sm:$0xff]  ;;  %1406 = vmatpush.msra.mxu3 %v4096_v24  ;;  %v4149_v57 = vld [vmem:[%s4846_s6 + $0x148] sm:$0xff] }
 0x36e   :  { %v936_v15 = vsel %vm929_vm12, %v932_v25, %v907_v34  ;;  %v4168_v34 = vld [vmem:[%s4846_s6 + $0x28] sm:$0xff]  ;;  %v4192_v25 = vld [vmem:[%s4846_s6 + $0x20] sm:$0xff] }
 0x36f   :  { %v972_v22 = vsel %vm965_vm13, %v968_v4, %v936_v15  ;;  %1384 = vmatpush.msra.mxu2 %v3995_v53  ;;  %1407 = vmatpush.msra.mxu3 %v4120_v9  ;;  %4911 = vst [vmem:[#allocation8_spill] sm:$0xff] %v4168_v34  ;;  %v4217_v4 = vld [vmem:[%s4846_s6 + $0x18] sm:$0xff] }
 0x370   :  { %4912 = vst [vmem:[#allocation9_spill] sm:$0xff] %v4192_v25 }
 0x371   :  { %v894_v26 = vpop.permute.xlu1 %893  ;;  %1385 = vmatpush.msra.mxu2 %v4001_v35  ;;  %4915 = vst [vmem:[#allocation12_spill] sm:$0xff] %v4217_v4 }
 0x372   :  { %v899_v3 = vsel %vm337_vm0, %v4904_v12, %v894_v26  ;;  %v4053_v26 = vld [vmem:[%s4846_s6 + $0x168] sm:$0xff] }
 0x373   :  { %v904_v0 = vperm.slane %v899_v3, 0  ;;  %1386 = vmatpush.msra.mxu2 %v4019_v8  ;;  %1424 = vmatpush.msra.mxu0 %v4053_v26  ;;  %v4084_v12 = vld [vmem:[%s4846_s6 + $0x1e8] sm:$0xff]  ;;  %v4091_v3 = vld [vmem:[%s4846_s6 + $0x40] sm:$0xff] }
 0x374   :  { %1444 = vmatpush.msrb.mxu1 %v4084_v12 }
 0x375   :  { %v908_v28 = vsel %vm900_vm11, %v904_v0, %v872_v27  ;;  %1387 = vmatpush.msra.mxu2 %v4043_v58  ;;  %1425 = vmatpush.msra.mxu0 %v4077_v14  ;;  %v4115_v0 = vld [vmem:[%s4846_s6 + $0x38] sm:$0xff]  ;;  %v4139_v27 = vld [vmem:[%s4846_s6 + $0x30] sm:$0xff] }
 0x376   :  { %v937_v33 = vsel %vm929_vm12, %v933_v6, %v908_v28  ;;  %1445 = vmatpush.msrb.mxu1 %v4108_v29  ;;  %4909 = vst [vmem:[#allocation6_spill] sm:$0xff] %v4115_v0  ;;  %v4132_v6 = vld [vmem:[%s4846_s6 + $0x1d8] sm:$0xff]  ;;  %v4154_v28 = vld [vmem:[%s4847_s8] sm:$0xf] }
 0x377   :  { %v973_v31 = vsel %vm965_vm13, %v969_v63, %v937_v33  ;;  %1388 = vmatpush.msra.mxu2 %v4067_v60  ;;  %1426 = vmatpush.msra.mxu0 %v4101_v11  ;;  %4910 = vst [vmem:[#allocation7_spill] sm:$0xff] %v4139_v27  ;;  %v4144_v63 = vld [vmem:[%s4846_s6 + $0xc8] sm:$0xff]  ;;  %v4173_v33 = vld [vmem:[%s4846_s6 + $0xc0] sm:$0xff]  ;;  %v1105_v15 = vperm.slane %v4154_v28, 0 }
 0x378   :  { %v1002_v30 = vsel %vm994_vm14, %v998_v23, %v973_v31  ;;  %1446 = vmatpush.msrb.mxu1 %v4132_v6  ;;  %1408 = vmatpush.msra.mxu3 %v4144_v63  ;;  %v4161_v23 = vld [vmem:[%s4846_s6 + $0x1d0] sm:$0xff]  ;;  %v4197_v31 = vld [vmem:[%s4846_s6 + $0xb8] sm:$0xff] }
 0x379   :  { %1006 = vst [vmem:[#allocation2 + $0x8] sm:$0xff] %v1002_v30  ;;  %v983_v5 = vpop.permute.xlu1 %982  ;;  %1389 = vmatpush.msra.mxu2 %v4091_v3  ;;  %1427 = vmatpush.msra.mxu0 %v4125_v46  ;;  %v4202_v30 = vld [vmem:[%s4846_s6 + $0x138] sm:$0xff] }
 0x37a   :  { %v992_v18 = vsel %vm337_vm0, %v983_v5, %v4908_v56  ;;  %1447 = vmatpush.msrb.mxu1 %v4161_v23  ;;  %1409 = vmatpush.msra.mxu3 %v4173_v33  ;;  %4913 = vst [vmem:[#allocation10_spill] sm:$0xff] %v4197_v31  ;;  %v4210_v5 = vld [vmem:[%s4846_s6 + $0x1c0] sm:$0xff]  ;;  %v4222_v56 = vld [vmem:[%s4846_s6 + $0xb0] sm:$0xff] }
 0x37b   :  { %v997_v20 = vperm.slane %v992_v18, 0  ;;  %1390 = vmatpush.msra.mxu2 %v4115_v0  ;;  %1428 = vmatpush.msra.mxu0 %v4149_v57  ;;  %4914 = vst [vmem:[#allocation11_spill] sm:$0xff] %v4202_v30  ;;  %v4227_v18 = vld [vmem:[%s4846_s6 + $0x130] sm:$0xff] }
 0x37c   :  { %1448 = vmatpush.msrb.mxu1 %v4185_v55  ;;  %1410 = vmatpush.msra.mxu3 %v4197_v31  ;;  %4916 = vst [vmem:[#allocation13_spill] sm:$0xff] %v4222_v56  ;;  %v4353_v0 = vld [vmem:[%s4846_s6 + $0x210] sm:$0xff] }
 0x37d   :  { %v1001_v52 = vsel %vm994_vm14, %v997_v20, %v972_v22  ;;  %1391 = vmatpush.msra.mxu2 %v4139_v27  ;;  %1429 = vmatpush.msra.mxu0 %v4178_v59  ;;  %4917 = vst [vmem:[#allocation14_spill] sm:$0xff] %v4227_v18  ;;  %v4234_v20 = vld [vmem:[%s4846_s6 + $0x1b8] sm:$0xff]  ;;  %v4268_v27 = vld [vmem:[%s4846_s6 + $0xa0] sm:$0xff] }
 0x37e   :  { %1005 = vst [vmem:[#allocation2 + $0x18] sm:$0xff] %v1001_v52  ;;  %1449 = vmatpush.msrb.mxu1 %v4210_v5  ;;  %1411 = vmatpush.msra.mxu3 %v4222_v56  ;;  %v4241_v52 = vld [vmem:[%s4846_s6 + $0x10] sm:$0xff]  ;;  %v1107_v56 = vperm.slane %v4154_v28, 2 }
 0x37f   :  { %1392 = vmatpush.msra.mxu2 %v4168_v34  ;;  %1430 = vmatpush.msra.mxu0 %v4202_v30  ;;  %4918 = vst [vmem:[#allocation15_spill] sm:$0xff] %v4234_v20  ;;  %v4263_v34 = vld [vmem:[%s4846_s6 + $0x8] sm:$0xff] }
 0x380   :  { %1450 = vmatpush.msrb.mxu1 %v4234_v20  ;;  %4919 = vst [vmem:[#allocation16_spill] sm:$0xff] %v4241_v52  ;;  %1412 = vmatpush.msra.mxu3 %v4246_v17  ;;  %v4319_v20 = vld [vmem:[%s4846_s6 + $0x110] sm:$0xff] }
 0x381   :  { %1393 = vmatpush.msra.mxu2 %v4192_v25  ;;  %1431 = vmatpush.msra.mxu0 %v4227_v18  ;;  %v4258_v25 = vld [vmem:[%s4846_s6 + $0x1b0] sm:$0xff]  ;;  %4923 = vst [vmem:[#allocation20_spill] sm:$0xff] %v4263_v34  ;;  %v4298_v18 = vld [vmem:[%s4846_s6 + $0x118] sm:$0xff] }
 0x382   :  { %4922 = vst [vmem:[#allocation19_spill] sm:$0xff] %v4258_v25  ;;  %1451 = vmatpush.msrb.mxu1 %v4258_v25  ;;  %1413 = vmatpush.msra.mxu3 %v4268_v27  ;;  %v4293_v25 = vld [vmem:[%s4846_s6 + $0x98] sm:$0xff] }
 0x383   :  { %1394 = vmatpush.msra.mxu2 %v4217_v4  ;;  %4924 = vst [vmem:[#allocation21_spill] sm:$0xff] %v4268_v27  ;;  %1432 = vmatpush.msra.mxu0 %v4251_v49  ;;  %v1106_v49 = vperm.slane %v4154_v28, 1  ;;  %v4314_v27 = vld [vmem:[%s4846_s6 + $0x90] sm:$0xff] }
 0x384   :  { %4928 = vst [vmem:[#allocation25_spill] sm:$0xff] %v4293_v25  ;;  %1414 = vmatpush.msra.mxu3 %v4293_v25  ;;  %v4336_v25 = vld [vmem:[%s4846_s6 + $0x88] sm:$0xff] }
 0x385   :  { %1395 = vmatpush.msra.mxu2 %v4241_v52  ;;  %v4285_v52 = vld [vmem:[%s4846_s6] sm:$0xff]  ;;  %4929 = vst [vmem:[#allocation26_spill] sm:$0xff] %v4298_v18 }
 0x386   :  { %4927 = vst [vmem:[#allocation24_spill] sm:$0xff] %v4285_v52  ;;  %1415 = vmatpush.msra.mxu3 %v4314_v27 }
 0x387   :  { %1396 = vmatpush.msra.mxu2 %v4263_v34  ;;  %v1108_v34 = vperm.slane %v4154_v28, 3  ;;  %4931 = vst [vmem:[#allocation28_spill] sm:$0xff] %v4314_v27  ;;  %v4365_v27 = vld [vmem:[%s4846_s6 + $0x208] sm:$0xff] }
 0x388   :  { %4932 = vst [vmem:[#allocation29_spill] sm:$0xff] %v4319_v20  ;;  %1416 = vmatpush.msra.mxu3 %v4336_v25 }
 0x389   :  { %1397 = vmatpush.msra.mxu2 %v4285_v52  ;;  %v4331_v52 = vld [vmem:[%s4846_s6 + $0x218] sm:$0xff]  ;;  %4934 = vst [vmem:[#allocation31_spill] sm:$0xff] %v4336_v25  ;;  %v1272_v25 = vld [vmem:[#allocation2 + $0x10] sm:$0xc] }
 0x38a   :  { %4933 = vst [vmem:[#allocation30_spill] sm:$0xff] %v4331_v52 }
 0x38b   :  { %1474 = vmatpush.msrb.mxu2 %v4331_v52  ;;  %4937 = vst [vmem:[#allocation34_spill] sm:$0xff] %v4353_v0  ;;  %v4360_v52 = vld [vmem:[%s4846_s6 + $0x80] sm:$0xff] }
 0x38c   :  { %4938 = vst [vmem:[#allocation35_spill] sm:$0xff] %v4360_v52  ;;  %1417 = vmatpush.msra.mxu3 %v4360_v52 }
 0x38d   :  { %4939 = vst [vmem:[#allocation36_spill] sm:$0xff] %v4365_v27  ;;  %1475 = vmatpush.msrb.mxu2 %v4353_v0 }
 0x38e   :  { %1565 = vmatpush.msrb.mxu3 %v3705_v37 }
 0x38f   :  { %1476 = vmatpush.msrb.mxu2 %v4365_v27 }
 0x390   :  { %1566 = vmatpush.msrb.mxu3 %v3722_v40 }
 0x392   :  { %1567 = vmatpush.msrb.mxu3 %v3738_v43 }
 0x394   :  { %1568 = vmatpush.msrb.mxu3 %v3756_v48 }
 0x3a7   :  { %v1133_v22 = vpop.f32.mrf.mxu1 }
 0x3a8   :  { %v1134_v4 = vadd.f32 %v1133_v22, %v1105_v15  ;;  %v4275_v15 = vld [vmem:[%s4846_s6 + $0x120] sm:$0xff]  ;;  %v4280_v22 = vld [vmem:[%s4846_s6 + $0x1a8] sm:$0xff] }
 0x3a9   :  { %4925 = vst [vmem:[#allocation22_spill] sm:$0xff] %v4275_v15  ;;  %1433 = vmatpush.msra.mxu0 %v4275_v15  ;;  %1452 = vmatpush.msrb.mxu1 %v4280_v22 }
 0x3aa   :  { %4926 = vst [vmem:[#allocation23_spill] sm:$0xff] %v4280_v22  ;;  %v2444_v17 = vmul.f32 -1.442695, %v1134_v4  ;;  %v4303_v4 = vld [vmem:[%s4846_s6 + $0x1a0] sm:$0xff] }
 0x3ab   :  { %4930 = vst [vmem:[#allocation27_spill] sm:$0xff] %v4303_v4  ;;  %1434 = vmatpush.msra.mxu0 %v4298_v18  ;;  %1453 = vmatpush.msrb.mxu1 %v4303_v4  ;;  %v4343_v18 = vld [vmem:[%s4846_s6 + $0x108] sm:$0xff]  ;;  %v4348_v4 = vld [vmem:[%s4846_s6 + $0x190] sm:$0xff] }
 0x3ac   :  { %2486 = vpow2.f32 %v2444_v17  ;;  %v4324_v17 = vld [vmem:[%s4846_s6 + $0x198] sm:$0xff]  ;;  %4935 = vst [vmem:[#allocation32_spill] sm:$0xff] %v4343_v18 }
 0x3ad   :  { %v1153_v28 = vpop.f32.mrf.mxu2  ;;  %4936 = vst [vmem:[#allocation33_spill] sm:$0xff] %v4348_v4  ;;  %1435 = vmatpush.msra.mxu0 %v4319_v20  ;;  %1454 = vmatpush.msrb.mxu1 %v4324_v17 }
 0x3ae   :  { %v1154_v15 = vadd.f32 %v1153_v28, %v1106_v49  ;;  %v1173_v22 = vpop.f32.mrf.mxu3 }
 0x3af   :  { %v1174_v49 = vadd.f32 %v1173_v22, %v1107_v56  ;;  %v1193_v28 = vpop.f32.mrf.mxu1  ;;  %v4372_v56 = vld [vmem:[%s4846_s6 + $0x100] sm:$0xff]  ;;  %v4377_v22 = vld [vmem:[%s4846_s6 + $0x188] sm:$0xff]  ;;  %1436 = vmatpush.msra.mxu0 %v4343_v18  ;;  %1455 = vmatpush.msrb.mxu1 %v4348_v4 }
 0x3b0   :  { %v2445_v30 = vmul.f32 -1.442695, %v1154_v15  ;;  %v1194_v31 = vadd.f32 %v1193_v28, %v1108_v34  ;;  %4940 = vst [vmem:[#allocation37_spill] sm:$0xff] %v4372_v56 }
 0x3b1   :  { %4941 = vst [vmem:[#allocation38_spill] sm:$0xff] %v4377_v22  ;;  %v2446_v20 = vmul.f32 -1.442695, %v1174_v49  ;;  %1437 = vmatpush.msra.mxu0 %v4372_v56  ;;  %1456 = vmatpush.msrb.mxu1 %v4377_v22  ;;  %v4388_v49 = vld [vmem:[%s4846_s6 + $0x180] sm:$0xff] }
 0x3b2   :  { %v2487_v34 = vpop.eup %2486  ;;  %2488 = vpow2.f32 %v2445_v30  ;;  %v2447_v15 = vmul.f32 -1.442695, %v1194_v31  ;;  %4942 = vst [vmem:[#allocation39_spill] sm:$0xff] %v4388_v49  ;;  %v4393_v30 = vld [vmem:[%s4846_s6 + $0x200] sm:$0xff] }
 0x3b3   :  { %v1208_v28 = vadd.f32 1.0, %v2487_v34  ;;  %2490 = vpow2.f32 %v2446_v20  ;;  %4943 = vst [vmem:[#allocation40_spill] sm:$0xff] %v4393_v30  ;;  %1477 = vmatpush.msrb.mxu2 %v4393_v30  ;;  %1457 = vmatpush.msrb.mxu1 %v4388_v49 }
 0x3b4   :  { %2492 = vpow2.f32 %v2447_v15  ;;  %1585 = vmatpush.msrb.mxu0 %v3700_v36 }
 0x3b5   :  { %2494 = vrcp.f32 %v1208_v28  ;;  %1605 = vmatpush.msra.mxu1 %v3710_v38  ;;  %vm1217_vm0 = vweird.f32 %v1208_v28 }
 0x3b6   :  { %1586 = vmatpush.msrb.mxu0 %v3717_v39 }
 0x3b7   :  { %1606 = vmatpush.msra.mxu1 %v3727_v41  ;;  %v1221_v41 = vand.u32 2147483647, %v1208_v28 }
 0x3b8   :  { %v2489_v31 = vpop.eup %2488  ;;  %1587 = vmatpush.msrb.mxu0 %v3733_v42  ;;  %v1223_v42 = vand.u32 2147483648, %v1208_v28 }
 0x3b9   :  { %v2491_v20 = vpop.eup %2490  ;;  %v1209_v34 = vadd.f32 1.0, %v2489_v31  ;;  %1607 = vmatpush.msra.mxu1 %v3745_v44  ;;  %vm1222_vm1 = vcmp.eq.f32.partialorder %v1221_v41, 8.507059e+37 }
 0x3ba   :  { %v2493_v37 = vpop.eup %2492  ;;  %v4405_v15 = vadd.f32 1.0, %v2491_v20  ;;  %1588 = vmatpush.msrb.mxu0 %v3751_v47  ;;  %v1224_v27 = vor.u32 1.1754944e-38, %v1223_v42 }
 0x3bb   :  { %v2495_v36 = vpop.eup %2494  ;;  %2496 = vrcp.f32 %v1209_v34  ;;  %v4409_v38 = vadd.f32 1.0, %v2493_v37  ;;  %1608 = vmatpush.msra.mxu1 %v3763_v50  ;;  %v1236_v44 = vand.u32 2147483647, %v1209_v34  ;;  %vm1232_vm3 = vweird.f32 %v1209_v34 }
 0x3bc   :  { %v1213_v39 = vmul.f32 %v2495_v36, %v1208_v28  ;;  %2498 = vrcp.f32 %v4405_v15  ;;  %vm1218_vm15 = vweird.f32 %v2495_v36  ;;  %v1238_v50 = vand.u32 2147483648, %v1209_v34 }
 0x3bd   :  { %2500 = vrcp.f32 %v4409_v38  ;;  %vm1219_vm2 = vmor %vm1217_vm0, %vm1218_vm15  ;;  %vm4417_vm4 = vcmp.eq.f32.partialorder %v1236_v44, 8.507059e+37  ;;  %v1251_v28 = vand.u32 2147483647, %v4405_v15  ;;  %v1253_v41 = vand.u32 2147483648, %v4405_v15 }
 0x3be   :  { %v1214_v40 = vsub.f32 1.0, %v1213_v39  ;;  %vm1247_vm11 = vweird.f32 %v4405_v15  ;;  %vm1262_vm12 = vweird.f32 %v4409_v38 }
 0x3bf   :  { %vm1252_vm14 = vcmp.eq.f32.partialorder %v1251_v28, 8.507059e+37 }
 0x3c0   :  { %v1215_v43 = vmul.f32 %v2495_v36, %v1214_v40 }
 0x3c1   :  { %v2497_v48 = vpop.eup %2496 }
 0x3c2   :  { %v2499_v31 = vpop.eup %2498  ;;  %v1228_v20 = vmul.f32 %v2497_v48, %v1209_v34  ;;  %v1216_v37 = vadd.f32 %v2495_v36, %v1215_v43  ;;  %vm1233_vm7 = vweird.f32 %v2497_v48 }
 0x3c3   :  { %v2501_v47 = vpop.eup %2500  ;;  %v1243_v30 = vmul.f32 %v2499_v31, %v4405_v15  ;;  %vm1248_vm8 = vweird.f32 %v2499_v31  ;;  %vm1234_vm10 = vmor %vm1232_vm3, %vm1233_vm7  ;;  %v1273_v15 = vld [vmem:[#allocation2] sm:$0xc] }
 0x3c4   :  { %v1229_v0 = vsub.f32 1.0, %v1228_v20  ;;  %v1258_v39 = vmul.f32 %v2501_v47, %v4409_v38  ;;  %v1220_v49 = vsel %vm1219_vm2, %v2495_v36, %v1216_v37  ;;  %v1266_v20 = vand.u32 2147483647, %v4409_v38  ;;  %vm1249_vm13 = vmor %vm1247_vm11, %vm1248_vm8 }
 0x3c5   :  { %v1244_v56 = vsub.f32 1.0, %v1243_v30  ;;  %v1225_v52 = vsel %vm1222_vm1, %v1224_v27, %v1220_v49  ;;  %v1268_v36 = vand.u32 2147483648, %v4409_v38  ;;  %vm1263_vm9 = vweird.f32 %v2501_v47 }
 0x3c6   :  { %v1230_v43 = vmul.f32 %v2497_v48, %v1229_v0  ;;  %v1259_v22 = vsub.f32 1.0, %v1258_v39  ;;  %v1280_v18 = vrot.slane %v1225_v52, 6  ;;  %v1239_v27 = vor.u32 1.1754944e-38, %v1238_v50  ;;  %vm1264_vm15 = vmor %vm1262_vm12, %vm1263_vm9 }
 0x3c7   :  { %v1245_v42 = vmul.f32 %v2499_v31, %v1244_v56  ;;  %v1254_v56 = vor.u32 1.1754944e-38, %v1253_v41  ;;  %vm1267_vm0 = vcmp.eq.f32.partialorder %v1266_v20, 8.507059e+37 }
 0x3c8   :  { %v1260_v44 = vmul.f32 %v2501_v47, %v1259_v22  ;;  %v1288_v37 = vmul.f32 %v1280_v18, %v1272_v25  ;;  %v1231_v4 = vadd.f32 %v2497_v48, %v1230_v43  ;;  %v1269_v25 = vor.u32 1.1754944e-38, %v1268_v36 }
 0x3c9   :  { %v1246_v49 = vadd.f32 %v2499_v31, %v1245_v42  ;;  %v1295_v42 = vpop.permute.xlu1 %1294 }
 0x3ca   :  { %v1368_v0 = vrot.slane %v1288_v37, 2  ;;  %v1235_v52 = vsel %vm1234_vm10, %v2497_v48, %v1231_v4  ;;  %v1261_v30 = vadd.f32 %v2501_v47, %v1260_v44  ;;  %v1274_v48 = vld [vmem:[#allocation2 + $0x18] sm:$0xc]  ;;  %v1275_v44 = vld [vmem:[#allocation2 + $0x8] sm:$0xc] }
 0x3cb   :  { %v1240_v39 = vsel %vm4417_vm4, %v1239_v27, %v1235_v52  ;;  %v1250_v22 = vsel %vm1249_vm13, %v2499_v31, %v1246_v49 }
 0x3cc   :  { %1398 = vmatmul.f32.vlgmr.msra.gmra.mxu2 %v1368_v0  ;;  %v1281_v18 = vrot.slane %v1240_v39, 6  ;;  %v1255_v34 = vsel %vm1252_vm14, %v1254_v56, %v1250_v22  ;;  %v1265_v50 = vsel %vm1264_vm15, %v2501_v47, %v1261_v30  ;;  %v1372_v47 = vrot.slane %v1295_v42, 2 }
 0x3cd   :  { %v1282_v43 = vrot.slane %v1255_v34, 6  ;;  %v1270_v38 = vsel %vm1267_vm0, %v1269_v25, %v1265_v50  ;;  %1625 = vmatpush.msra.mxu2 %v3784_v16  ;;  %v4946_v16 = vld [vmem:[#allocation10_spill] sm:$0xff] }
 0x3ce   :  { %v1289_v4 = vmul.f32 %v1281_v18, %v1273_v15  ;;  %v1283_v41 = vrot.slane %v1270_v38, 6 }
 0x3cf   :  { %v1290_v40 = vmul.f32 %v1282_v43, %v1274_v48  ;;  %1626 = vmatpush.msra.mxu2 %v3789_v21  ;;  %v4947_v21 = vld [vmem:[#allocation11_spill] sm:$0xff] }
 0x3d0   :  { %v1369_v31 = vrot.slane %v1289_v4, 2  ;;  %v1291_v28 = vmul.f32 %v1283_v41, %v1275_v44 }
 0x3d1   :  { %v1370_v36 = vrot.slane %v1290_v40, 2  ;;  %1627 = vmatpush.msra.mxu2 %v3795_v10  ;;  %v4948_v10 = vld [vmem:[#allocation6_spill] sm:$0xff] }
 0x3d2   :  { %1418 = vmatmul.f32.vlgmr.msra.gmra.mxu3 %v1369_v31  ;;  %v1371_v20 = vrot.slane %v1291_v28, 2  ;;  %v4978_v31 = vld [vmem:[#allocation5_spill] sm:$0xff] }
 0x3d3   :  { %1438 = vmatmul.f32.vlgmr.msra.gmra.mxu0 %v1370_v36  ;;  %1628 = vmatpush.msra.mxu2 %v3802_v32  ;;  %v4949_v32 = vld [vmem:[#allocation15_spill] sm:$0xff] }
 0x3d4   :  { %1458 = vmatmul.f32.vlgmr.msrb.gmra.mxu1 %v1371_v20  ;;  %2448 = vmatmul.msk.f32.vlgmr.msrb.gmra.mxu2 %vm1113_vm5, %v1372_v47 }
 0x3d5   :  { %1838 = vmatpush.msra.mxu0 %v4006_v51  ;;  %1858 = vmatpush.msrb.mxu1 %v4011_v2  ;;  %v4954_v51 = vld [vmem:[#allocation17_spill] sm:$0xff]  ;;  %v4955_v2 = vld [vmem:[#allocation18_spill] sm:$0xff] }
 0x3d6   :  { %1818 = vmatpush.msra.mxu3 %v3983_v1  ;;  %1878 = vmatpush.msrb.mxu2 %v4036_v61  ;;  %v4950_v1 = vld [vmem:[#allocation13_spill] sm:$0xff]  ;;  %v4959_v61 = vld [vmem:[#allocation22_spill] sm:$0xff] }
 0x3d7   :  { %1839 = vmatpush.msra.mxu0 %v4024_v13  ;;  %1859 = vmatpush.msrb.mxu1 %v4029_v54  ;;  %v4957_v13 = vld [vmem:[#allocation23_spill] sm:$0xff]  ;;  %v4958_v54 = vld [vmem:[#allocation21_spill] sm:$0xff] }
 0x3d8   :  { %1819 = vmatpush.msra.mxu3 %v3989_v45  ;;  %1879 = vmatpush.msrb.mxu2 %v4060_v7  ;;  %v4951_v45 = vld [vmem:[#allocation14_spill] sm:$0xff] }
 0x3d9   :  { %1840 = vmatpush.msra.mxu0 %v4048_v62  ;;  %1860 = vmatpush.msrb.mxu1 %v4053_v26  ;;  %v4961_v62 = vld [vmem:[#allocation27_spill] sm:$0xff]  ;;  %v4962_v26 = vld [vmem:[#allocation25_spill] sm:$0xff]  ;;  %v4963_v7 = vld [vmem:[#allocation26_spill] sm:$0xff] }
 0x3da   :  { %1820 = vmatpush.msra.mxu3 %v3995_v53  ;;  %1880 = vmatpush.msrb.mxu2 %v4084_v12  ;;  %v4952_v53 = vld [vmem:[#allocation7_spill] sm:$0xff]  ;;  %v4967_v12 = vld [vmem:[#allocation16_spill] sm:$0xff] }
 0x3db   :  { %1841 = vmatpush.msra.mxu0 %v4072_v19  ;;  %1861 = vmatpush.msrb.mxu1 %v4077_v14  ;;  %v4965_v19 = vld [vmem:[#allocation28_spill] sm:$0xff]  ;;  %v4966_v14 = vld [vmem:[#allocation29_spill] sm:$0xff] }
 0x3dc   :  { %1821 = vmatpush.msra.mxu3 %v4001_v35  ;;  %1881 = vmatpush.msrb.mxu2 %v4108_v29  ;;  %v4953_v35 = vld [vmem:[#allocation19_spill] sm:$0xff]  ;;  %v4971_v29 = vld [vmem:[#allocation20_spill] sm:$0xff] }
 0x3dd   :  { %1842 = vmatpush.msra.mxu0 %v4096_v24  ;;  %1862 = vmatpush.msrb.mxu1 %v4101_v11  ;;  %v4969_v24 = vld [vmem:[#allocation31_spill] sm:$0xff]  ;;  %v4970_v11 = vld [vmem:[#allocation32_spill] sm:$0xff] }
 0x3de   :  { %1822 = vmatpush.msra.mxu3 %v4019_v8  ;;  %1882 = vmatpush.msrb.mxu2 %v4132_v6  ;;  %v4956_v8 = vld [vmem:[#allocation8_spill] sm:$0xff]  ;;  %v4974_v6 = vld [vmem:[#allocation37_spill] sm:$0xff] }
 0x3df   :  { %1843 = vmatpush.msra.mxu0 %v4120_v9  ;;  %1863 = vmatpush.msrb.mxu1 %v4125_v46  ;;  %v4972_v9 = vld [vmem:[#allocation38_spill] sm:$0xff]  ;;  %v4973_v46 = vld [vmem:[#allocation35_spill] sm:$0xff] }
 0x3e0   :  { %1823 = vmatpush.msra.mxu3 %v4043_v58  ;;  %1883 = vmatpush.msrb.mxu2 %v4161_v23  ;;  %v4960_v58 = vld [vmem:[#allocation9_spill] sm:$0xff] }
 0x3e1   :  { %1844 = vmatpush.msra.mxu0 %v4144_v63  ;;  %1864 = vmatpush.msrb.mxu1 %v4149_v57  ;;  %v4975_v63 = vld [vmem:[#allocation24_spill] sm:$0xff]  ;;  %v4976_v57 = vld [vmem:[#allocation39_spill] sm:$0xff] }
 0x3e2   :  { %1824 = vmatpush.msra.mxu3 %v4067_v60  ;;  %1884 = vmatpush.msrb.mxu2 %v4185_v55  ;;  %v4964_v60 = vld [vmem:[#allocation12_spill] sm:$0xff] }
 0x3e3   :  { %1845 = vmatpush.msra.mxu0 %v4173_v33  ;;  %1865 = vmatpush.msrb.mxu1 %v4178_v59  ;;  %v4977_v33 = vld [vmem:[#allocation4_spill] sm:$0xff] }
 0x3e4   :  { %1825 = vmatpush.msra.mxu3 %v4091_v3  ;;  %1885 = vmatpush.msrb.mxu2 %v4210_v5  ;;  %v4968_v3 = vld [vmem:[#allocation33_spill] sm:$0xff]  ;;  %v1378_v59 = vrot.slane %v4977_v33, 2 }
 0x3e5   :  { %1846 = vmatpush.msra.mxu0 %v4946_v16  ;;  %1866 = vmatpush.msrb.mxu1 %v4947_v21 }
 0x3e6   :  { %1826 = vmatpush.msra.mxu3 %v4948_v10  ;;  %1886 = vmatpush.msrb.mxu2 %v4949_v32 }
 0x3e7   :  { %1847 = vmatpush.msra.mxu0 %v4950_v1  ;;  %1867 = vmatpush.msrb.mxu1 %v4951_v45  ;;  %v4979_v45 = vld [vmem:[#allocation30_spill] sm:$0xff] }
 0x3e8   :  { %1827 = vmatpush.msra.mxu3 %v4952_v53  ;;  %1887 = vmatpush.msrb.mxu2 %v4953_v35  ;;  %v4980_v53 = vld [vmem:[#allocation34_spill] sm:$0xff]  ;;  %v4981_v35 = vld [vmem:[#allocation36_spill] sm:$0xff] }
 0x3e9   :  { %1848 = vmatpush.msra.mxu0 %v4954_v51  ;;  %1868 = vmatpush.msrb.mxu1 %v4955_v2  ;;  %v4982_v51 = vld [vmem:[#allocation40_spill] sm:$0xff]  ;;  %v1541_v2 = vld [vmem:[%s4847_s8] sm:$0xf] }
 0x3ea   :  { %1828 = vmatpush.msra.mxu3 %v4956_v8  ;;  %1888 = vmatpush.msrb.mxu2 %v4957_v13  ;;  %v1544_v8 = vperm.slane %v1541_v2, 1  ;;  %v1545_v13 = vperm.slane %v1541_v2, 2 }
 0x3eb   :  { %1849 = vmatpush.msra.mxu0 %v4958_v54  ;;  %1869 = vmatpush.msrb.mxu1 %v4959_v61 }
 0x3ec   :  { %1829 = vmatpush.msra.mxu3 %v4960_v58  ;;  %1889 = vmatpush.msrb.mxu2 %v4961_v62 }
 0x3ed   :  { %1850 = vmatpush.msra.mxu0 %v4962_v26  ;;  %1870 = vmatpush.msrb.mxu1 %v4963_v7  ;;  %v1543_v7 = vperm.slane %v1541_v2, 0 }
 0x3ee   :  { %1830 = vmatpush.msra.mxu3 %v4964_v60  ;;  %1890 = vmatpush.msrb.mxu2 %v4324_v17 }
 0x3ef   :  { %1851 = vmatpush.msra.mxu0 %v4965_v19  ;;  %1871 = vmatpush.msrb.mxu1 %v4966_v14  ;;  %v1546_v19 = vperm.slane %v1541_v2, 3 }
 0x3f0   :  { %1831 = vmatpush.msra.mxu3 %v4967_v12  ;;  %1891 = vmatpush.msrb.mxu2 %v4968_v3 }
 0x3f1   :  { %1852 = vmatpush.msra.mxu0 %v4969_v24  ;;  %1872 = vmatpush.msrb.mxu1 %v4970_v11 }
 0x3f2   :  { %1832 = vmatpush.msra.mxu3 %v4971_v29  ;;  %1892 = vmatpush.msrb.mxu2 %v4972_v9 }
 0x3f3   :  { %1853 = vmatpush.msra.mxu0 %v4973_v46  ;;  %1873 = vmatpush.msrb.mxu1 %v4974_v6 }
 0x3f4   :  { %1833 = vmatpush.msra.mxu3 %v4975_v63  ;;  %1893 = vmatpush.msrb.mxu2 %v4976_v57 }
 0x44f   :  { %v1399_v23 = vpop.f32.mrf.mxu2 }
 0x450   :  { %v1400_v55 = vadd.f32 %v1399_v23, %v1378_v59  ;;  %v1439_v37 = vpop.f32.mrf.mxu0 }
 0x451   :  { %v1459_v49 = vpop.f32.mrf.mxu1 }
 0x455   :  { %v1419_v5 = vpop.f32.mrf.mxu3 }
 0x456   :  { %v1420_v17 = vadd.f32 %v1419_v5, %v1400_v55 }
 0x457   :  { %v1479_v52 = vpop.f32.mrf.mxu2 }
 0x458   :  { %v1440_v27 = vadd.f32 %v1439_v37, %v1420_v17 }
 0x45a   :  { %v1460_v0 = vadd.f32 %v1459_v49, %v1440_v27 }
 0x45c   :  { %v1480_v56 = vadd.f32 %v1479_v52, %v1460_v0 }
 0x45e   :  { %2502 = vtanh.f32 %v1480_v56  ;;  %v2449_v39 = vmul.f32 -1.442695, %v1480_v56 }
 0x460   :  { %2504 = vpow2.f32 %v2449_v39 }
 0x464   :  { %v2503_v30 = vpop.eup %2502 }
 0x465   :  { %1504 = vrot.lane.b32.xlu2 %v2503_v30, %s2559_s4 }
 0x466   :  { %v2505_v22 = vpop.eup %2504 }
 0x467   :  { %v1485_v25 = vadd.f32 1.0, %v2505_v22 }
 0x469   :  { %2506 = vrcp.f32 %v1485_v25  ;;  %v1497_v38 = vand.u32 2147483648, %v1485_v25  ;;  %vm1491_vm2 = vweird.f32 %v1485_v25  ;;  %v1495_v4 = vand.u32 2147483647, %v1485_v25 }
 0x46b   :  { %v1498_v41 = vor.u32 1.1754944e-38, %v1497_v38  ;;  %vm1496_vm4 = vcmp.eq.f32.partialorder %v1495_v4, 8.507059e+37 }
 0x46f   :  { %v2507_v18 = vpop.eup %2506 }
 0x470   :  { %v1487_v34 = vmul.f32 %v2507_v18, %v1485_v25  ;;  %vm1492_vm1 = vweird.f32 %v2507_v18 }
 0x471   :  { %vm1493_vm3 = vmor %vm1491_vm2, %vm1492_vm1 }
 0x472   :  { %v1488_v50 = vsub.f32 1.0, %v1487_v34 }
 0x474   :  { %v1489_v15 = vmul.f32 %v2507_v18, %v1488_v50 }
 0x476   :  { %v1490_v43 = vadd.f32 %v2507_v18, %v1489_v15 }
 0x478   :  { %v1494_v48 = vsel %vm1493_vm3, %v2507_v18, %v1490_v43 }
 0x479   :  { %v1499_v40 = vsel %vm1496_vm4, %v1498_v41, %v1494_v48 }
 0x47a   :  { %v1502_v28 = vmul.f32 %v1499_v40, %v4978_v31 }
 0x4bf   :  { %v1505_v42 = vpop.permute.xlu2 %1504 }
 0x4c0   :  { %v1507_v44 = vmul.f32 %v1505_v42, %v1499_v40 }
 0x4c2   :  { %1509 = vrot.lane.b32.xlu0 %v1507_v44, %s2560_s5 }
 0x534   :  { %v1510_v36 = vpop.permute.xlu0 %1509 }
 0x535   :  { %v4503_v47 = vadd.f32 %v1510_v36, %v1502_v28 }
 0x537   :  { %2508 = vtanh.f32 %v4503_v47 }
 0x53d   :  { %v2509_v20 = vpop.eup %2508 }
 0x53e   :  { %1515 = vrot.lane.b32.xlu1 %v2509_v20, %s2559_s4 }
 0x5b0   :  { %v1516_v16 = vpop.permute.xlu1 %1515 }
 0x5b1   :  { %v1518_v21 = vmul.f32 %v1516_v16, %v1499_v40 }
 0x5b3   :  { %v1519_v10 = vmax.f32 %v1518_v21, 0.0  ;;  %v1730_v32 = vrot.slane %v1518_v21, 4 }
 0x5b5   :  { %1731 = vrot.lane.b32.xlu0 %v1730_v32, %s2560_s5  ;;  %1521 = vrot.lane.b32.xlu2 %v1519_v10, %s2560_s5 }
 0x60f   :  { %v1522_v1 = vpop.permute.xlu2 %1521 }
 0x610   :  { %2450 = vmatmul.msk.f32.vlgmr.msrb.gmra.mxu3 %vm1113_vm5, %v1522_v1  ;;  %2451 = vmatmul.msk.f32.vlgmr.msrb.gmra.mxu0 %vm1113_vm5, %v1522_v1  ;;  %1524 = vst.msk [vmem:[#allocation3 + $0x2] sm:$0x3] %vm1085_vm6, %v1522_v1 }
 0x611   :  { %2452 = vmatmul.msk.f32.vlgmr.msra.gmra.mxu1 %vm1113_vm5, %v1522_v1  ;;  %2453 = vmatmul.msk.f32.vlgmr.msra.gmra.mxu2 %vm1113_vm5, %v1522_v1  ;;  %v1710_v1 = vld [vmem:[#allocation2] sm:$0x30] }
 0x612   :  { %1910 = vmatpush.msrb.mxu3 %v4979_v45 }
 0x614   :  { %1911 = vmatpush.msrb.mxu3 %v4980_v53 }
 0x616   :  { %1912 = vmatpush.msrb.mxu3 %v4981_v35 }
 0x618   :  { %1913 = vmatpush.msrb.mxu3 %v4982_v51  ;;  %v1711_v51 = vld [vmem:[#allocation2 + $0x18] sm:$0x30] }
 0x68d   :  { %v1590_v54 = vpop.f32.mrf.mxu0 }
 0x68e   :  { %v1591_v61 = vadd.f32 %v1590_v54, %v1544_v8  ;;  %v1610_v58 = vpop.f32.mrf.mxu1 }
 0x68f   :  { %v1611_v62 = vadd.f32 %v1610_v58, %v1545_v13 }
 0x690   :  { %v2455_v26 = vmul.f32 -1.442695, %v1591_v61 }
 0x691   :  { %v2456_v60 = vmul.f32 -1.442695, %v1611_v62 }
 0x692   :  { %2510 = vpow2.f32 %v2455_v26 }
 0x693   :  { %2512 = vpow2.f32 %v2456_v60  ;;  %v1570_v14 = vpop.f32.mrf.mxu3 }
 0x694   :  { %v1571_v12 = vadd.f32 %v1570_v14, %v1543_v7  ;;  %v1630_v3 = vpop.f32.mrf.mxu2 }
 0x695   :  { %v1631_v24 = vadd.f32 %v1630_v3, %v1546_v19 }
 0x696   :  { %v2454_v11 = vmul.f32 -1.442695, %v1571_v12  ;;  %v1709_v12 = vld [vmem:[#allocation2 + $0x10] sm:$0x30] }
 0x697   :  { %v2457_v29 = vmul.f32 -1.442695, %v1631_v24 }
 0x698   :  { %v2511_v9 = vpop.eup %2510  ;;  %2514 = vpow2.f32 %v2454_v11  ;;  %v1712_v11 = vld [vmem:[#allocation2 + $0x8] sm:$0x30] }
 0x699   :  { %v2513_v46 = vpop.eup %2512  ;;  %v1646_v6 = vadd.f32 1.0, %v2511_v9  ;;  %2516 = vpow2.f32 %v2457_v29 }
 0x69a   :  { %v1647_v63 = vadd.f32 1.0, %v2513_v46 }
 0x69b   :  { %2518 = vrcp.f32 %v1646_v6  ;;  %v1673_v0 = vand.u32 2147483647, %v1646_v6  ;;  %v1675_v52 = vand.u32 2147483648, %v1646_v6  ;;  %vm1669_vm8 = vweird.f32 %v1646_v6 }
 0x69c   :  { %2520 = vrcp.f32 %v1647_v63  ;;  %v1688_v30 = vand.u32 2147483647, %v1647_v63  ;;  %v1690_v39 = vand.u32 2147483648, %v1647_v63  ;;  %vm1684_vm9 = vweird.f32 %v1647_v63 }
 0x69d   :  { %vm1674_vm11 = vcmp.eq.f32.partialorder %v1673_v0, 8.507059e+37  ;;  %v1676_v43 = vor.u32 1.1754944e-38, %v1675_v52 }
 0x69e   :  { %v2515_v57 = vpop.eup %2514  ;;  %vm1689_vm13 = vcmp.eq.f32.partialorder %v1688_v30, 8.507059e+37  ;;  %v1691_v48 = vor.u32 1.1754944e-38, %v1690_v39 }
 0x69f   :  { %v2517_v23 = vpop.eup %2516  ;;  %v1645_v59 = vadd.f32 1.0, %v2515_v57  ;;  %v1814_v57 = vrot.slane %v4977_v33, 4 }
 0x6a0   :  { %v4521_v55 = vadd.f32 1.0, %v2517_v23 }
 0x6a1   :  { %v2519_v5 = vpop.eup %2518  ;;  %2522 = vrcp.f32 %v1645_v59  ;;  %v1658_v40 = vand.u32 2147483647, %v1645_v59  ;;  %v1660_v44 = vand.u32 2147483648, %v1645_v59  ;;  %vm1654_vm1 = vweird.f32 %v1645_v59 }
 0x6a2   :  { %v2521_v17 = vpop.eup %2520  ;;  %v1665_v37 = vmul.f32 %v2519_v5, %v1646_v6  ;;  %2524 = vrcp.f32 %v4521_v55  ;;  %vm1670_vm7 = vweird.f32 %v2519_v5  ;;  %v1705_v20 = vand.u32 2147483648, %v4521_v55  ;;  %v1732_v6 = vpop.permute.xlu0 %1731 }
 0x6a3   :  { %v1680_v27 = vmul.f32 %v2521_v17, %v1647_v63  ;;  %vm1685_vm10 = vweird.f32 %v2521_v17  ;;  %vm1671_vm12 = vmor %vm1669_vm8, %vm1670_vm7  ;;  %v1703_v53 = vand.u32 2147483647, %v4521_v55  ;;  %v1661_v13 = vor.u32 1.1754944e-38, %v1660_v44 }
 0x6a4   :  { %v1666_v49 = vsub.f32 1.0, %v1665_v37  ;;  %vm1686_vm14 = vmor %vm1684_vm9, %vm1685_vm10  ;;  %vm1699_vm3 = vweird.f32 %v4521_v55  ;;  %vm1659_vm4 = vcmp.eq.f32.partialorder %v1658_v40, 8.507059e+37  ;;  %v1706_v62 = vor.u32 1.1754944e-38, %v1705_v20 }
 0x6a5   :  { %v1681_v56 = vsub.f32 1.0, %v1680_v27  ;;  %vm1704_vm8 = vcmp.eq.f32.partialorder %v1703_v53, 8.507059e+37  ;;  %v1809_v63 = vrot.slane %v1732_v6, 4  ;;  %v1971_v53 = vld [vmem:[%s4845_s7 + $0x50] sm:$0xff]  ;;  %v2232_v6 = vld [vmem:[%s4846_s6 + $0x1f8] sm:$0xff] }
 0x6a6   :  { %v1667_v22 = vmul.f32 %v2519_v5, %v1666_v49 }
 0x6a7   :  { %v2523_v25 = vpop.eup %2522  ;;  %v1682_v18 = vmul.f32 %v2521_v17, %v1681_v56 }
 0x6a8   :  { %v2525_v34 = vpop.eup %2524  ;;  %v1650_v50 = vmul.f32 %v2523_v25, %v1645_v59  ;;  %v1668_v15 = vadd.f32 %v2519_v5, %v1667_v22  ;;  %vm1655_vm15 = vweird.f32 %v2523_v25 }
 0x6a9   :  { %v1695_v38 = vmul.f32 %v2525_v34, %v4521_v55  ;;  %v1683_v4 = vadd.f32 %v2521_v17, %v1682_v18  ;;  %vm1700_vm0 = vweird.f32 %v2525_v34  ;;  %vm1656_vm2 = vmor %vm1654_vm1, %vm1655_vm15 }
 0x6aa   :  { %v1651_v41 = vsub.f32 1.0, %v1650_v50  ;;  %v1672_v42 = vsel %vm1671_vm12, %v2519_v5, %v1668_v15  ;;  %vm1701_vm7 = vmor %vm1699_vm3, %vm1700_vm0 }
 0x6ab   :  { %v1696_v31 = vsub.f32 1.0, %v1695_v38  ;;  %v1677_v28 = vsel %vm1674_vm11, %v1676_v43, %v1672_v42  ;;  %v1687_v36 = vsel %vm1686_vm14, %v2521_v17, %v1683_v4 }
 0x6ac   :  { %v1652_v16 = vmul.f32 %v2523_v25, %v1651_v41  ;;  %v1718_v21 = vrot.slane %v1677_v28, 4  ;;  %v1692_v10 = vsel %vm1689_vm13, %v1691_v48, %v1687_v36 }
 0x6ad   :  { %v1697_v32 = vmul.f32 %v2525_v34, %v1696_v31  ;;  %v1719_v45 = vrot.slane %v1692_v10, 4 }
 0x6ae   :  { %v1726_v35 = vmul.f32 %v1718_v21, %v1710_v1  ;;  %v1653_v2 = vadd.f32 %v2523_v25, %v1652_v16  ;;  %v1974_v1 = vld [vmem:[%s4845_s7 + $0x68] sm:$0xff] }
 0x6af   :  { %v1727_v8 = vmul.f32 %v1719_v45, %v1711_v51  ;;  %v1698_v54 = vadd.f32 %v2525_v34, %v1697_v32  ;;  %v1973_v32 = vld [vmem:[%s4845_s7 + $0x60] sm:$0xff]  ;;  %v1976_v45 = vld [vmem:[%s4845_s7 + $0x78] sm:$0xff]  ;;  %2021 = vmatpush.msra.mxu1 %v1974_v1  ;;  %v1970_v51 = vld [vmem:[%s4845_s7 + $0x48] sm:$0xff] }
 0x6b0   :  { %v1806_v61 = vrot.slane %v1726_v35, 4  ;;  %v1657_v58 = vsel %vm1656_vm2, %v2523_v25, %v1653_v2  ;;  %2001 = vmatpush.msrb.mxu0 %v1973_v32  ;;  %v1969_v35 = vld [vmem:[%s4845_s7 + $0x40] sm:$0xff]  ;;  %v1972_v2 = vld [vmem:[%s4845_s7 + $0x58] sm:$0xff] }
 0x6b1   :  { %v1807_v26 = vrot.slane %v1727_v8, 4  ;;  %v1662_v7 = vsel %vm1659_vm4, %v1661_v13, %v1657_v58  ;;  %v1702_v60 = vsel %vm1701_vm7, %v2525_v34, %v1698_v54  ;;  %v1967_v8 = vld [vmem:[%s4845_s7 + $0x30] sm:$0xff]  ;;  %v1965_v13 = vld [vmem:[%s4845_s7 + $0x20] sm:$0xff]  ;;  %v1966_v54 = vld [vmem:[%s4845_s7 + $0x28] sm:$0xff]  ;;  %2022 = vmatpush.msra.mxu1 %v1970_v51 }
 0x6b2   :  { %1854 = vmatmul.f32.vlgmr.msra.gmra.mxu0 %v1806_v61  ;;  %v1717_v19 = vrot.slane %v1662_v7, 4  ;;  %v1707_v14 = vsel %vm1704_vm8, %v1706_v62, %v1702_v60  ;;  %v1968_v61 = vld [vmem:[%s4845_s7 + $0x38] sm:$0xff]  ;;  %v1963_v58 = vld [vmem:[%s4845_s7 + $0x10] sm:$0xff]  ;;  %v1961_v62 = vld [vmem:[%s4845_s7] sm:$0xff] }
 0x6b3   :  { %1874 = vmatmul.f32.vlgmr.msrb.gmra.mxu1 %v1807_v26  ;;  %v1720_v3 = vrot.slane %v1707_v14, 4  ;;  %2002 = vmatpush.msrb.mxu0 %v1969_v35  ;;  %v1962_v26 = vld [vmem:[%s4845_s7 + $0x8] sm:$0xff]  ;;  %v1964_v7 = vld [vmem:[%s4845_s7 + $0x18] sm:$0xff] }
 0x6b4   :  { %v1725_v24 = vmul.f32 %v1717_v19, %v1709_v12  ;;  %2023 = vmatpush.msra.mxu1 %v1966_v54  ;;  %v2184_v19 = vld [vmem:[%s4846_s6 + $0x78] sm:$0xff]  ;;  %v2183_v12 = vld [vmem:[%s4846_s6 + $0x70] sm:$0xff]  ;;  %v2206_v54 = vld [vmem:[%s4846_s6 + $0x128] sm:$0xff] }
 0x6b5   :  { %v1728_v29 = vmul.f32 %v1720_v3, %v1712_v11  ;;  %2003 = vmatpush.msrb.mxu0 %v1965_v13  ;;  %v2200_v14 = vld [vmem:[%s4846_s6 + $0xf8] sm:$0xff]  ;;  %v2199_v3 = vld [vmem:[%s4846_s6 + $0xf0] sm:$0xff]  ;;  %v2198_v11 = vld [vmem:[%s4846_s6 + $0xe8] sm:$0xff] }
 0x6b6   :  { %v1805_v9 = vrot.slane %v1725_v24, 4  ;;  %2024 = vmatpush.msra.mxu1 %v1962_v26  ;;  %v2182_v24 = vld [vmem:[%s4846_s6 + $0x68] sm:$0xff]  ;;  %v2172_v1 = vld [vmem:[%s4846_s6 + $0x18] sm:$0xff]  ;;  %v2187_v13 = vld [vmem:[%s4846_s6 + $0x90] sm:$0xff] }
 0x6b7   :  { %v1808_v46 = vrot.slane %v1728_v29, 4  ;;  %2004 = vmatpush.msrb.mxu0 %v1961_v62  ;;  %v2181_v29 = vld [vmem:[%s4846_s6 + $0x60] sm:$0xff] }
 0x6b8   :  { %1834 = vmatmul.f32.vlgmr.msra.gmra.mxu3 %v1805_v9  ;;  %2274 = vmatpush.msrb.mxu1 %v2200_v14  ;;  %v2197_v9 = vld [vmem:[%s4846_s6 + $0xe0] sm:$0xff] }
 0x6b9   :  { %1894 = vmatmul.f32.vlgmr.msrb.gmra.mxu2 %v1808_v46  ;;  %2061 = vmatpush.msra.mxu3 %v1976_v45  ;;  %v2216_v46 = vld [vmem:[%s4846_s6 + $0x178] sm:$0xff] }
 0x6ba   :  { %2254 = vmatpush.msra.mxu0 %v2184_v19  ;;  %2275 = vmatpush.msrb.mxu1 %v2199_v3  ;;  %v2188_v45 = vld [vmem:[%s4846_s6 + $0x98] sm:$0xff]  ;;  %v2169_v3 = vld [vmem:[%s4846_s6] sm:$0xff] }
 0x6bb   :  { %2062 = vmatpush.msra.mxu3 %v1972_v2  ;;  %v2223_v2 = vld [vmem:[%s4846_s6 + $0x1b0] sm:$0xff] }
 0x6bc   :  { %2255 = vmatpush.msra.mxu0 %v2183_v12  ;;  %2276 = vmatpush.msrb.mxu1 %v2198_v11  ;;  %v2221_v12 = vld [vmem:[%s4846_s6 + $0x1a0] sm:$0xff]  ;;  %v2204_v11 = vld [vmem:[%s4846_s6 + $0x118] sm:$0xff] }
 0x6bd   :  { %2063 = vmatpush.msra.mxu3 %v1968_v61  ;;  %v2222_v61 = vld [vmem:[%s4846_s6 + $0x1a8] sm:$0xff] }
 0x6be   :  { %2256 = vmatpush.msra.mxu0 %v2182_v24  ;;  %2277 = vmatpush.msrb.mxu1 %v2197_v9  ;;  %v2185_v24 = vld [vmem:[%s4846_s6 + $0x80] sm:$0xff]  ;;  %v2236_v9 = vld [vmem:[%s4846_s6 + $0x218] sm:$0xff] }
 0x6bf   :  { %2064 = vmatpush.msra.mxu3 %v1964_v7  ;;  %v2186_v7 = vld [vmem:[%s4846_s6 + $0x88] sm:$0xff] }
 0x6c0   :  { %2458 = vmatmul.msk.f32.vlgmr.msrb.gmra.mxu3 %vm1113_vm5, %v1809_v63  ;;  %2257 = vmatpush.msra.mxu0 %v2181_v29  ;;  %v2180_v63 = vld [vmem:[%s4846_s6 + $0x58] sm:$0xff] }
 0x6c1   :  { %2314 = vmatpush.msrb.mxu3 %v2232_v6  ;;  %v2220_v29 = vld [vmem:[%s4846_s6 + $0x198] sm:$0xff] }
 0x6c2   :  { %2258 = vmatpush.msra.mxu0 %v2180_v63  ;;  %v2203_v63 = vld [vmem:[%s4846_s6 + $0x110] sm:$0xff] }
 0x72f   :  { %v1855_v55 = vpop.f32.mrf.mxu0 }
 0x730   :  { %v1875_v17 = vpop.f32.mrf.mxu1 }
 0x73b   :  { %v1835_v23 = vpop.f32.mrf.mxu3 }
 0x73c   :  { %v1836_v59 = vadd.f32 %v1835_v23, %v1814_v57  ;;  %v1895_v27 = vpop.f32.mrf.mxu2  ;;  %v2196_v57 = vld [vmem:[%s4846_s6 + $0xd8] sm:$0xff]  ;;  %v2215_v23 = vld [vmem:[%s4846_s6 + $0x170] sm:$0xff] }
 0x73d   :  { %2278 = vmatpush.msrb.mxu1 %v2196_v57  ;;  %v2219_v57 = vld [vmem:[%s4846_s6 + $0x190] sm:$0xff] }
 0x73e   :  { %v1856_v5 = vadd.f32 %v1855_v55, %v1836_v59  ;;  %v2231_v59 = vld [vmem:[%s4846_s6 + $0x1f0] sm:$0xff] }
 0x73f   :  { %2315 = vmatpush.msrb.mxu3 %v2231_v59  ;;  %v2179_v55 = vld [vmem:[%s4846_s6 + $0x50] sm:$0xff] }
 0x740   :  { %v1876_v37 = vadd.f32 %v1875_v17, %v1856_v5  ;;  %v2195_v5 = vld [vmem:[%s4846_s6 + $0xd0] sm:$0xff]  ;;  %v2214_v17 = vld [vmem:[%s4846_s6 + $0x168] sm:$0xff]  ;;  %2259 = vmatpush.msra.mxu0 %v2179_v55 }
 0x741   :  { %2279 = vmatpush.msrb.mxu1 %v2195_v5  ;;  %v2235_v55 = vld [vmem:[%s4846_s6 + $0x210] sm:$0xff]  ;;  %v2202_v5 = vld [vmem:[%s4846_s6 + $0x108] sm:$0xff] }
 0x742   :  { %v1896_v49 = vadd.f32 %v1895_v27, %v1876_v37  ;;  %v2230_v37 = vld [vmem:[%s4846_s6 + $0x1e8] sm:$0xff] }
 0x743   :  { %v1915_v0 = vpop.f32.mrf.mxu3  ;;  %2316 = vmatpush.msrb.mxu3 %v2230_v37  ;;  %v2178_v27 = vld [vmem:[%s4846_s6 + $0x48] sm:$0xff] }
 0x744   :  { %v1916_v52 = vadd.f32 %v1915_v0, %v1896_v49  ;;  %v2194_v49 = vld [vmem:[%s4846_s6 + $0xc8] sm:$0xff]  ;;  %v2213_v0 = vld [vmem:[%s4846_s6 + $0x160] sm:$0xff]  ;;  %2260 = vmatpush.msra.mxu0 %v2178_v27 }
 0x745   :  { %2280 = vmatpush.msrb.mxu1 %v2194_v49  ;;  %v2234_v49 = vld [vmem:[%s4846_s6 + $0x208] sm:$0xff] }
 0x746   :  { %2526 = vtanh.f32 %v1916_v52  ;;  %v2459_v30 = vmul.f32 -1.442695, %v1916_v52  ;;  %v2229_v52 = vld [vmem:[%s4846_s6 + $0x1e0] sm:$0xff] }
 0x747   :  { %2317 = vmatpush.msrb.mxu3 %v2229_v52  ;;  %v2201_v52 = vld [vmem:[%s4846_s6 + $0x100] sm:$0xff] }
 0x748   :  { %2528 = vpow2.f32 %v2459_v30  ;;  %v2193_v30 = vld [vmem:[%s4846_s6 + $0xc0] sm:$0xff] }
 0x749   :  { %2281 = vmatpush.msrb.mxu1 %v2193_v30 }
 0x74c   :  { %v2527_v56 = vpop.eup %2526 }
 0x74d   :  { %1940 = vrot.lane.b32.xlu1 %v2527_v56, %s2559_s4  ;;  %v2177_v56 = vld [vmem:[%s4846_s6 + $0x40] sm:$0xff] }
 0x74e   :  { %v2529_v39 = vpop.eup %2528  ;;  %2261 = vmatpush.msra.mxu0 %v2177_v56  ;;  %v2217_v56 = vld [vmem:[%s4846_s6 + $0x180] sm:$0xff] }
 0x74f   :  { %v1921_v22 = vadd.f32 1.0, %v2529_v39  ;;  %v2212_v39 = vld [vmem:[%s4846_s6 + $0x158] sm:$0xff] }
 0x751   :  { %2530 = vrcp.f32 %v1921_v22  ;;  %v1933_v43 = vand.u32 2147483648, %v1921_v22  ;;  %vm1927_vm10 = vweird.f32 %v1921_v22  ;;  %v1931_v38 = vand.u32 2147483647, %v1921_v22 }
 0x753   :  { %v1934_v48 = vor.u32 1.1754944e-38, %v1933_v43  ;;  %vm1932_vm12 = vcmp.eq.f32.partialorder %v1931_v38, 8.507059e+37  ;;  %v2175_v43 = vld [vmem:[%s4846_s6 + $0x30] sm:$0xff] }
 0x754   :  { %v2191_v38 = vld [vmem:[%s4846_s6 + $0xb0] sm:$0xff] }
 0x757   :  { %v2531_v25 = vpop.eup %2530 }
 0x758   :  { %v1923_v18 = vmul.f32 %v2531_v25, %v1921_v22  ;;  %vm1928_vm9 = vweird.f32 %v2531_v25  ;;  %v2228_v22 = vld [vmem:[%s4846_s6 + $0x1d8] sm:$0xff] }
 0x759   :  { %vm1929_vm11 = vmor %vm1927_vm10, %vm1928_vm9  ;;  %2318 = vmatpush.msrb.mxu3 %v2228_v22 }
 0x75a   :  { %v1924_v34 = vsub.f32 1.0, %v1923_v18  ;;  %v2192_v18 = vld [vmem:[%s4846_s6 + $0xb8] sm:$0xff] }
 0x75b   :  { %2282 = vmatpush.msrb.mxu1 %v2192_v18 }
 0x75c   :  { %v1925_v50 = vmul.f32 %v2531_v25, %v1924_v34  ;;  %v2211_v34 = vld [vmem:[%s4846_s6 + $0x150] sm:$0xff] }
 0x75d   :  { %2283 = vmatpush.msrb.mxu1 %v2191_v38 }
 0x75e   :  { %v1926_v15 = vadd.f32 %v2531_v25, %v1925_v50  ;;  %v4682_v50 = vld [vmem:[%s4847_s8] sm:$0xf] }
 0x75f   :  { %v1981_v19 = vperm.slane %v4682_v50, 2  ;;  %v1982_v14 = vperm.slane %v4682_v50, 3 }
 0x760   :  { %v1930_v4 = vsel %vm1929_vm11, %v2531_v25, %v1926_v15  ;;  %v2176_v25 = vld [vmem:[%s4846_s6 + $0x38] sm:$0xff]  ;;  %v2227_v15 = vld [vmem:[%s4846_s6 + $0x1d0] sm:$0xff] }
 0x761   :  { %v1935_v42 = vsel %vm1932_vm12, %v1934_v48, %v1930_v4  ;;  %2262 = vmatpush.msra.mxu0 %v2176_v25  ;;  %2319 = vmatpush.msrb.mxu3 %v2227_v15  ;;  %v2210_v4 = vld [vmem:[%s4846_s6 + $0x148] sm:$0xff]  ;;  %v2233_v25 = vld [vmem:[%s4846_s6 + $0x200] sm:$0xff] }
 0x762   :  { %v1938_v44 = vmul.f32 %v1935_v42, %v4503_v47  ;;  %v1975_v47 = vld [vmem:[%s4845_s7 + $0x70] sm:$0xff]  ;;  %v2226_v48 = vld [vmem:[%s4846_s6 + $0x1c8] sm:$0xff] }
 0x763   :  { %2041 = vmatpush.msra.mxu2 %v1975_v47  ;;  %2263 = vmatpush.msra.mxu0 %v2175_v43 }
 0x764   :  { %2320 = vmatpush.msrb.mxu3 %v2226_v48 }
 0x765   :  { %2042 = vmatpush.msra.mxu2 %v1971_v53  ;;  %v2207_v53 = vld [vmem:[%s4846_s6 + $0x130] sm:$0xff] }
 0x767   :  { %2043 = vmatpush.msra.mxu2 %v1967_v8  ;;  %v2171_v8 = vld [vmem:[%s4846_s6 + $0x10] sm:$0xff] }
 0x769   :  { %2044 = vmatpush.msra.mxu2 %v1963_v58  ;;  %v2170_v58 = vld [vmem:[%s4846_s6 + $0x8] sm:$0xff] }
 0x76b   :  { %2294 = vmatpush.msrb.mxu2 %v2216_v46 }
 0x76d   :  { %2295 = vmatpush.msrb.mxu2 %v2215_v23 }
 0x76f   :  { %2296 = vmatpush.msrb.mxu2 %v2214_v17  ;;  %v2218_v17 = vld [vmem:[%s4846_s6 + $0x188] sm:$0xff] }
 0x771   :  { %2297 = vmatpush.msrb.mxu2 %v2213_v0 }
 0x773   :  { %2298 = vmatpush.msrb.mxu2 %v2212_v39 }
 0x775   :  { %2299 = vmatpush.msrb.mxu2 %v2211_v34 }
 0x777   :  { %2300 = vmatpush.msrb.mxu2 %v2210_v4 }
 0x7bf   :  { %v1941_v41 = vpop.permute.xlu1 %1940 }
 0x7c0   :  { %v1943_v40 = vmul.f32 %v1941_v41, %v1935_v42  ;;  %v2174_v41 = vld [vmem:[%s4846_s6 + $0x28] sm:$0xff] }
 0x7c1   :  { %2264 = vmatpush.msra.mxu0 %v2174_v41 }
 0x7c2   :  { %1945 = vrot.lane.b32.xlu2 %v1943_v40, %s2560_s5  ;;  %v2209_v40 = vld [vmem:[%s4846_s6 + $0x140] sm:$0xff] }
 0x7c3   :  { %2301 = vmatpush.msrb.mxu2 %v2209_v40 }
 0x81c   :  { %v1946_v31 = vpop.permute.xlu2 %1945 }
 0x81d   :  { %v4533_v28 = vadd.f32 %v1946_v31, %v1938_v44  ;;  %v1979_v44 = vperm.slane %v4682_v50, 0  ;;  %v1980_v31 = vperm.slane %v4682_v50, 1 }
 0x81f   :  { %2532 = vtanh.f32 %v4533_v28 }
 0x825   :  { %v2533_v36 = vpop.eup %2532 }
 0x826   :  { %1951 = vrot.lane.b32.xlu0 %v2533_v36, %s2559_s4  ;;  %v2225_v36 = vld [vmem:[%s4846_s6 + $0x1c0] sm:$0xff] }
 0x827   :  { %2321 = vmatpush.msrb.mxu3 %v2225_v36 }
 0x898   :  { %v1952_v20 = vpop.permute.xlu0 %1951 }
 0x899   :  { %v1954_v16 = vmul.f32 %v1952_v20, %v1935_v42  ;;  %v2190_v42 = vld [vmem:[%s4846_s6 + $0xa8] sm:$0xff]  ;;  %v2173_v20 = vld [vmem:[%s4846_s6 + $0x20] sm:$0xff] }
 0x89a   :  { %2284 = vmatpush.msrb.mxu1 %v2190_v42  ;;  %2265 = vmatpush.msra.mxu0 %v2173_v20 }
 0x89b   :  { %v1955_v21 = vmax.f32 %v1954_v16, 0.0  ;;  %v2166_v10 = vrot.slane %v1954_v16, 2  ;;  %v2189_v16 = vld [vmem:[%s4846_s6 + $0xa0] sm:$0xff] }
 0x89c   :  { %2285 = vmatpush.msrb.mxu1 %v2189_v16  ;;  %2266 = vmatpush.msra.mxu0 %v2172_v1 }
 0x89d   :  { %2167 = vrot.lane.b32.xlu2 %v2166_v10, %s2560_s5  ;;  %1957 = vrot.lane.b32.xlu1 %v1955_v21, %s2560_s5  ;;  %v2208_v21 = vld [vmem:[%s4846_s6 + $0x138] sm:$0xff] }
 0x89e   :  { %v2224_v10 = vld [vmem:[%s4846_s6 + $0x1b8] sm:$0xff]  ;;  %2302 = vmatpush.msrb.mxu2 %v2208_v21  ;;  %2286 = vmatpush.msrb.mxu1 %v2188_v45 }
 0x89f   :  { %2322 = vmatpush.msrb.mxu3 %v2224_v10  ;;  %2267 = vmatpush.msra.mxu0 %v2171_v8 }
 0x8a0   :  { %2303 = vmatpush.msrb.mxu2 %v2207_v53  ;;  %2287 = vmatpush.msrb.mxu1 %v2187_v13 }
 0x8a1   :  { %2323 = vmatpush.msrb.mxu3 %v2223_v2  ;;  %2268 = vmatpush.msra.mxu0 %v2170_v58 }
 0x8a2   :  { %2304 = vmatpush.msrb.mxu2 %v2206_v54  ;;  %2288 = vmatpush.msrb.mxu1 %v2186_v7 }
 0x8a3   :  { %2324 = vmatpush.msrb.mxu3 %v2222_v61  ;;  %2269 = vmatpush.msra.mxu0 %v2169_v3 }
 0x8a4   :  { %2289 = vmatpush.msrb.mxu1 %v2185_v24  ;;  %v2146_v24 = vld [vmem:[#allocation2] sm:$0xc0] }
 0x8a5   :  { %2325 = vmatpush.msrb.mxu3 %v2221_v12 }
 0x8a7   :  { %2326 = vmatpush.msrb.mxu3 %v2220_v29 }
 0x8a9   :  { %2327 = vmatpush.msrb.mxu3 %v2219_v57 }
 0x8ab   :  { %2328 = vmatpush.msrb.mxu3 %v2218_v17 }
 0x8ad   :  { %2329 = vmatpush.msrb.mxu3 %v2217_v56  ;;  %v2148_v56 = vld [vmem:[#allocation2 + $0x8] sm:$0xc0] }
 0x90f   :  { %v1958_v60 = vpop.permute.xlu1 %1957 }
 0x910   :  { %2460 = vmatmul.msk.f32.vlgmr.msrb.gmra.mxu0 %vm1113_vm5, %v1958_v60  ;;  %2461 = vmatmul.msk.f32.vlgmr.msra.gmra.mxu1 %vm1113_vm5, %v1958_v60  ;;  %1960 = vst.msk [vmem:[#allocation3 + $0x4] sm:$0x3] %vm1085_vm6, %v1958_v60 }
 0x911   :  { %2462 = vmatmul.msk.f32.vlgmr.msra.gmra.mxu2 %vm1113_vm5, %v1958_v60  ;;  %2463 = vmatmul.msk.f32.vlgmr.msra.gmra.mxu3 %vm1113_vm5, %v1958_v60  ;;  %v2205_v60 = vld [vmem:[%s4846_s6 + $0x120] sm:$0xff] }
 0x912   :  { %2305 = vmatpush.msrb.mxu2 %v2205_v60  ;;  %2346 = vmatpush.msrb.mxu0 %v2236_v9  ;;  %v2145_v60 = vld [vmem:[#allocation2 + $0x10] sm:$0xc0] }
 0x914   :  { %2306 = vmatpush.msrb.mxu2 %v2204_v11  ;;  %2347 = vmatpush.msrb.mxu0 %v2235_v55 }
 0x916   :  { %2307 = vmatpush.msrb.mxu2 %v2203_v63  ;;  %2348 = vmatpush.msrb.mxu0 %v2234_v49 }
 0x918   :  { %2308 = vmatpush.msrb.mxu2 %v2202_v5  ;;  %2349 = vmatpush.msrb.mxu0 %v2233_v25 }
 0x91a   :  { %2309 = vmatpush.msrb.mxu2 %v2201_v52 }
 0x98d   :  { %v2006_v47 = vpop.f32.mrf.mxu0  ;;  %v2026_v32 = vpop.f32.mrf.mxu1 }
 0x98e   :  { %v2007_v35 = vadd.f32 %v2006_v47, %v1979_v44  ;;  %v2027_v51 = vadd.f32 %v2026_v32, %v1980_v31 }
 0x990   :  { %v2464_v62 = vmul.f32 -1.442695, %v2007_v35  ;;  %v2465_v26 = vmul.f32 -1.442695, %v2027_v51 }
 0x992   :  { %2534 = vpow2.f32 %v2464_v62 }
 0x993   :  { %2536 = vpow2.f32 %v2465_v26 }
 0x994   :  { %v2046_v46 = vpop.f32.mrf.mxu2  ;;  %v2066_v6 = vpop.f32.mrf.mxu3 }
 0x995   :  { %v2047_v23 = vadd.f32 %v2046_v46, %v1981_v19  ;;  %v2067_v59 = vadd.f32 %v2066_v6, %v1982_v14 }
 0x997   :  { %v2466_v37 = vmul.f32 -1.442695, %v2047_v23  ;;  %v2467_v27 = vmul.f32 -1.442695, %v2067_v59 }
 0x998   :  { %v2535_v0 = vpop.eup %2534 }
 0x999   :  { %v2537_v30 = vpop.eup %2536  ;;  %v2081_v39 = vadd.f32 1.0, %v2535_v0  ;;  %2538 = vpow2.f32 %v2466_v37  ;;  %v2168_v0 = vpop.permute.xlu2 %2167 }
 0x99a   :  { %v2082_v22 = vadd.f32 1.0, %v2537_v30  ;;  %2540 = vpow2.f32 %v2467_v27  ;;  %v2147_v27 = vld [vmem:[#allocation2 + $0x18] sm:$0xc0] }
 0x99b   :  { %2542 = vrcp.f32 %v2081_v39  ;;  %v2094_v40 = vand.u32 2147483647, %v2081_v39  ;;  %v2096_v44 = vand.u32 2147483648, %v2081_v39  ;;  %vm2090_vm15 = vweird.f32 %v2081_v39 }
 0x99c   :  { %2544 = vrcp.f32 %v2082_v22  ;;  %v2109_v36 = vand.u32 2147483647, %v2082_v22  ;;  %v2111_v20 = vand.u32 2147483648, %v2082_v22  ;;  %vm2105_vm0 = vweird.f32 %v2082_v22 }
 0x99d   :  { %vm2095_vm2 = vcmp.eq.f32.partialorder %v2094_v40, 8.507059e+37  ;;  %v2097_v1 = vor.u32 1.1754944e-38, %v2096_v44 }
 0x99e   :  { %vm2110_vm4 = vcmp.eq.f32.partialorder %v2109_v36, 8.507059e+37  ;;  %v2112_v51 = vor.u32 1.1754944e-38, %v2111_v20 }
 0x99f   :  { %v2539_v18 = vpop.eup %2538 }
 0x9a0   :  { %v2541_v34 = vpop.eup %2540  ;;  %v2083_v50 = vadd.f32 1.0, %v2539_v18 }
 0x9a1   :  { %v2543_v15 = vpop.eup %2542  ;;  %v4805_v43 = vadd.f32 1.0, %v2541_v34  ;;  %v2250_v34 = vrot.slane %v4977_v33, 6 }
 0x9a2   :  { %v2545_v38 = vpop.eup %2544  ;;  %v2086_v4 = vmul.f32 %v2543_v15, %v2081_v39  ;;  %2546 = vrcp.f32 %v2083_v50  ;;  %vm2091_vm13 = vweird.f32 %v2543_v15  ;;  %v2124_v54 = vand.u32 2147483647, %v2083_v50 }
 0x9a3   :  { %v2101_v48 = vmul.f32 %v2545_v38, %v2082_v22  ;;  %2548 = vrcp.f32 %v4805_v43  ;;  %vm2106_vm14 = vweird.f32 %v2545_v38  ;;  %vm2092_vm1 = vmor %vm2090_vm15, %vm2091_vm13  ;;  %v2126_v26 = vand.u32 2147483648, %v2083_v50 }
 0x9a4   :  { %v2087_v41 = vsub.f32 1.0, %v2086_v4  ;;  %vm2107_vm3 = vmor %vm2105_vm0, %vm2106_vm14  ;;  %v2141_v14 = vand.u32 2147483648, %v4805_v43  ;;  %v2139_v11 = vand.u32 2147483647, %v4805_v43  ;;  %vm2120_vm9 = vweird.f32 %v2083_v50 }
 0x9a5   :  { %v2102_v42 = vsub.f32 1.0, %v2101_v48  ;;  %v2127_v6 = vor.u32 1.1754944e-38, %v2126_v26  ;;  %vm2135_vm11 = vweird.f32 %v4805_v43  ;;  %vm2125_vm12 = vcmp.eq.f32.partialorder %v2124_v54, 8.507059e+37 }
 0x9a6   :  { %v2088_v31 = vmul.f32 %v2543_v15, %v2087_v41  ;;  %v2142_v59 = vor.u32 1.1754944e-38, %v2141_v14  ;;  %vm2140_vm14 = vcmp.eq.f32.partialorder %v2139_v11, 8.507059e+37  ;;  %v2245_v22 = vrot.slane %v2168_v0, 6 }
 0x9a7   :  { %v2103_v16 = vmul.f32 %v2545_v38, %v2102_v42 }
 0x9a8   :  { %v2547_v21 = vpop.eup %2546  ;;  %v2089_v10 = vadd.f32 %v2543_v15, %v2088_v31 }
 0x9a9   :  { %v2549_v47 = vpop.eup %2548  ;;  %v2116_v32 = vmul.f32 %v2547_v21, %v2083_v50  ;;  %v2104_v45 = vadd.f32 %v2545_v38, %v2103_v16  ;;  %vm2121_vm7 = vweird.f32 %v2547_v21 }
 0x9aa   :  { %v2131_v53 = vmul.f32 %v2549_v47, %v4805_v43  ;;  %v2093_v35 = vsel %vm2092_vm1, %v2543_v15, %v2089_v10  ;;  %vm2136_vm8 = vweird.f32 %v2549_v47  ;;  %vm2122_vm10 = vmor %vm2120_vm9, %vm2121_vm7 }
 0x9ab   :  { %v2117_v2 = vsub.f32 1.0, %v2116_v32  ;;  %v2098_v8 = vsel %vm2095_vm2, %v2097_v1, %v2093_v35  ;;  %v2108_v13 = vsel %vm2107_vm3, %v2545_v38, %v2104_v45  ;;  %vm2137_vm13 = vmor %vm2135_vm11, %vm2136_vm8 }
 0x9ac   :  { %v2132_v61 = vsub.f32 1.0, %v2131_v53  ;;  %v2153_v58 = vrot.slane %v2098_v8, 2  ;;  %v2113_v62 = vsel %vm2110_vm4, %v2112_v51, %v2108_v13 }
 0x9ad   :  { %v2118_v7 = vmul.f32 %v2547_v21, %v2117_v2  ;;  %v2154_v19 = vrot.slane %v2113_v62, 2 }
 0x9ae   :  { %v2133_v12 = vmul.f32 %v2549_v47, %v2132_v61  ;;  %v2161_v3 = vmul.f32 %v2153_v58, %v2145_v60  ;;  %v2400_v60 = vld [vmem:[%s4849_s9 + $0x10] sm:$0xff] }
 0x9af   :  { %v2162_v29 = vmul.f32 %v2154_v19, %v2146_v24  ;;  %v2119_v9 = vadd.f32 %v2547_v21, %v2118_v7  ;;  %v2401_v7 = vld [vmem:[%s4849_s9 + $0x18] sm:$0xff]  ;;  %v2398_v19 = vld [vmem:[%s4849_s9] sm:$0xff] }
 0x9b0   :  { %v2241_v46 = vrot.slane %v2161_v3, 6  ;;  %v2134_v63 = vadd.f32 %v2549_v47, %v2133_v12  ;;  %2421 = vmatpush.msra.mxu1 %v2401_v7  ;;  %v2477_v3 = vld [vmem:[%s4848_s10] ss:$0 sm:$0xff] }
 0x9b1   :  { %v2242_v57 = vrot.slane %v2162_v29, 6  ;;  %v2123_v23 = vsel %vm2122_vm10, %v2547_v21, %v2119_v9 }
 0x9b2   :  { %2270 = vmatmul.f32.vlgmr.msra.gmra.mxu0 %v2241_v46  ;;  %v2128_v55 = vsel %vm2125_vm12, %v2127_v6, %v2123_v23  ;;  %v2138_v5 = vsel %vm2137_vm13, %v2549_v47, %v2134_v63  ;;  %2422 = vmatpush.msra.mxu1 %v2400_v60 }
 0x9b3   :  { %2290 = vmatmul.f32.vlgmr.msrb.gmra.mxu1 %v2242_v57  ;;  %v2155_v17 = vrot.slane %v2128_v55, 2  ;;  %v2143_v37 = vsel %vm2140_vm14, %v2142_v59, %v2138_v5 }
 0x9b4   :  { %v2156_v49 = vrot.slane %v2143_v37, 2 }
 0x9b5   :  { %v2163_v52 = vmul.f32 %v2155_v17, %v2147_v27 }
 0x9b6   :  { %v2164_v30 = vmul.f32 %v2156_v49, %v2148_v56 }
 0x9b7   :  { %v2243_v39 = vrot.slane %v2163_v52, 6 }
 0x9b8   :  { %v2244_v25 = vrot.slane %v2164_v30, 6 }
 0x9b9   :  { %2310 = vmatmul.f32.vlgmr.msrb.gmra.mxu2 %v2243_v39 }
 0x9ba   :  { %2330 = vmatmul.f32.vlgmr.msrb.gmra.mxu3 %v2244_v25  ;;  %2468 = vmatmul.msk.f32.vlgmr.msrb.gmra.mxu0 %vm1113_vm5, %v2245_v22 }
 0xa2f   :  { %v2271_v18 = vpop.f32.mrf.mxu0 }
 0xa30   :  { %v2272_v50 = vadd.f32 %v2271_v18, %v2250_v34  ;;  %v2291_v15 = vpop.f32.mrf.mxu1 }
 0xa32   :  { %v2292_v43 = vadd.f32 %v2291_v15, %v2272_v50 }
 0xa37   :  { %v2351_v42 = vpop.f32.mrf.mxu0 }
 0xa3c   :  { %v2311_v38 = vpop.f32.mrf.mxu2 }
 0xa3d   :  { %v2312_v4 = vadd.f32 %v2311_v38, %v2292_v43  ;;  %v2331_v48 = vpop.f32.mrf.mxu3 }
 0xa3f   :  { %v2332_v41 = vadd.f32 %v2331_v48, %v2312_v4 }
 0xa41   :  { %v2352_v40 = vadd.f32 %v2351_v42, %v2332_v41 }
 0xa43   :  { %2550 = vtanh.f32 %v2352_v40  ;;  %v2469_v31 = vmul.f32 -1.442695, %v2352_v40 }
 0xa45   :  { %2552 = vpow2.f32 %v2469_v31 }
 0xa49   :  { %v2551_v44 = vpop.eup %2550 }
 0xa4a   :  { %2376 = vrot.lane.b32.xlu0 %v2551_v44, %s2559_s4 }
 0xa4b   :  { %v2553_v36 = vpop.eup %2552 }
 0xa4c   :  { %v2357_v20 = vadd.f32 1.0, %v2553_v36 }
 0xa4e   :  { %2554 = vrcp.f32 %v2357_v20  ;;  %v2369_v32 = vand.u32 2147483648, %v2357_v20  ;;  %vm2363_vm0 = vweird.f32 %v2357_v20  ;;  %v2367_v1 = vand.u32 2147483647, %v2357_v20 }
 0xa50   :  { %v2370_v53 = vor.u32 1.1754944e-38, %v2369_v32  ;;  %vm2368_vm2 = vcmp.eq.f32.partialorder %v2367_v1, 8.507059e+37 }
 0xa54   :  { %v2555_v16 = vpop.eup %2554 }
 0xa55   :  { %v2359_v33 = vmul.f32 %v2555_v16, %v2357_v20  ;;  %vm2364_vm15 = vweird.f32 %v2555_v16 }
 0xa56   :  { %vm2365_vm1 = vmor %vm2363_vm0, %vm2364_vm15 }
 0xa57   :  { %v2360_v21 = vsub.f32 1.0, %v2359_v33 }
 0xa59   :  { %v2361_v10 = vmul.f32 %v2555_v16, %v2360_v21 }
 0xa5b   :  { %v2362_v47 = vadd.f32 %v2555_v16, %v2361_v10 }
 0xa5d   :  { %v2366_v45 = vsel %vm2365_vm1, %v2555_v16, %v2362_v47 }
 0xa5e   :  { %v2371_v51 = vsel %vm2368_vm2, %v2370_v53, %v2366_v45 }
 0xa5f   :  { %v2374_v8 = vmul.f32 %v2371_v51, %v4533_v28  ;;  %v2399_v28 = vld [vmem:[%s4849_s9 + $0x8] sm:$0xff] }
 0xa60   :  { %2423 = vmatpush.msra.mxu1 %v2399_v28 }
 0xa62   :  { %2424 = vmatpush.msra.mxu1 %v2398_v19 }
 0xabc   :  { %v2377_v35 = vpop.permute.xlu0 %2376 }
 0xabd   :  { %v2379_v2 = vmul.f32 %v2377_v35, %v2371_v51 }
 0xabf   :  { %2381 = vrot.lane.b32.xlu1 %v2379_v2, %s2560_s5 }
 0xb31   :  { %v2382_v13 = vpop.permute.xlu1 %2381 }
 0xb32   :  { %v2384_v54 = vadd.f32 %v2382_v13, %v2374_v8 }
 0xb34   :  { %2556 = vtanh.f32 %v2384_v54 }
 0xb3a   :  { %v2557_v61 = vpop.eup %2556 }
 0xb3b   :  { %2387 = vrot.lane.b32.xlu2 %v2557_v61, %s2559_s4 }
 0xb95   :  { %v2388_v58 = vpop.permute.xlu2 %2387 }
 0xb96   :  { %v2390_v62 = vmul.f32 %v2388_v58, %v2371_v51 }
 0xb98   :  { %v2391_v26 = vmax.f32 %v2390_v62, 0.0 }
 0xb9a   :  { %2393 = vrot.lane.b32.xlu0 %v2391_v26, %s2560_s5 }
 0xc0c   :  { %v2394_v14 = vpop.permute.xlu0 %2393 }
 0xc0d   :  { %2396 = vst.msk [vmem:[#allocation3 + $0x6] sm:$0x3] %vm1085_vm6, %v2394_v14 }
 0xc14   :  { %v2397_v12 = vld [vmem:[#allocation3] sm:$0xff] }
 0xc15   :  { %2470 = vmatmul.msk.f32.vlgmr.msra.gmra.mxu1 %vm1113_vm5, %v2397_v12 }
 0xc92   :  { %v2426_v24 = vpop.f32.mrf.mxu1 }
 0xc93   :  { %v2427_v11 = vadd.f32 %v2477_v3, %v2426_v24 }
 0xc95   :  { %2429 = vst [vmem:[%s4850_s11] sm:$0xff] %v2427_v11 }

</bundles_post_ra>
